<compile_context>
chip_gen: v7x
topology: tpu7x:2x2x1
jax: 0.10.0
libtpu: 0.0.40
codegen_flags: <defaults>
</compile_context>

<pallas_src>
import functools

import jax
import jax.numpy as jnp
from jax.experimental import pallas as pl
from jax.experimental.pallas import tpu as pltpu

LN_EPS = 1e-6
VMEM_LIMIT_BYTES = 64 * 1024 * 1024  # <= physical VMEM on v5e/v6e (128 MiB) and v7x (64 MiB)


def _cparams(*sem):
    return pltpu.CompilerParams(dimension_semantics=sem,
                                vmem_limit_bytes=VMEM_LIMIT_BYTES)


def _row_tile(m):
    # Row tile for the M = B*S axis: full array when small, 512 otherwise
    # (512-row tiles reach ~85% of HBM roofline vs ~63% at 256; bf16 weights keep
    # the VMEM budget comfortably inside 64 MiB even with double buffering).
    return m if m <= 512 else 512


# ----------------------------- Pallas kernels ----------------------------- #

def _linear_kernel(x_ref, w_ref, b_ref, o_ref):
    # y = x @ W + b   (W already bf16 in HBM; f32 accumulation)
    x = x_ref[...].astype(jnp.bfloat16)
    y = jnp.dot(x, w_ref[...], preferred_element_type=jnp.float32) + b_ref[...]
    o_ref[...] = y.astype(o_ref.dtype)


def linear(x, w, b, out_dtype=None):
    M, K = x.shape
    N = w.shape[1]
    tm = _row_tile(M)
    return pl.pallas_call(
        _linear_kernel,
        grid=(pl.cdiv(M, tm),),
        out_shape=jax.ShapeDtypeStruct((M, N), out_dtype or x.dtype),
        in_specs=[
            pl.BlockSpec((tm, K), lambda i: (i, 0)),
            pl.BlockSpec((K, N), lambda i: (0, 0)),   # grid-invariant -> VMEM resident
            pl.BlockSpec((1, N), lambda i: (0, 0)),
        ],
        out_specs=pl.BlockSpec((tm, N), lambda i: (i, 0)),
        compiler_params=_cparams("parallel"),
    )(x, w, b)


def _qkv_kernel(x_ref, wq_ref, bq_ref, wkv_ref, bkv_ref, q_ref, kv_ref):
    # Fused self-attention projection: one load of x, two matmuls, two bf16 outputs.
    x = x_ref[...].astype(jnp.bfloat16)
    q = jnp.dot(x, wq_ref[...], preferred_element_type=jnp.float32) + bq_ref[...]
    kv = jnp.dot(x, wkv_ref[...], preferred_element_type=jnp.float32) + bkv_ref[...]
    q_ref[...] = q.astype(q_ref.dtype)
    kv_ref[...] = kv.astype(kv_ref.dtype)


def qkv_project(x, wq, bq, wkv, bkv):
    M, D = x.shape
    Nq, Nkv = wq.shape[1], wkv.shape[1]
    tm = _row_tile(M)
    return pl.pallas_call(
        _qkv_kernel,
        grid=(pl.cdiv(M, tm),),
        out_shape=(jax.ShapeDtypeStruct((M, Nq), jnp.bfloat16),
                   jax.ShapeDtypeStruct((M, Nkv), jnp.bfloat16)),
        in_specs=[
            pl.BlockSpec((tm, D), lambda i: (i, 0)),
            pl.BlockSpec((D, Nq), lambda i: (0, 0)),
            pl.BlockSpec((1, Nq), lambda i: (0, 0)),
            pl.BlockSpec((D, Nkv), lambda i: (0, 0)),
            pl.BlockSpec((1, Nkv), lambda i: (0, 0)),
        ],
        out_specs=(pl.BlockSpec((tm, Nq), lambda i: (i, 0)),
                   pl.BlockSpec((tm, Nkv), lambda i: (i, 0))),
        compiler_params=_cparams("parallel"),
    )(x, wq, bq, wkv, bkv)


def _mha_attention_kernel(*refs, heads, dk, dv, scale, masked):
    # One (batch, q-block) step: q (tq, H*dk) bf16, kv (Sk, H*dk+H*dv) bf16,
    # mask (tq, Sk) int8 (optional).  Softmax statistics in f32.
    if masked:
        q_ref, kv_ref, m_ref, o_ref, a_ref = refs
    else:
        q_ref, kv_ref, o_ref, a_ref = refs

    q_all = q_ref[...]                                   # (tq, H*dk)   bf16
    kv_all = kv_ref[...]                                  # (Sk, H*dk+H*dv) bf16
    if masked:
        keep = m_ref[...].astype(jnp.int32) != 0          # i8 -> i32 unpack, vector cmp

    for h in range(heads):                                # static, unrolled
        q = q_all[:, h * dk:(h + 1) * dk]
        k = kv_all[:, h * dk:(h + 1) * dk]
        v = kv_all[:, heads * dk + h * dv: heads * dk + (h + 1) * dv]
        # q @ k^T by contracting last axes directly -- no explicit transpose of K.
        s = jax.lax.dot_general(q, k, (((1,), (1,)), ((), ())),
                                preferred_element_type=jnp.float32) * scale
        if masked:
            s = jnp.where(keep, s, jnp.float32(-1e9))
        s = s - jnp.max(s, axis=-1, keepdims=True)
        e = jnp.exp(s)
        denom = jnp.sum(e, axis=-1, keepdims=True)
        attn = e / denom                                   # exact divide: weights sum to 1
        ctx = jnp.dot(attn.astype(jnp.bfloat16), v, preferred_element_type=jnp.float32)
        a_ref[h, :, :] = attn.astype(a_ref.dtype)
        # Direct per-head store (no H-way lane concatenation / extra slab copy).
        o_ref[:, h * dv:(h + 1) * dv] = ctx.astype(o_ref.dtype)


def fused_attention(q_slab, kv_slab, mask, heads, dk, dv, scale):
    """q_slab: (B, Sq, H*dk) bf16; kv_slab: (B, Sk, H*dk+H*dv) bf16; mask: (B,1,Sq,Sk) i8|None."""
    B, Sq, Hdk = q_slab.shape
    Sk = kv_slab.shape[1]
    Hdv = heads * dv
    masked = mask is not None
    tq = Sq if Sq <= 256 else 256                     # q-block tiling bounds VMEM at O(tq*Sk)
    n_q = pl.cdiv(Sq, tq)
    kernel = functools.partial(_mha_attention_kernel, heads=heads, dk=dk, dv=dv,
                               scale=scale, masked=masked)

    in_specs = [
        pl.BlockSpec((None, tq, Hdk), lambda b, qi: (b, qi, 0)),
        pl.BlockSpec((None, Sk, Hdk + Hdv), lambda b, qi: (b, 0, 0)),
    ]
    args = [q_slab, kv_slab]
    if masked:
        in_specs.append(pl.BlockSpec((None, None, tq, Sk), lambda b, qi: (b, 0, qi, 0)))
        args.append(mask)

    ctx, attn = pl.pallas_call(
        kernel,
        grid=(B, n_q),
        out_shape=(
            jax.ShapeDtypeStruct((B, Sq, Hdv), jnp.bfloat16),
            jax.ShapeDtypeStruct((B, heads, Sq, Sk), jnp.float32),
        ),
        in_specs=in_specs,
        out_specs=(
            pl.BlockSpec((None, tq, Hdv), lambda b, qi: (b, qi, 0)),
            pl.BlockSpec((None, heads, tq, Sk), lambda b, qi: (b, 0, qi, 0)),
        ),
        compiler_params=_cparams("parallel", "parallel"),
    )(*args)
    return ctx, attn


def _proj_add_ln_kernel(x_ref, w_ref, b_ref, r_ref, g_ref, bb_ref, o_ref, *, eps):
    # y = LayerNorm(x @ Wo + bo + residual)
    x = x_ref[...].astype(jnp.bfloat16)
    y = (jnp.dot(x, w_ref[...], preferred_element_type=jnp.float32)
         + b_ref[...] + r_ref[...].astype(jnp.float32))
    mu = jnp.mean(y, axis=-1, keepdims=True)
    var = jnp.mean(jnp.square(y - mu), axis=-1, keepdims=True)
    norm = (y - mu) * jax.lax.rsqrt(var + eps)
    o_ref[...] = (norm * g_ref[...] + bb_ref[...]).astype(o_ref.dtype)


def proj_add_layernorm(x, w, b, residual, gamma, beta):
    M, K = x.shape
    D = w.shape[1]
    tm = _row_tile(M)
    kernel = functools.partial(_proj_add_ln_kernel, eps=LN_EPS)
    return pl.pallas_call(
        kernel,
        grid=(pl.cdiv(M, tm),),
        out_shape=jax.ShapeDtypeStruct((M, D), residual.dtype),
        in_specs=[
            pl.BlockSpec((tm, K), lambda i: (i, 0)),
            pl.BlockSpec((K, D), lambda i: (0, 0)),
            pl.BlockSpec((1, D), lambda i: (0, 0)),
            pl.BlockSpec((tm, D), lambda i: (i, 0)),
            pl.BlockSpec((1, D), lambda i: (0, 0)),
            pl.BlockSpec((1, D), lambda i: (0, 0)),
        ],
        out_specs=pl.BlockSpec((tm, D), lambda i: (i, 0)),
        compiler_params=_cparams("parallel"),
    )(x, w, b, residual, gamma, beta)


def _ffn_ln_kernel(x_ref, w1_ref, b1_ref, w2_ref, b2_ref, g_ref, bb_ref, o_ref, *, eps):
    # y = LayerNorm(relu(x @ W1 + b1) @ W2 + b2 + x)
    x32 = x_ref[...].astype(jnp.float32)
    h = (jnp.dot(x32.astype(jnp.bfloat16), w1_ref[...],
                 preferred_element_type=jnp.float32) + b1_ref[...])
    h = jnp.maximum(h, 0.0)
    y = (jnp.dot(h.astype(jnp.bfloat16), w2_ref[...],
                 preferred_element_type=jnp.float32) + b2_ref[...] + x32)
    mu = jnp.mean(y, axis=-1, keepdims=True)
    var = jnp.mean(jnp.square(y - mu), axis=-1, keepdims=True)
    norm = (y - mu) * jax.lax.rsqrt(var + eps)
    o_ref[...] = (norm * g_ref[...] + bb_ref[...]).astype(o_ref.dtype)


def ffn_add_layernorm(x, w1, b1, w2, b2, gamma, beta):
    M, D = x.shape
    Dh = w1.shape[1]
    tm = _row_tile(M)
    kernel = functools.partial(_ffn_ln_kernel, eps=LN_EPS)
    return pl.pallas_call(
        kernel,
        grid=(pl.cdiv(M, tm),),
        out_shape=jax.ShapeDtypeStruct((M, D), x.dtype),
        in_specs=[
            pl.BlockSpec((tm, D), lambda i: (i, 0)),
            pl.BlockSpec((D, Dh), lambda i: (0, 0)),
            pl.BlockSpec((1, Dh), lambda i: (0, 0)),
            pl.BlockSpec((Dh, D), lambda i: (0, 0)),
            pl.BlockSpec((1, D), lambda i: (0, 0)),
            pl.BlockSpec((1, D), lambda i: (0, 0)),
            pl.BlockSpec((1, D), lambda i: (0, 0)),
        ],
        out_specs=pl.BlockSpec((tm, D), lambda i: (i, 0)),
        compiler_params=_cparams("parallel"),
    )(x, w1, b1, w2, b2, gamma, beta)


# --------------------------- Module-level wrappers -------------------------- #

def multi_head_attention(p, q_in, kv_in, mask, *, heads, dk, dv, self_attn):
    """q_in: (B, Sq, D); kv_in: (B, Sk, D); mask: (B,1,Sq,Sk) or None."""
    B, Sq, D = q_in.shape
    Sk = kv_in.shape[1]
    Hdk, Hdv = heads * dk, heads * dv
    residual = q_in.reshape(B * Sq, D)

    if self_attn:
        # One fused dual-output QKV projection: x read from HBM once, one launch.
        q2d, kv2d = qkv_project(residual, p["wq"], p["bq"], p["wkv"], p["bkv"])
    else:
        # Cross-attention: Q from decoder stream, fused K|V from encoder output.
        # Weights are stored pre-split (no in-jit slicing / weight copies).
        q2d = linear(residual, p["wq"], p["bq"], out_dtype=jnp.bfloat16)
        kv2d = linear(kv_in.reshape(B * Sk, D), p["wkv"], p["bkv"], out_dtype=jnp.bfloat16)

    q_slab = q2d.reshape(B, Sq, Hdk)
    kv_slab = kv2d.reshape(B, Sk, Hdk + Hdv)
    mask_i8 = None if mask is None else (mask != 0).astype(jnp.int8)

    scale = 1.0 / float(dk) ** 0.5
    ctx, attn = fused_attention(q_slab, kv_slab, mask_i8, heads, dk, dv, scale)

    # Fused output projection + residual add + LayerNorm.
    out = proj_add_layernorm(ctx.reshape(B * Sq, Hdv), p["wo"], p["bo"],
                             residual, p["ln_g"], p["ln_b"])
    return out.reshape(B, Sq, D), attn


def position_wise_feed_forward(p, x):
    B, S, D = x.shape
    out = ffn_add_layernorm(x.reshape(B * S, D), p["w1"], p["b1"],
                            p["w2"], p["b2"], p["ln_g"], p["ln_b"])
    return out.reshape(B, S, D)


@functools.partial(jax.jit, static_argnames=("heads", "dim_key", "dim_value"))
def decoder_layer(params, decoder_input, encoder_output,
                  self_attention_mask=None, decoder_encoder_attention_mask=None,
                  *, heads, dim_key, dim_value):
    x, dec_self_attn = multi_head_attention(
        params["self_attn"], decoder_input, decoder_input, self_attention_mask,
        heads=heads, dk=dim_key, dv=dim_value, self_attn=True)
    x, dec_enc_attn = multi_head_attention(
        params["enc_attn"], x, encoder_output, decoder_encoder_attention_mask,
        heads=heads, dk=dim_key, dv=dim_value, self_attn=False)
    x = position_wise_feed_forward(params["pos_ff"], x)
    return x, dec_self_attn, dec_enc_attn


# ------------------------------ Parameter init ------------------------------ #
# Weight matrices are pre-cast to bf16 ONCE here (halved HBM->VMEM DMA, no per-step
# in-kernel casts of grid-invariant blocks); biases / LayerNorm params stay f32.

def _init_mha(key, dim_model, heads, dim_key, dim_value):
    ks = jax.random.split(key, 4)
    s = 0.02
    wq = (jax.random.normal(ks[0], (dim_model, heads * dim_key), jnp.float32) * s)
    wk = (jax.random.normal(ks[1], (dim_model, heads * dim_key), jnp.float32) * s)
    wv = (jax.random.normal(ks[2], (dim_model, heads * dim_value), jnp.float32) * s)
    wo = (jax.random.normal(ks[3], (heads * dim_value, dim_model), jnp.float32) * s)
    return {
        "wq": wq.astype(jnp.bfloat16),                                   # (D, H*dk)
        "bq": jnp.zeros((1, heads * dim_key), jnp.float32),
        "wkv": jnp.concatenate([wk, wv], axis=1).astype(jnp.bfloat16),   # (D, H*(dk+dv))
        "bkv": jnp.zeros((1, heads * (dim_key + dim_value)), jnp.float32),
        "wo": wo.astype(jnp.bfloat16),                                   # (H*dv, D)
        "bo": jnp.zeros((1, dim_model), jnp.float32),
        "ln_g": jnp.ones((1, dim_model), jnp.float32),
        "ln_b": jnp.zeros((1, dim_model), jnp.float32),
    }


def _init_ffn(key, dim_model, dim_inner):
    k1, k2 = jax.random.split(key, 2)
    s = 0.02
    return {
        "w1": (jax.random.normal(k1, (dim_model, dim_inner), jnp.float32) * s).astype(jnp.bfloat16),
        "b1": jnp.zeros((1, dim_inner), jnp.float32),
        "w2": (jax.random.normal(k2, (dim_inner, dim_model), jnp.float32) * s).astype(jnp.bfloat16),
        "b2": jnp.zeros((1, dim_model), jnp.float32),
        "ln_g": jnp.ones((1, dim_model), jnp.float32),
        "ln_b": jnp.zeros((1, dim_model), jnp.float32),
    }


def init_decoder_layer(key, dim_model, dim_inner, heads, dim_key, dim_value):
    k1, k2, k3 = jax.random.split(key, 3)
    return {
        "self_attn": _init_mha(k1, dim_model, heads, dim_key, dim_value),
        "enc_attn": _init_mha(k2, dim_model, heads, dim_key, dim_value),
        "pos_ff": _init_ffn(k3, dim_model, dim_inner),
    }


# ----------------------------------- Main ----------------------------------- #

if __name__ == "__main__":
    B, S_DEC, S_ENC = 2, 8, 8
    DIM_MODEL, DIM_INNER, HEADS, DIM_KEY, DIM_VALUE = 32, 64, 4, 8, 8

    root = jax.random.PRNGKey(0)
    k_params, k_dec, k_enc = jax.random.split(root, 3)

    params = init_decoder_layer(k_params, DIM_MODEL, DIM_INNER, HEADS, DIM_KEY, DIM_VALUE)
    decoder_input = jax.random.normal(k_dec, (B, S_DEC, DIM_MODEL), jnp.float32)
    encoder_output = jax.random.normal(k_enc, (B, S_ENC, DIM_MODEL), jnp.float32)

    # Causal (subsequent) mask for decoder self-attention; no mask for cross-attention.
    causal = jnp.tril(jnp.ones((S_DEC, S_DEC), jnp.float32))[None, None]
    self_attention_mask = jnp.broadcast_to(causal, (B, 1, S_DEC, S_DEC))

    out, self_attn, enc_attn = decoder_layer(
        params, decoder_input, encoder_output,
        self_attention_mask=self_attention_mask,
        decoder_encoder_attention_mask=None,
        heads=HEADS, dim_key=DIM_KEY, dim_value=DIM_VALUE)

    jax.block_until_ready((out, self_attn, enc_attn))
    assert out.shape == (B, S_DEC, DIM_MODEL)
    assert self_attn.shape == (B, HEADS, S_DEC, S_DEC)
    assert enc_attn.shape == (B, HEADS, S_DEC, S_ENC)
    print("KERNEL_OK")
</pallas_src>

<mosaic_0001>
module attributes {stable_mosaic.version = 11 : i64} {
  func.func @_proj_add_ln_kernel(%arg0: i32, %arg1: memref<16x32xbf16, #tpu.memory_space<vmem>>, %arg2: memref<32x32xbf16, #tpu.memory_space<vmem>>, %arg3: memref<1x32xf32, #tpu.memory_space<vmem>>, %arg4: memref<16x32xf32, #tpu.memory_space<vmem>>, %arg5: memref<1x32xf32, #tpu.memory_space<vmem>>, %arg6: memref<1x32xf32, #tpu.memory_space<vmem>>, %arg7: memref<16x32xf32, #tpu.memory_space<vmem>>) attributes {dimension_semantics = [#tpu.dimension_semantics<parallel>], iteration_bounds = array<i64: 1>, scalar_prefetch = 0 : i64, scratch_operands = 0 : i64, tpu.core_type = #tpu.core_type<tc>, window_params = [{transform_indices = @transform_0, window_bounds = array<i64: 16, 32>}, {pipeline_mode = #tpu.pipeline_mode<synchronous>, transform_indices = @transform_1, window_bounds = array<i64: 32, 32>}, {pipeline_mode = #tpu.pipeline_mode<synchronous>, transform_indices = @transform_2, window_bounds = array<i64: 1, 32>}, {transform_indices = @transform_3, window_bounds = array<i64: 16, 32>}, {pipeline_mode = #tpu.pipeline_mode<synchronous>, transform_indices = @transform_4, window_bounds = array<i64: 1, 32>}, {pipeline_mode = #tpu.pipeline_mode<synchronous>, transform_indices = @transform_5, window_bounds = array<i64: 1, 32>}, {transform_indices = @transform_6, window_bounds = array<i64: 16, 32>}]} {
    %c0 = arith.constant 0 : index
    %c0_0 = arith.constant 0 : index
    %0 = vector.load %arg1[%c0, %c0_0] : memref<16x32xbf16, #tpu.memory_space<vmem>>, vector<16x32xbf16>
    %c0_1 = arith.constant 0 : index
    %c0_2 = arith.constant 0 : index
    %1 = vector.load %arg2[%c0_1, %c0_2] : memref<32x32xbf16, #tpu.memory_space<vmem>>, vector<32x32xbf16>
    %cst = arith.constant dense<0.000000e+00> : vector<16x32xf32>
    %2 = tpu.matmul %0, %1, %cst {dimension_numbers = #tpu.dot_dimension_numbers<[1], [0], [0], [1], [0, 0, 1, 1], [], []>} : vector<16x32xbf16>, vector<32x32xbf16>, vector<16x32xf32> -> vector<16x32xf32>
    %c0_3 = arith.constant 0 : index
    %c0_4 = arith.constant 0 : index
    %3 = vector.load %arg3[%c0_3, %c0_4] : memref<1x32xf32, #tpu.memory_space<vmem>>, vector<1x32xf32>
    %4 = vector.broadcast %3 : vector<1x32xf32> to vector<16x32xf32>
    %5 = arith.addf %2, %4 : vector<16x32xf32>
    %c0_5 = arith.constant 0 : index
    %c0_6 = arith.constant 0 : index
    %6 = vector.load %arg4[%c0_5, %c0_6] : memref<16x32xf32, #tpu.memory_space<vmem>>, vector<16x32xf32>
    %7 = arith.addf %5, %6 : vector<16x32xf32>
    %cst_7 = arith.constant dense<0.000000e+00> : vector<16xf32>
    %8 = vector.multi_reduction <add>, %7, %cst_7 [1] : vector<16x32xf32> to vector<16xf32>
    %9 = vector.shape_cast %8 : vector<16xf32> to vector<16x1xf32>
    %cst_8 = arith.constant 3.200000e+01 : f32
    %10 = vector.broadcast %cst_8 : f32 to vector<16x1xf32>
    %11 = arith.divf %9, %10 : vector<16x1xf32>
    %12 = vector.broadcast %11 : vector<16x1xf32> to vector<16x32xf32>
    %13 = arith.subf %7, %12 : vector<16x32xf32>
    %14 = arith.mulf %13, %13 : vector<16x32xf32>
    %cst_9 = arith.constant dense<0.000000e+00> : vector<16xf32>
    %15 = vector.multi_reduction <add>, %14, %cst_9 [1] : vector<16x32xf32> to vector<16xf32>
    %16 = vector.shape_cast %15 : vector<16xf32> to vector<16x1xf32>
    %cst_10 = arith.constant 3.200000e+01 : f32
    %17 = vector.broadcast %cst_10 : f32 to vector<16x1xf32>
    %18 = arith.divf %16, %17 : vector<16x1xf32>
    %19 = vector.broadcast %11 : vector<16x1xf32> to vector<16x32xf32>
    %20 = arith.subf %7, %19 : vector<16x32xf32>
    %cst_11 = arith.constant 9.99999997E-7 : f32
    %21 = vector.broadcast %cst_11 : f32 to vector<16x1xf32>
    %22 = arith.addf %18, %21 : vector<16x1xf32>
    %23 = math.rsqrt %22 : vector<16x1xf32>
    %24 = vector.broadcast %23 : vector<16x1xf32> to vector<16x32xf32>
    %25 = arith.mulf %20, %24 : vector<16x32xf32>
    %c0_12 = arith.constant 0 : index
    %c0_13 = arith.constant 0 : index
    %26 = vector.load %arg5[%c0_12, %c0_13] : memref<1x32xf32, #tpu.memory_space<vmem>>, vector<1x32xf32>
    %27 = vector.broadcast %26 : vector<1x32xf32> to vector<16x32xf32>
    %28 = arith.mulf %25, %27 : vector<16x32xf32>
    %c0_14 = arith.constant 0 : index
    %c0_15 = arith.constant 0 : index
    %29 = vector.load %arg6[%c0_14, %c0_15] : memref<1x32xf32, #tpu.memory_space<vmem>>, vector<1x32xf32>
    %30 = vector.broadcast %29 : vector<1x32xf32> to vector<16x32xf32>
    %31 = arith.addf %28, %30 : vector<16x32xf32>
    %c0_16 = arith.constant 0 : index
    %c0_17 = arith.constant 0 : index
    %32 = vector.load %arg7[%c0_16, %c0_17] : memref<16x32xf32, #tpu.memory_space<vmem>>, vector<16x32xf32>
    tpu.vector_store %arg7[%c0_16, %c0_17], %31 {strides = array<i32>} : memref<16x32xf32, #tpu.memory_space<vmem>>, vector<16x32xf32>,
    return
  }
  func.func @transform_0(%arg0: i32) -> (i32, i32) {
    %c0_i32 = arith.constant 0 : i32
    %c0_i32_0 = arith.constant 0 : i32
    return %arg0, %c0_i32 : i32, i32
  }
  func.func @transform_1(%arg0: i32) -> (i32, i32) {
    %c0_i32 = arith.constant 0 : i32
    %c0_i32_0 = arith.constant 0 : i32
    %c0_i32_1 = arith.constant 0 : i32
    return %c0_i32, %c0_i32_0 : i32, i32
  }
  func.func @transform_2(%arg0: i32) -> (i32, i32) {
    %c0_i32 = arith.constant 0 : i32
    %c0_i32_0 = arith.constant 0 : i32
    %c0_i32_1 = arith.constant 0 : i32
    return %c0_i32, %c0_i32_0 : i32, i32
  }
  func.func @transform_3(%arg0: i32) -> (i32, i32) {
    %c0_i32 = arith.constant 0 : i32
    %c0_i32_0 = arith.constant 0 : i32
    return %arg0, %c0_i32 : i32, i32
  }
  func.func @transform_4(%arg0: i32) -> (i32, i32) {
    %c0_i32 = arith.constant 0 : i32
    %c0_i32_0 = arith.constant 0 : i32
    %c0_i32_1 = arith.constant 0 : i32
    return %c0_i32, %c0_i32_0 : i32, i32
  }
  func.func @transform_5(%arg0: i32) -> (i32, i32) {
    %c0_i32 = arith.constant 0 : i32
    %c0_i32_0 = arith.constant 0 : i32
    %c0_i32_1 = arith.constant 0 : i32
    return %c0_i32, %c0_i32_0 : i32, i32
  }
  func.func @transform_6(%arg0: i32) -> (i32, i32) {
    %c0_i32 = arith.constant 0 : i32
    %c0_i32_0 = arith.constant 0 : i32
    return %arg0, %c0_i32 : i32, i32
  }
}

module attributes {stable_mosaic.version = 11 : i64} {
  func.func @_qkv_kernel(%arg0: i32, %arg1: memref<16x32xf32, #tpu.memory_space<vmem>>, %arg2: memref<32x32xbf16, #tpu.memory_space<vmem>>, %arg3: memref<1x32xf32, #tpu.memory_space<vmem>>, %arg4: memref<32x64xbf16, #tpu.memory_space<vmem>>, %arg5: memref<1x64xf32, #tpu.memory_space<vmem>>, %arg6: memref<16x32xbf16, #tpu.memory_space<vmem>>, %arg7: memref<16x64xbf16, #tpu.memory_space<vmem>>) attributes {dimension_semantics = [#tpu.dimension_semantics<parallel>], iteration_bounds = array<i64: 1>, scalar_prefetch = 0 : i64, scratch_operands = 0 : i64, tpu.core_type = #tpu.core_type<tc>, window_params = [{transform_indices = @transform_0, window_bounds = array<i64: 16, 32>}, {pipeline_mode = #tpu.pipeline_mode<synchronous>, transform_indices = @transform_1, window_bounds = array<i64: 32, 32>}, {pipeline_mode = #tpu.pipeline_mode<synchronous>, transform_indices = @transform_2, window_bounds = array<i64: 1, 32>}, {pipeline_mode = #tpu.pipeline_mode<synchronous>, transform_indices = @transform_3, window_bounds = array<i64: 32, 64>}, {pipeline_mode = #tpu.pipeline_mode<synchronous>, transform_indices = @transform_4, window_bounds = array<i64: 1, 64>}, {transform_indices = @transform_5, window_bounds = array<i64: 16, 32>}, {transform_indices = @transform_6, window_bounds = array<i64: 16, 64>}]} {
    %c0 = arith.constant 0 : index
    %c0_0 = arith.constant 0 : index
    %0 = vector.load %arg1[%c0, %c0_0] : memref<16x32xf32, #tpu.memory_space<vmem>>, vector<16x32xf32>
    %1 = arith.truncf %0 : vector<16x32xf32> to vector<16x32xbf16>
    %c0_1 = arith.constant 0 : index
    %c0_2 = arith.constant 0 : index
    %2 = vector.load %arg2[%c0_1, %c0_2] : memref<32x32xbf16, #tpu.memory_space<vmem>>, vector<32x32xbf16>
    %cst = arith.constant dense<0.000000e+00> : vector<16x32xf32>
    %3 = tpu.matmul %1, %2, %cst {dimension_numbers = #tpu.dot_dimension_numbers<[1], [0], [0], [1], [0, 0, 1, 1], [], []>} : vector<16x32xbf16>, vector<32x32xbf16>, vector<16x32xf32> -> vector<16x32xf32>
    %c0_3 = arith.constant 0 : index
    %c0_4 = arith.constant 0 : index
    %4 = vector.load %arg3[%c0_3, %c0_4] : memref<1x32xf32, #tpu.memory_space<vmem>>, vector<1x32xf32>
    %5 = vector.broadcast %4 : vector<1x32xf32> to vector<16x32xf32>
    %6 = arith.addf %3, %5 : vector<16x32xf32>
    %c0_5 = arith.constant 0 : index
    %c0_6 = arith.constant 0 : index
    %7 = vector.load %arg4[%c0_5, %c0_6] : memref<32x64xbf16, #tpu.memory_space<vmem>>, vector<32x64xbf16>
    %cst_7 = arith.constant dense<0.000000e+00> : vector<16x64xf32>
    %8 = tpu.matmul %1, %7, %cst_7 {dimension_numbers = #tpu.dot_dimension_numbers<[1], [0], [0], [1], [0, 0, 1, 1], [], []>} : vector<16x32xbf16>, vector<32x64xbf16>, vector<16x64xf32> -> vector<16x64xf32>
    %c0_8 = arith.constant 0 : index
    %c0_9 = arith.constant 0 : index
    %9 = vector.load %arg5[%c0_8, %c0_9] : memref<1x64xf32, #tpu.memory_space<vmem>>, vector<1x64xf32>
    %10 = vector.broadcast %9 : vector<1x64xf32> to vector<16x64xf32>
    %11 = arith.addf %8, %10 : vector<16x64xf32>
    %12 = arith.truncf %6 : vector<16x32xf32> to vector<16x32xbf16>
    %c0_10 = arith.constant 0 : index
    %c0_11 = arith.constant 0 : index
    %13 = vector.load %arg6[%c0_10, %c0_11] : memref<16x32xbf16, #tpu.memory_space<vmem>>, vector<16x32xbf16>
    tpu.vector_store %arg6[%c0_10, %c0_11], %12 {strides = array<i32>} : memref<16x32xbf16, #tpu.memory_space<vmem>>, vector<16x32xbf16>,
    %14 = arith.truncf %11 : vector<16x64xf32> to vector<16x64xbf16>
    %c0_12 = arith.constant 0 : index
    %c0_13 = arith.constant 0 : index
    %15 = vector.load %arg7[%c0_12, %c0_13] : memref<16x64xbf16, #tpu.memory_space<vmem>>, vector<16x64xbf16>
    tpu.vector_store %arg7[%c0_12, %c0_13], %14 {strides = array<i32>} : memref<16x64xbf16, #tpu.memory_space<vmem>>, vector<16x64xbf16>,
    return
  }
  func.func @transform_0(%arg0: i32) -> (i32, i32) {
    %c0_i32 = arith.constant 0 : i32
    %c0_i32_0 = arith.constant 0 : i32
    return %arg0, %c0_i32 : i32, i32
  }
  func.func @transform_1(%arg0: i32) -> (i32, i32) {
    %c0_i32 = arith.constant 0 : i32
    %c0_i32_0 = arith.constant 0 : i32
    %c0_i32_1 = arith.constant 0 : i32
    return %c0_i32, %c0_i32_0 : i32, i32
  }
  func.func @transform_2(%arg0: i32) -> (i32, i32) {
    %c0_i32 = arith.constant 0 : i32
    %c0_i32_0 = arith.constant 0 : i32
    %c0_i32_1 = arith.constant 0 : i32
    return %c0_i32, %c0_i32_0 : i32, i32
  }
  func.func @transform_3(%arg0: i32) -> (i32, i32) {
    %c0_i32 = arith.constant 0 : i32
    %c0_i32_0 = arith.constant 0 : i32
    %c0_i32_1 = arith.constant 0 : i32
    return %c0_i32, %c0_i32_0 : i32, i32
  }
  func.func @transform_4(%arg0: i32) -> (i32, i32) {
    %c0_i32 = arith.constant 0 : i32
    %c0_i32_0 = arith.constant 0 : i32
    %c0_i32_1 = arith.constant 0 : i32
    return %c0_i32, %c0_i32_0 : i32, i32
  }
  func.func @transform_5(%arg0: i32) -> (i32, i32) {
    %c0_i32 = arith.constant 0 : i32
    %c0_i32_0 = arith.constant 0 : i32
    return %arg0, %c0_i32 : i32, i32
  }
  func.func @transform_6(%arg0: i32) -> (i32, i32) {
    %c0_i32 = arith.constant 0 : i32
    %c0_i32_0 = arith.constant 0 : i32
    return %arg0, %c0_i32 : i32, i32
  }
}

module attributes {stable_mosaic.version = 11 : i64} {
  func.func @_mha_attention_kernel(%arg0: i32, %arg1: i32, %arg2: memref<1x8x32xbf16, #tpu.memory_space<vmem>>, %arg3: memref<1x8x64xbf16, #tpu.memory_space<vmem>>, %arg4: memref<1x1x8x8xi8, #tpu.memory_space<vmem>>, %arg5: memref<1x8x32xbf16, #tpu.memory_space<vmem>>, %arg6: memref<1x4x8x8xf32, #tpu.memory_space<vmem>>) attributes {dimension_semantics = [#tpu.dimension_semantics<parallel>, #tpu.dimension_semantics<parallel>], iteration_bounds = array<i64: 2, 1>, scalar_prefetch = 0 : i64, scratch_operands = 0 : i64, tpu.core_type = #tpu.core_type<tc>, window_params = [{transform_indices = @transform_0, window_bounds = array<i64: 1, 8, 32>}, {transform_indices = @transform_1, window_bounds = array<i64: 1, 8, 64>}, {transform_indices = @transform_2, window_bounds = array<i64: 1, 1, 8, 8>}, {transform_indices = @transform_3, window_bounds = array<i64: 1, 8, 32>}, {transform_indices = @transform_4, window_bounds = array<i64: 1, 4, 8, 8>}]} {
    %c0 = arith.constant 0 : index
    %c0_0 = arith.constant 0 : index
    %c0_1 = arith.constant 0 : index
    %0 = vector.load %arg2[%c0, %c0_0, %c0_1] : memref<1x8x32xbf16, #tpu.memory_space<vmem>>, vector<1x8x32xbf16>
    %1 = vector.shape_cast %0 : vector<1x8x32xbf16> to vector<8x32xbf16>
    %c0_2 = arith.constant 0 : index
    %c0_3 = arith.constant 0 : index
    %c0_4 = arith.constant 0 : index
    %2 = vector.load %arg3[%c0_2, %c0_3, %c0_4] : memref<1x8x64xbf16, #tpu.memory_space<vmem>>, vector<1x8x64xbf16>
    %3 = vector.shape_cast %2 : vector<1x8x64xbf16> to vector<8x64xbf16>
    %c0_5 = arith.constant 0 : index
    %c0_6 = arith.constant 0 : index
    %c0_7 = arith.constant 0 : index
    %c0_8 = arith.constant 0 : index
    %4 = vector.load %arg4[%c0_5, %c0_6, %c0_7, %c0_8] : memref<1x1x8x8xi8, #tpu.memory_space<vmem>>, vector<1x1x8x8xi8>
    %5 = vector.shape_cast %4 : vector<1x1x8x8xi8> to vector<8x8xi8>
    %6 = arith.extsi %5 : vector<8x8xi8> to vector<8x8xi32>
    %c0_i32 = arith.constant 0 : i32
    %7 = vector.broadcast %c0_i32 : i32 to vector<8x8xi32>
    %8 = arith.cmpi ne, %6, %7 : vector<8x8xi32>
    %9 = vector.extract_strided_slice %1 {offsets = [0, 0], sizes = [8, 8], strides = [1, 1]} : vector<8x32xbf16> to vector<8x8xbf16>
    %10 = vector.extract_strided_slice %3 {offsets = [0, 0], sizes = [8, 8], strides = [1, 1]} : vector<8x64xbf16> to vector<8x8xbf16>
    %11 = vector.extract_strided_slice %3 {offsets = [0, 32], sizes = [8, 8], strides = [1, 1]} : vector<8x64xbf16> to vector<8x8xbf16>
    %cst = arith.constant dense<0.000000e+00> : vector<8x8xf32>
    %12 = tpu.matmul %9, %10, %cst {dimension_numbers = #tpu.dot_dimension_numbers<[1], [1], [0], [0], [0, 0, 1, 0], [], []>} : vector<8x8xbf16>, vector<8x8xbf16>, vector<8x8xf32> -> vector<8x8xf32>
    %cst_9 = arith.constant 0.353553385 : f32
    %13 = vector.broadcast %cst_9 : f32 to vector<8x8xf32>
    %14 = arith.mulf %12, %13 : vector<8x8xf32>
    %cst_10 = arith.constant -1.000000e+09 : f32
    %15 = vector.broadcast %cst_10 : f32 to vector<8x8xf32>
    %16 = arith.select %8, %14, %15 : vector<8x8xi1>, vector<8x8xf32>
    %cst_11 = arith.constant dense<0xFF800000> : vector<8xf32>
    %17 = vector.multi_reduction <maximumf>, %16, %cst_11 [1] : vector<8x8xf32> to vector<8xf32>
    %18 = vector.shape_cast %17 : vector<8xf32> to vector<8x1xf32>
    %19 = vector.broadcast %18 : vector<8x1xf32> to vector<8x8xf32>
    %20 = arith.subf %16, %19 : vector<8x8xf32>
    %21 = math.exp %20 : vector<8x8xf32>
    %cst_12 = arith.constant dense<0.000000e+00> : vector<8xf32>
    %22 = vector.multi_reduction <add>, %21, %cst_12 [1] : vector<8x8xf32> to vector<8xf32>
    %23 = vector.shape_cast %22 : vector<8xf32> to vector<8x1xf32>
    %24 = vector.broadcast %23 : vector<8x1xf32> to vector<8x8xf32>
    %25 = arith.divf %21, %24 : vector<8x8xf32>
    %26 = arith.truncf %25 : vector<8x8xf32> to vector<8x8xbf16>
    %cst_13 = arith.constant dense<0.000000e+00> : vector<8x8xf32>
    %27 = tpu.matmul %26, %11, %cst_13 {dimension_numbers = #tpu.dot_dimension_numbers<[1], [0], [0], [1], [0, 0, 1, 1], [], []>} : vector<8x8xbf16>, vector<8x8xbf16>, vector<8x8xf32> -> vector<8x8xf32>
    %c0_14 = arith.constant 0 : index
    %c0_15 = arith.constant 0 : index
    %c0_16 = arith.constant 0 : index
    %c0_17 = arith.constant 0 : index
    %28 = vector.load %arg6[%c0_14, %c0_15, %c0_16, %c0_17] : memref<1x4x8x8xf32, #tpu.memory_space<vmem>>, vector<1x1x8x8xf32>
    %29 = vector.shape_cast %28 : vector<1x1x8x8xf32> to vector<8x8xf32>
    %30 = vector.shape_cast %25 : vector<8x8xf32> to vector<1x1x8x8xf32>
    tpu.vector_store %arg6[%c0_14, %c0_15, %c0_16, %c0_17], %30 {strides = array<i32>} : memref<1x4x8x8xf32, #tpu.memory_space<vmem>>, vector<1x1x8x8xf32>,
    %31 = arith.truncf %27 : vector<8x8xf32> to vector<8x8xbf16>
    %c0_18 = arith.constant 0 : index
    %c0_19 = arith.constant 0 : index
    %c0_20 = arith.constant 0 : index
    %32 = vector.load %arg5[%c0_18, %c0_19, %c0_20] : memref<1x8x32xbf16, #tpu.memory_space<vmem>>, vector<1x8x8xbf16>
    %33 = vector.shape_cast %32 : vector<1x8x8xbf16> to vector<8x8xbf16>
    %34 = vector.shape_cast %31 : vector<8x8xbf16> to vector<1x8x8xbf16>
    tpu.vector_store %arg5[%c0_18, %c0_19, %c0_20], %34 {strides = array<i32>} : memref<1x8x32xbf16, #tpu.memory_space<vmem>>, vector<1x8x8xbf16>,
    %35 = vector.extract_strided_slice %1 {offsets = [0, 8], sizes = [8, 8], strides = [1, 1]} : vector<8x32xbf16> to vector<8x8xbf16>
    %36 = vector.extract_strided_slice %3 {offsets = [0, 8], sizes = [8, 8], strides = [1, 1]} : vector<8x64xbf16> to vector<8x8xbf16>
    %37 = vector.extract_strided_slice %3 {offsets = [0, 40], sizes = [8, 8], strides = [1, 1]} : vector<8x64xbf16> to vector<8x8xbf16>
    %cst_21 = arith.constant dense<0.000000e+00> : vector<8x8xf32>
    %38 = tpu.matmul %35, %36, %cst_21 {dimension_numbers = #tpu.dot_dimension_numbers<[1], [1], [0], [0], [0, 0, 1, 0], [], []>} : vector<8x8xbf16>, vector<8x8xbf16>, vector<8x8xf32> -> vector<8x8xf32>
    %cst_22 = arith.constant 0.353553385 : f32
    %39 = vector.broadcast %cst_22 : f32 to vector<8x8xf32>
    %40 = arith.mulf %38, %39 : vector<8x8xf32>
    %cst_23 = arith.constant -1.000000e+09 : f32
    %41 = vector.broadcast %cst_23 : f32 to vector<8x8xf32>
    %42 = arith.select %8, %40, %41 : vector<8x8xi1>, vector<8x8xf32>
    %cst_24 = arith.constant dense<0xFF800000> : vector<8xf32>
    %43 = vector.multi_reduction <maximumf>, %42, %cst_24 [1] : vector<8x8xf32> to vector<8xf32>
    %44 = vector.shape_cast %43 : vector<8xf32> to vector<8x1xf32>
    %45 = vector.broadcast %44 : vector<8x1xf32> to vector<8x8xf32>
    %46 = arith.subf %42, %45 : vector<8x8xf32>
    %47 = math.exp %46 : vector<8x8xf32>
    %cst_25 = arith.constant dense<0.000000e+00> : vector<8xf32>
    %48 = vector.multi_reduction <add>, %47, %cst_25 [1] : vector<8x8xf32> to vector<8xf32>
    %49 = vector.shape_cast %48 : vector<8xf32> to vector<8x1xf32>
    %50 = vector.broadcast %49 : vector<8x1xf32> to vector<8x8xf32>
    %51 = arith.divf %47, %50 : vector<8x8xf32>
    %52 = arith.truncf %51 : vector<8x8xf32> to vector<8x8xbf16>
    %cst_26 = arith.constant dense<0.000000e+00> : vector<8x8xf32>
    %53 = tpu.matmul %52, %37, %cst_26 {dimension_numbers = #tpu.dot_dimension_numbers<[1], [0], [0], [1], [0, 0, 1, 1], [], []>} : vector<8x8xbf16>, vector<8x8xbf16>, vector<8x8xf32> -> vector<8x8xf32>
    %c0_27 = arith.constant 0 : index
    %c1 = arith.constant 1 : index
    %c0_28 = arith.constant 0 : index
    %c0_29 = arith.constant 0 : index
    %54 = vector.load %arg6[%c0_27, %c1, %c0_28, %c0_29] : memref<1x4x8x8xf32, #tpu.memory_space<vmem>>, vector<1x1x8x8xf32>
    %55 = vector.shape_cast %54 : vector<1x1x8x8xf32> to vector<8x8xf32>
    %56 = vector.shape_cast %51 : vector<8x8xf32> to vector<1x1x8x8xf32>
    tpu.vector_store %arg6[%c0_27, %c1, %c0_28, %c0_29], %56 {strides = array<i32>} : memref<1x4x8x8xf32, #tpu.memory_space<vmem>>, vector<1x1x8x8xf32>,
    %57 = arith.truncf %53 : vector<8x8xf32> to vector<8x8xbf16>
    %c0_30 = arith.constant 0 : index
    %c0_31 = arith.constant 0 : index
    %c8 = arith.constant 8 : index
    %58 = vector.load %arg5[%c0_30, %c0_31, %c8] : memref<1x8x32xbf16, #tpu.memory_space<vmem>>, vector<1x8x8xbf16>
    %59 = vector.shape_cast %58 : vector<1x8x8xbf16> to vector<8x8xbf16>
    %60 = vector.shape_cast %57 : vector<8x8xbf16> to vector<1x8x8xbf16>
    tpu.vector_store %arg5[%c0_30, %c0_31, %c8], %60 {strides = array<i32>} : memref<1x8x32xbf16, #tpu.memory_space<vmem>>, vector<1x8x8xbf16>,
    %61 = vector.extract_strided_slice %1 {offsets = [0, 16], sizes = [8, 8], strides = [1, 1]} : vector<8x32xbf16> to vector<8x8xbf16>
    %62 = vector.extract_strided_slice %3 {offsets = [0, 16], sizes = [8, 8], strides = [1, 1]} : vector<8x64xbf16> to vector<8x8xbf16>
    %63 = vector.extract_strided_slice %3 {offsets = [0, 48], sizes = [8, 8], strides = [1, 1]} : vector<8x64xbf16> to vector<8x8xbf16>
    %cst_32 = arith.constant dense<0.000000e+00> : vector<8x8xf32>
    %64 = tpu.matmul %61, %62, %cst_32 {dimension_numbers = #tpu.dot_dimension_numbers<[1], [1], [0], [0], [0, 0, 1, 0], [], []>} : vector<8x8xbf16>, vector<8x8xbf16>, vector<8x8xf32> -> vector<8x8xf32>
    %cst_33 = arith.constant 0.353553385 : f32
    %65 = vector.broadcast %cst_33 : f32 to vector<8x8xf32>
    %66 = arith.mulf %64, %65 : vector<8x8xf32>
    %cst_34 = arith.constant -1.000000e+09 : f32
    %67 = vector.broadcast %cst_34 : f32 to vector<8x8xf32>
    %68 = arith.select %8, %66, %67 : vector<8x8xi1>, vector<8x8xf32>
    %cst_35 = arith.constant dense<0xFF800000> : vector<8xf32>
    %69 = vector.multi_reduction <maximumf>, %68, %cst_35 [1] : vector<8x8xf32> to vector<8xf32>
    %70 = vector.shape_cast %69 : vector<8xf32> to vector<8x1xf32>
    %71 = vector.broadcast %70 : vector<8x1xf32> to vector<8x8xf32>
    %72 = arith.subf %68, %71 : vector<8x8xf32>
    %73 = math.exp %72 : vector<8x8xf32>
    %cst_36 = arith.constant dense<0.000000e+00> : vector<8xf32>
    %74 = vector.multi_reduction <add>, %73, %cst_36 [1] : vector<8x8xf32> to vector<8xf32>
    %75 = vector.shape_cast %74 : vector<8xf32> to vector<8x1xf32>
    %76 = vector.broadcast %75 : vector<8x1xf32> to vector<8x8xf32>
    %77 = arith.divf %73, %76 : vector<8x8xf32>
    %78 = arith.truncf %77 : vector<8x8xf32> to vector<8x8xbf16>
    %cst_37 = arith.constant dense<0.000000e+00> : vector<8x8xf32>
    %79 = tpu.matmul %78, %63, %cst_37 {dimension_numbers = #tpu.dot_dimension_numbers<[1], [0], [0], [1], [0, 0, 1, 1], [], []>} : vector<8x8xbf16>, vector<8x8xbf16>, vector<8x8xf32> -> vector<8x8xf32>
    %c0_38 = arith.constant 0 : index
    %c2 = arith.constant 2 : index
    %c0_39 = arith.constant 0 : index
    %c0_40 = arith.constant 0 : index
    %80 = vector.load %arg6[%c0_38, %c2, %c0_39, %c0_40] : memref<1x4x8x8xf32, #tpu.memory_space<vmem>>, vector<1x1x8x8xf32>
    %81 = vector.shape_cast %80 : vector<1x1x8x8xf32> to vector<8x8xf32>
    %82 = vector.shape_cast %77 : vector<8x8xf32> to vector<1x1x8x8xf32>
    tpu.vector_store %arg6[%c0_38, %c2, %c0_39, %c0_40], %82 {strides = array<i32>} : memref<1x4x8x8xf32, #tpu.memory_space<vmem>>, vector<1x1x8x8xf32>,
    %83 = arith.truncf %79 : vector<8x8xf32> to vector<8x8xbf16>
    %c0_41 = arith.constant 0 : index
    %c0_42 = arith.constant 0 : index
    %c16 = arith.constant 16 : index
    %84 = vector.load %arg5[%c0_41, %c0_42, %c16] : memref<1x8x32xbf16, #tpu.memory_space<vmem>>, vector<1x8x8xbf16>
    %85 = vector.shape_cast %84 : vector<1x8x8xbf16> to vector<8x8xbf16>
    %86 = vector.shape_cast %83 : vector<8x8xbf16> to vector<1x8x8xbf16>
    tpu.vector_store %arg5[%c0_41, %c0_42, %c16], %86 {strides = array<i32>} : memref<1x8x32xbf16, #tpu.memory_space<vmem>>, vector<1x8x8xbf16>,
    %87 = vector.extract_strided_slice %1 {offsets = [0, 24], sizes = [8, 8], strides = [1, 1]} : vector<8x32xbf16> to vector<8x8xbf16>
    %88 = vector.extract_strided_slice %3 {offsets = [0, 24], sizes = [8, 8], strides = [1, 1]} : vector<8x64xbf16> to vector<8x8xbf16>
    %89 = vector.extract_strided_slice %3 {offsets = [0, 56], sizes = [8, 8], strides = [1, 1]} : vector<8x64xbf16> to vector<8x8xbf16>
    %cst_43 = arith.constant dense<0.000000e+00> : vector<8x8xf32>
    %90 = tpu.matmul %87, %88, %cst_43 {dimension_numbers = #tpu.dot_dimension_numbers<[1], [1], [0], [0], [0, 0, 1, 0], [], []>} : vector<8x8xbf16>, vector<8x8xbf16>, vector<8x8xf32> -> vector<8x8xf32>
    %cst_44 = arith.constant 0.353553385 : f32
    %91 = vector.broadcast %cst_44 : f32 to vector<8x8xf32>
    %92 = arith.mulf %90, %91 : vector<8x8xf32>
    %cst_45 = arith.constant -1.000000e+09 : f32
    %93 = vector.broadcast %cst_45 : f32 to vector<8x8xf32>
    %94 = arith.select %8, %92, %93 : vector<8x8xi1>, vector<8x8xf32>
    %cst_46 = arith.constant dense<0xFF800000> : vector<8xf32>
    %95 = vector.multi_reduction <maximumf>, %94, %cst_46 [1] : vector<8x8xf32> to vector<8xf32>
    %96 = vector.shape_cast %95 : vector<8xf32> to vector<8x1xf32>
    %97 = vector.broadcast %96 : vector<8x1xf32> to vector<8x8xf32>
    %98 = arith.subf %94, %97 : vector<8x8xf32>
    %99 = math.exp %98 : vector<8x8xf32>
    %cst_47 = arith.constant dense<0.000000e+00> : vector<8xf32>
    %100 = vector.multi_reduction <add>, %99, %cst_47 [1] : vector<8x8xf32> to vector<8xf32>
    %101 = vector.shape_cast %100 : vector<8xf32> to vector<8x1xf32>
    %102 = vector.broadcast %101 : vector<8x1xf32> to vector<8x8xf32>
    %103 = arith.divf %99, %102 : vector<8x8xf32>
    %104 = arith.truncf %103 : vector<8x8xf32> to vector<8x8xbf16>
    %cst_48 = arith.constant dense<0.000000e+00> : vector<8x8xf32>
    %105 = tpu.matmul %104, %89, %cst_48 {dimension_numbers = #tpu.dot_dimension_numbers<[1], [0], [0], [1], [0, 0, 1, 1], [], []>} : vector<8x8xbf16>, vector<8x8xbf16>, vector<8x8xf32> -> vector<8x8xf32>
    %c0_49 = arith.constant 0 : index
    %c3 = arith.constant 3 : index
    %c0_50 = arith.constant 0 : index
    %c0_51 = arith.constant 0 : index
    %106 = vector.load %arg6[%c0_49, %c3, %c0_50, %c0_51] : memref<1x4x8x8xf32, #tpu.memory_space<vmem>>, vector<1x1x8x8xf32>
    %107 = vector.shape_cast %106 : vector<1x1x8x8xf32> to vector<8x8xf32>
    %108 = vector.shape_cast %103 : vector<8x8xf32> to vector<1x1x8x8xf32>
    tpu.vector_store %arg6[%c0_49, %c3, %c0_50, %c0_51], %108 {strides = array<i32>} : memref<1x4x8x8xf32, #tpu.memory_space<vmem>>, vector<1x1x8x8xf32>,
    %109 = arith.truncf %105 : vector<8x8xf32> to vector<8x8xbf16>
    %c0_52 = arith.constant 0 : index
    %c0_53 = arith.constant 0 : index
    %c24 = arith.constant 24 : index
    %110 = vector.load %arg5[%c0_52, %c0_53, %c24] : memref<1x8x32xbf16, #tpu.memory_space<vmem>>, vector<1x8x8xbf16>
    %111 = vector.shape_cast %110 : vector<1x8x8xbf16> to vector<8x8xbf16>
    %112 = vector.shape_cast %109 : vector<8x8xbf16> to vector<1x8x8xbf16>
    tpu.vector_store %arg5[%c0_52, %c0_53, %c24], %112 {strides = array<i32>} : memref<1x8x32xbf16, #tpu.memory_space<vmem>>, vector<1x8x8xbf16>,
    return
  }
  func.func @transform_0(%arg0: i32, %arg1: i32) -> (i32, i32, i32) {
    %c0_i32 = arith.constant 0 : i32
    %c0_i32_0 = arith.constant 0 : i32
    return %arg0, %arg1, %c0_i32 : i32, i32, i32
  }
  func.func @transform_1(%arg0: i32, %arg1: i32) -> (i32, i32, i32) {
    %c0_i32 = arith.constant 0 : i32
    %c0_i32_0 = arith.constant 0 : i32
    %c0_i32_1 = arith.constant 0 : i32
    return %arg0, %c0_i32, %c0_i32_0 : i32, i32, i32
  }
  func.func @transform_2(%arg0: i32, %arg1: i32) -> (i32, i32, i32, i32) {
    %c0_i32 = arith.constant 0 : i32
    %c0_i32_0 = arith.constant 0 : i32
    %c0_i32_1 = arith.constant 0 : i32
    return %arg0, %c0_i32, %arg1, %c0_i32_0 : i32, i32, i32, i32
  }
  func.func @transform_3(%arg0: i32, %arg1: i32) -> (i32, i32, i32) {
    %c0_i32 = arith.constant 0 : i32
    %c0_i32_0 = arith.constant 0 : i32
    return %arg0, %arg1, %c0_i32 : i32, i32, i32
  }
  func.func @transform_4(%arg0: i32, %arg1: i32) -> (i32, i32, i32, i32) {
    %c0_i32 = arith.constant 0 : i32
    %c0_i32_0 = arith.constant 0 : i32
    %c0_i32_1 = arith.constant 0 : i32
    return %arg0, %c0_i32, %arg1, %c0_i32_0 : i32, i32, i32, i32
  }
}

module attributes {stable_mosaic.version = 11 : i64} {
  func.func @_linear_kernel(%arg0: i32, %arg1: memref<16x32xf32, #tpu.memory_space<vmem>>, %arg2: memref<32x32xbf16, #tpu.memory_space<vmem>>, %arg3: memref<1x32xf32, #tpu.memory_space<vmem>>, %arg4: memref<16x32xbf16, #tpu.memory_space<vmem>>) attributes {dimension_semantics = [#tpu.dimension_semantics<parallel>], iteration_bounds = array<i64: 1>, scalar_prefetch = 0 : i64, scratch_operands = 0 : i64, tpu.core_type = #tpu.core_type<tc>, window_params = [{transform_indices = @transform_0, window_bounds = array<i64: 16, 32>}, {pipeline_mode = #tpu.pipeline_mode<synchronous>, transform_indices = @transform_1, window_bounds = array<i64: 32, 32>}, {pipeline_mode = #tpu.pipeline_mode<synchronous>, transform_indices = @transform_2, window_bounds = array<i64: 1, 32>}, {transform_indices = @transform_3, window_bounds = array<i64: 16, 32>}]} {
    %c0 = arith.constant 0 : index
    %c0_0 = arith.constant 0 : index
    %0 = vector.load %arg1[%c0, %c0_0] : memref<16x32xf32, #tpu.memory_space<vmem>>, vector<16x32xf32>
    %1 = arith.truncf %0 : vector<16x32xf32> to vector<16x32xbf16>
    %c0_1 = arith.constant 0 : index
    %c0_2 = arith.constant 0 : index
    %2 = vector.load %arg2[%c0_1, %c0_2] : memref<32x32xbf16, #tpu.memory_space<vmem>>, vector<32x32xbf16>
    %cst = arith.constant dense<0.000000e+00> : vector<16x32xf32>
    %3 = tpu.matmul %1, %2, %cst {dimension_numbers = #tpu.dot_dimension_numbers<[1], [0], [0], [1], [0, 0, 1, 1], [], []>} : vector<16x32xbf16>, vector<32x32xbf16>, vector<16x32xf32> -> vector<16x32xf32>
    %c0_3 = arith.constant 0 : index
    %c0_4 = arith.constant 0 : index
    %4 = vector.load %arg3[%c0_3, %c0_4] : memref<1x32xf32, #tpu.memory_space<vmem>>, vector<1x32xf32>
    %5 = vector.broadcast %4 : vector<1x32xf32> to vector<16x32xf32>
    %6 = arith.addf %3, %5 : vector<16x32xf32>
    %7 = arith.truncf %6 : vector<16x32xf32> to vector<16x32xbf16>
    %c0_5 = arith.constant 0 : index
    %c0_6 = arith.constant 0 : index
    %8 = vector.load %arg4[%c0_5, %c0_6] : memref<16x32xbf16, #tpu.memory_space<vmem>>, vector<16x32xbf16>
    tpu.vector_store %arg4[%c0_5, %c0_6], %7 {strides = array<i32>} : memref<16x32xbf16, #tpu.memory_space<vmem>>, vector<16x32xbf16>,
    return
  }
  func.func @transform_0(%arg0: i32) -> (i32, i32) {
    %c0_i32 = arith.constant 0 : i32
    %c0_i32_0 = arith.constant 0 : i32
    return %arg0, %c0_i32 : i32, i32
  }
  func.func @transform_1(%arg0: i32) -> (i32, i32) {
    %c0_i32 = arith.constant 0 : i32
    %c0_i32_0 = arith.constant 0 : i32
    %c0_i32_1 = arith.constant 0 : i32
    return %c0_i32, %c0_i32_0 : i32, i32
  }
  func.func @transform_2(%arg0: i32) -> (i32, i32) {
    %c0_i32 = arith.constant 0 : i32
    %c0_i32_0 = arith.constant 0 : i32
    %c0_i32_1 = arith.constant 0 : i32
    return %c0_i32, %c0_i32_0 : i32, i32
  }
  func.func @transform_3(%arg0: i32) -> (i32, i32) {
    %c0_i32 = arith.constant 0 : i32
    %c0_i32_0 = arith.constant 0 : i32
    return %arg0, %c0_i32 : i32, i32
  }
}

module attributes {stable_mosaic.version = 11 : i64} {
  func.func @_mha_attention_kernel(%arg0: i32, %arg1: i32, %arg2: memref<1x8x32xbf16, #tpu.memory_space<vmem>>, %arg3: memref<1x8x64xbf16, #tpu.memory_space<vmem>>, %arg4: memref<1x8x32xbf16, #tpu.memory_space<vmem>>, %arg5: memref<1x4x8x8xf32, #tpu.memory_space<vmem>>) attributes {dimension_semantics = [#tpu.dimension_semantics<parallel>, #tpu.dimension_semantics<parallel>], iteration_bounds = array<i64: 2, 1>, scalar_prefetch = 0 : i64, scratch_operands = 0 : i64, tpu.core_type = #tpu.core_type<tc>, window_params = [{transform_indices = @transform_0, window_bounds = array<i64: 1, 8, 32>}, {transform_indices = @transform_1, window_bounds = array<i64: 1, 8, 64>}, {transform_indices = @transform_2, window_bounds = array<i64: 1, 8, 32>}, {transform_indices = @transform_3, window_bounds = array<i64: 1, 4, 8, 8>}]} {
    %c0 = arith.constant 0 : index
    %c0_0 = arith.constant 0 : index
    %c0_1 = arith.constant 0 : index
    %0 = vector.load %arg2[%c0, %c0_0, %c0_1] : memref<1x8x32xbf16, #tpu.memory_space<vmem>>, vector<1x8x32xbf16>
    %1 = vector.shape_cast %0 : vector<1x8x32xbf16> to vector<8x32xbf16>
    %c0_2 = arith.constant 0 : index
    %c0_3 = arith.constant 0 : index
    %c0_4 = arith.constant 0 : index
    %2 = vector.load %arg3[%c0_2, %c0_3, %c0_4] : memref<1x8x64xbf16, #tpu.memory_space<vmem>>, vector<1x8x64xbf16>
    %3 = vector.shape_cast %2 : vector<1x8x64xbf16> to vector<8x64xbf16>
    %4 = vector.extract_strided_slice %1 {offsets = [0, 0], sizes = [8, 8], strides = [1, 1]} : vector<8x32xbf16> to vector<8x8xbf16>
    %5 = vector.extract_strided_slice %3 {offsets = [0, 0], sizes = [8, 8], strides = [1, 1]} : vector<8x64xbf16> to vector<8x8xbf16>
    %6 = vector.extract_strided_slice %3 {offsets = [0, 32], sizes = [8, 8], strides = [1, 1]} : vector<8x64xbf16> to vector<8x8xbf16>
    %cst = arith.constant dense<0.000000e+00> : vector<8x8xf32>
    %7 = tpu.matmul %4, %5, %cst {dimension_numbers = #tpu.dot_dimension_numbers<[1], [1], [0], [0], [0, 0, 1, 0], [], []>} : vector<8x8xbf16>, vector<8x8xbf16>, vector<8x8xf32> -> vector<8x8xf32>
    %cst_5 = arith.constant 0.353553385 : f32
    %8 = vector.broadcast %cst_5 : f32 to vector<8x8xf32>
    %9 = arith.mulf %7, %8 : vector<8x8xf32>
    %cst_6 = arith.constant dense<0xFF800000> : vector<8xf32>
    %10 = vector.multi_reduction <maximumf>, %9, %cst_6 [1] : vector<8x8xf32> to vector<8xf32>
    %11 = vector.shape_cast %10 : vector<8xf32> to vector<8x1xf32>
    %12 = vector.broadcast %11 : vector<8x1xf32> to vector<8x8xf32>
    %13 = arith.subf %9, %12 : vector<8x8xf32>
    %14 = math.exp %13 : vector<8x8xf32>
    %cst_7 = arith.constant dense<0.000000e+00> : vector<8xf32>
    %15 = vector.multi_reduction <add>, %14, %cst_7 [1] : vector<8x8xf32> to vector<8xf32>
    %16 = vector.shape_cast %15 : vector<8xf32> to vector<8x1xf32>
    %17 = vector.broadcast %16 : vector<8x1xf32> to vector<8x8xf32>
    %18 = arith.divf %14, %17 : vector<8x8xf32>
    %19 = arith.truncf %18 : vector<8x8xf32> to vector<8x8xbf16>
    %cst_8 = arith.constant dense<0.000000e+00> : vector<8x8xf32>
    %20 = tpu.matmul %19, %6, %cst_8 {dimension_numbers = #tpu.dot_dimension_numbers<[1], [0], [0], [1], [0, 0, 1, 1], [], []>} : vector<8x8xbf16>, vector<8x8xbf16>, vector<8x8xf32> -> vector<8x8xf32>
    %c0_9 = arith.constant 0 : index
    %c0_10 = arith.constant 0 : index
    %c0_11 = arith.constant 0 : index
    %c0_12 = arith.constant 0 : index
    %21 = vector.load %arg5[%c0_9, %c0_10, %c0_11, %c0_12] : memref<1x4x8x8xf32, #tpu.memory_space<vmem>>, vector<1x1x8x8xf32>
    %22 = vector.shape_cast %21 : vector<1x1x8x8xf32> to vector<8x8xf32>
    %23 = vector.shape_cast %18 : vector<8x8xf32> to vector<1x1x8x8xf32>
    tpu.vector_store %arg5[%c0_9, %c0_10, %c0_11, %c0_12], %23 {strides = array<i32>} : memref<1x4x8x8xf32, #tpu.memory_space<vmem>>, vector<1x1x8x8xf32>,
    %24 = arith.truncf %20 : vector<8x8xf32> to vector<8x8xbf16>
    %c0_13 = arith.constant 0 : index
    %c0_14 = arith.constant 0 : index
    %c0_15 = arith.constant 0 : index
    %25 = vector.load %arg4[%c0_13, %c0_14, %c0_15] : memref<1x8x32xbf16, #tpu.memory_space<vmem>>, vector<1x8x8xbf16>
    %26 = vector.shape_cast %25 : vector<1x8x8xbf16> to vector<8x8xbf16>
    %27 = vector.shape_cast %24 : vector<8x8xbf16> to vector<1x8x8xbf16>
    tpu.vector_store %arg4[%c0_13, %c0_14, %c0_15], %27 {strides = array<i32>} : memref<1x8x32xbf16, #tpu.memory_space<vmem>>, vector<1x8x8xbf16>,
    %28 = vector.extract_strided_slice %1 {offsets = [0, 8], sizes = [8, 8], strides = [1, 1]} : vector<8x32xbf16> to vector<8x8xbf16>
    %29 = vector.extract_strided_slice %3 {offsets = [0, 8], sizes = [8, 8], strides = [1, 1]} : vector<8x64xbf16> to vector<8x8xbf16>
    %30 = vector.extract_strided_slice %3 {offsets = [0, 40], sizes = [8, 8], strides = [1, 1]} : vector<8x64xbf16> to vector<8x8xbf16>
    %cst_16 = arith.constant dense<0.000000e+00> : vector<8x8xf32>
    %31 = tpu.matmul %28, %29, %cst_16 {dimension_numbers = #tpu.dot_dimension_numbers<[1], [1], [0], [0], [0, 0, 1, 0], [], []>} : vector<8x8xbf16>, vector<8x8xbf16>, vector<8x8xf32> -> vector<8x8xf32>
    %cst_17 = arith.constant 0.353553385 : f32
    %32 = vector.broadcast %cst_17 : f32 to vector<8x8xf32>
    %33 = arith.mulf %31, %32 : vector<8x8xf32>
    %cst_18 = arith.constant dense<0xFF800000> : vector<8xf32>
    %34 = vector.multi_reduction <maximumf>, %33, %cst_18 [1] : vector<8x8xf32> to vector<8xf32>
    %35 = vector.shape_cast %34 : vector<8xf32> to vector<8x1xf32>
    %36 = vector.broadcast %35 : vector<8x1xf32> to vector<8x8xf32>
    %37 = arith.subf %33, %36 : vector<8x8xf32>
    %38 = math.exp %37 : vector<8x8xf32>
    %cst_19 = arith.constant dense<0.000000e+00> : vector<8xf32>
    %39 = vector.multi_reduction <add>, %38, %cst_19 [1] : vector<8x8xf32> to vector<8xf32>
    %40 = vector.shape_cast %39 : vector<8xf32> to vector<8x1xf32>
    %41 = vector.broadcast %40 : vector<8x1xf32> to vector<8x8xf32>
    %42 = arith.divf %38, %41 : vector<8x8xf32>
    %43 = arith.truncf %42 : vector<8x8xf32> to vector<8x8xbf16>
    %cst_20 = arith.constant dense<0.000000e+00> : vector<8x8xf32>
    %44 = tpu.matmul %43, %30, %cst_20 {dimension_numbers = #tpu.dot_dimension_numbers<[1], [0], [0], [1], [0, 0, 1, 1], [], []>} : vector<8x8xbf16>, vector<8x8xbf16>, vector<8x8xf32> -> vector<8x8xf32>
    %c0_21 = arith.constant 0 : index
    %c1 = arith.constant 1 : index
    %c0_22 = arith.constant 0 : index
    %c0_23 = arith.constant 0 : index
    %45 = vector.load %arg5[%c0_21, %c1, %c0_22, %c0_23] : memref<1x4x8x8xf32, #tpu.memory_space<vmem>>, vector<1x1x8x8xf32>
    %46 = vector.shape_cast %45 : vector<1x1x8x8xf32> to vector<8x8xf32>
    %47 = vector.shape_cast %42 : vector<8x8xf32> to vector<1x1x8x8xf32>
    tpu.vector_store %arg5[%c0_21, %c1, %c0_22, %c0_23], %47 {strides = array<i32>} : memref<1x4x8x8xf32, #tpu.memory_space<vmem>>, vector<1x1x8x8xf32>,
    %48 = arith.truncf %44 : vector<8x8xf32> to vector<8x8xbf16>
    %c0_24 = arith.constant 0 : index
    %c0_25 = arith.constant 0 : index
    %c8 = arith.constant 8 : index
    %49 = vector.load %arg4[%c0_24, %c0_25, %c8] : memref<1x8x32xbf16, #tpu.memory_space<vmem>>, vector<1x8x8xbf16>
    %50 = vector.shape_cast %49 : vector<1x8x8xbf16> to vector<8x8xbf16>
    %51 = vector.shape_cast %48 : vector<8x8xbf16> to vector<1x8x8xbf16>
    tpu.vector_store %arg4[%c0_24, %c0_25, %c8], %51 {strides = array<i32>} : memref<1x8x32xbf16, #tpu.memory_space<vmem>>, vector<1x8x8xbf16>,
    %52 = vector.extract_strided_slice %1 {offsets = [0, 16], sizes = [8, 8], strides = [1, 1]} : vector<8x32xbf16> to vector<8x8xbf16>
    %53 = vector.extract_strided_slice %3 {offsets = [0, 16], sizes = [8, 8], strides = [1, 1]} : vector<8x64xbf16> to vector<8x8xbf16>
    %54 = vector.extract_strided_slice %3 {offsets = [0, 48], sizes = [8, 8], strides = [1, 1]} : vector<8x64xbf16> to vector<8x8xbf16>
    %cst_26 = arith.constant dense<0.000000e+00> : vector<8x8xf32>
    %55 = tpu.matmul %52, %53, %cst_26 {dimension_numbers = #tpu.dot_dimension_numbers<[1], [1], [0], [0], [0, 0, 1, 0], [], []>} : vector<8x8xbf16>, vector<8x8xbf16>, vector<8x8xf32> -> vector<8x8xf32>
    %cst_27 = arith.constant 0.353553385 : f32
    %56 = vector.broadcast %cst_27 : f32 to vector<8x8xf32>
    %57 = arith.mulf %55, %56 : vector<8x8xf32>
    %cst_28 = arith.constant dense<0xFF800000> : vector<8xf32>
    %58 = vector.multi_reduction <maximumf>, %57, %cst_28 [1] : vector<8x8xf32> to vector<8xf32>
    %59 = vector.shape_cast %58 : vector<8xf32> to vector<8x1xf32>
    %60 = vector.broadcast %59 : vector<8x1xf32> to vector<8x8xf32>
    %61 = arith.subf %57, %60 : vector<8x8xf32>
    %62 = math.exp %61 : vector<8x8xf32>
    %cst_29 = arith.constant dense<0.000000e+00> : vector<8xf32>
    %63 = vector.multi_reduction <add>, %62, %cst_29 [1] : vector<8x8xf32> to vector<8xf32>
    %64 = vector.shape_cast %63 : vector<8xf32> to vector<8x1xf32>
    %65 = vector.broadcast %64 : vector<8x1xf32> to vector<8x8xf32>
    %66 = arith.divf %62, %65 : vector<8x8xf32>
    %67 = arith.truncf %66 : vector<8x8xf32> to vector<8x8xbf16>
    %cst_30 = arith.constant dense<0.000000e+00> : vector<8x8xf32>
    %68 = tpu.matmul %67, %54, %cst_30 {dimension_numbers = #tpu.dot_dimension_numbers<[1], [0], [0], [1], [0, 0, 1, 1], [], []>} : vector<8x8xbf16>, vector<8x8xbf16>, vector<8x8xf32> -> vector<8x8xf32>
    %c0_31 = arith.constant 0 : index
    %c2 = arith.constant 2 : index
    %c0_32 = arith.constant 0 : index
    %c0_33 = arith.constant 0 : index
    %69 = vector.load %arg5[%c0_31, %c2, %c0_32, %c0_33] : memref<1x4x8x8xf32, #tpu.memory_space<vmem>>, vector<1x1x8x8xf32>
    %70 = vector.shape_cast %69 : vector<1x1x8x8xf32> to vector<8x8xf32>
    %71 = vector.shape_cast %66 : vector<8x8xf32> to vector<1x1x8x8xf32>
    tpu.vector_store %arg5[%c0_31, %c2, %c0_32, %c0_33], %71 {strides = array<i32>} : memref<1x4x8x8xf32, #tpu.memory_space<vmem>>, vector<1x1x8x8xf32>,
    %72 = arith.truncf %68 : vector<8x8xf32> to vector<8x8xbf16>
    %c0_34 = arith.constant 0 : index
    %c0_35 = arith.constant 0 : index
    %c16 = arith.constant 16 : index
    %73 = vector.load %arg4[%c0_34, %c0_35, %c16] : memref<1x8x32xbf16, #tpu.memory_space<vmem>>, vector<1x8x8xbf16>
    %74 = vector.shape_cast %73 : vector<1x8x8xbf16> to vector<8x8xbf16>
    %75 = vector.shape_cast %72 : vector<8x8xbf16> to vector<1x8x8xbf16>
    tpu.vector_store %arg4[%c0_34, %c0_35, %c16], %75 {strides = array<i32>} : memref<1x8x32xbf16, #tpu.memory_space<vmem>>, vector<1x8x8xbf16>,
    %76 = vector.extract_strided_slice %1 {offsets = [0, 24], sizes = [8, 8], strides = [1, 1]} : vector<8x32xbf16> to vector<8x8xbf16>
    %77 = vector.extract_strided_slice %3 {offsets = [0, 24], sizes = [8, 8], strides = [1, 1]} : vector<8x64xbf16> to vector<8x8xbf16>
    %78 = vector.extract_strided_slice %3 {offsets = [0, 56], sizes = [8, 8], strides = [1, 1]} : vector<8x64xbf16> to vector<8x8xbf16>
    %cst_36 = arith.constant dense<0.000000e+00> : vector<8x8xf32>
    %79 = tpu.matmul %76, %77, %cst_36 {dimension_numbers = #tpu.dot_dimension_numbers<[1], [1], [0], [0], [0, 0, 1, 0], [], []>} : vector<8x8xbf16>, vector<8x8xbf16>, vector<8x8xf32> -> vector<8x8xf32>
    %cst_37 = arith.constant 0.353553385 : f32
    %80 = vector.broadcast %cst_37 : f32 to vector<8x8xf32>
    %81 = arith.mulf %79, %80 : vector<8x8xf32>
    %cst_38 = arith.constant dense<0xFF800000> : vector<8xf32>
    %82 = vector.multi_reduction <maximumf>, %81, %cst_38 [1] : vector<8x8xf32> to vector<8xf32>
    %83 = vector.shape_cast %82 : vector<8xf32> to vector<8x1xf32>
    %84 = vector.broadcast %83 : vector<8x1xf32> to vector<8x8xf32>
    %85 = arith.subf %81, %84 : vector<8x8xf32>
    %86 = math.exp %85 : vector<8x8xf32>
    %cst_39 = arith.constant dense<0.000000e+00> : vector<8xf32>
    %87 = vector.multi_reduction <add>, %86, %cst_39 [1] : vector<8x8xf32> to vector<8xf32>
    %88 = vector.shape_cast %87 : vector<8xf32> to vector<8x1xf32>
    %89 = vector.broadcast %88 : vector<8x1xf32> to vector<8x8xf32>
    %90 = arith.divf %86, %89 : vector<8x8xf32>
    %91 = arith.truncf %90 : vector<8x8xf32> to vector<8x8xbf16>
    %cst_40 = arith.constant dense<0.000000e+00> : vector<8x8xf32>
    %92 = tpu.matmul %91, %78, %cst_40 {dimension_numbers = #tpu.dot_dimension_numbers<[1], [0], [0], [1], [0, 0, 1, 1], [], []>} : vector<8x8xbf16>, vector<8x8xbf16>, vector<8x8xf32> -> vector<8x8xf32>
    %c0_41 = arith.constant 0 : index
    %c3 = arith.constant 3 : index
    %c0_42 = arith.constant 0 : index
    %c0_43 = arith.constant 0 : index
    %93 = vector.load %arg5[%c0_41, %c3, %c0_42, %c0_43] : memref<1x4x8x8xf32, #tpu.memory_space<vmem>>, vector<1x1x8x8xf32>
    %94 = vector.shape_cast %93 : vector<1x1x8x8xf32> to vector<8x8xf32>
    %95 = vector.shape_cast %90 : vector<8x8xf32> to vector<1x1x8x8xf32>
    tpu.vector_store %arg5[%c0_41, %c3, %c0_42, %c0_43], %95 {strides = array<i32>} : memref<1x4x8x8xf32, #tpu.memory_space<vmem>>, vector<1x1x8x8xf32>,
    %96 = arith.truncf %92 : vector<8x8xf32> to vector<8x8xbf16>
    %c0_44 = arith.constant 0 : index
    %c0_45 = arith.constant 0 : index
    %c24 = arith.constant 24 : index
    %97 = vector.load %arg4[%c0_44, %c0_45, %c24] : memref<1x8x32xbf16, #tpu.memory_space<vmem>>, vector<1x8x8xbf16>
    %98 = vector.shape_cast %97 : vector<1x8x8xbf16> to vector<8x8xbf16>
    %99 = vector.shape_cast %96 : vector<8x8xbf16> to vector<1x8x8xbf16>
    tpu.vector_store %arg4[%c0_44, %c0_45, %c24], %99 {strides = array<i32>} : memref<1x8x32xbf16, #tpu.memory_space<vmem>>, vector<1x8x8xbf16>,
    return
  }
  func.func @transform_0(%arg0: i32, %arg1: i32) -> (i32, i32, i32) {
    %c0_i32 = arith.constant 0 : i32
    %c0_i32_0 = arith.constant 0 : i32
    return %arg0, %arg1, %c0_i32 : i32, i32, i32
  }
  func.func @transform_1(%arg0: i32, %arg1: i32) -> (i32, i32, i32) {
    %c0_i32 = arith.constant 0 : i32
    %c0_i32_0 = arith.constant 0 : i32
    %c0_i32_1 = arith.constant 0 : i32
    return %arg0, %c0_i32, %c0_i32_0 : i32, i32, i32
  }
  func.func @transform_2(%arg0: i32, %arg1: i32) -> (i32, i32, i32) {
    %c0_i32 = arith.constant 0 : i32
    %c0_i32_0 = arith.constant 0 : i32
    return %arg0, %arg1, %c0_i32 : i32, i32, i32
  }
  func.func @transform_3(%arg0: i32, %arg1: i32) -> (i32, i32, i32, i32) {
    %c0_i32 = arith.constant 0 : i32
    %c0_i32_0 = arith.constant 0 : i32
    %c0_i32_1 = arith.constant 0 : i32
    return %arg0, %c0_i32, %arg1, %c0_i32_0 : i32, i32, i32, i32
  }
}

module attributes {stable_mosaic.version = 11 : i64} {
  func.func @_linear_kernel(%arg0: i32, %arg1: memref<16x32xf32, #tpu.memory_space<vmem>>, %arg2: memref<32x64xbf16, #tpu.memory_space<vmem>>, %arg3: memref<1x64xf32, #tpu.memory_space<vmem>>, %arg4: memref<16x64xbf16, #tpu.memory_space<vmem>>) attributes {dimension_semantics = [#tpu.dimension_semantics<parallel>], iteration_bounds = array<i64: 1>, scalar_prefetch = 0 : i64, scratch_operands = 0 : i64, tpu.core_type = #tpu.core_type<tc>, window_params = [{transform_indices = @transform_0, window_bounds = array<i64: 16, 32>}, {pipeline_mode = #tpu.pipeline_mode<synchronous>, transform_indices = @transform_1, window_bounds = array<i64: 32, 64>}, {pipeline_mode = #tpu.pipeline_mode<synchronous>, transform_indices = @transform_2, window_bounds = array<i64: 1, 64>}, {transform_indices = @transform_3, window_bounds = array<i64: 16, 64>}]} {
    %c0 = arith.constant 0 : index
    %c0_0 = arith.constant 0 : index
    %0 = vector.load %arg1[%c0, %c0_0] : memref<16x32xf32, #tpu.memory_space<vmem>>, vector<16x32xf32>
    %1 = arith.truncf %0 : vector<16x32xf32> to vector<16x32xbf16>
    %c0_1 = arith.constant 0 : index
    %c0_2 = arith.constant 0 : index
    %2 = vector.load %arg2[%c0_1, %c0_2] : memref<32x64xbf16, #tpu.memory_space<vmem>>, vector<32x64xbf16>
    %cst = arith.constant dense<0.000000e+00> : vector<16x64xf32>
    %3 = tpu.matmul %1, %2, %cst {dimension_numbers = #tpu.dot_dimension_numbers<[1], [0], [0], [1], [0, 0, 1, 1], [], []>} : vector<16x32xbf16>, vector<32x64xbf16>, vector<16x64xf32> -> vector<16x64xf32>
    %c0_3 = arith.constant 0 : index
    %c0_4 = arith.constant 0 : index
    %4 = vector.load %arg3[%c0_3, %c0_4] : memref<1x64xf32, #tpu.memory_space<vmem>>, vector<1x64xf32>
    %5 = vector.broadcast %4 : vector<1x64xf32> to vector<16x64xf32>
    %6 = arith.addf %3, %5 : vector<16x64xf32>
    %7 = arith.truncf %6 : vector<16x64xf32> to vector<16x64xbf16>
    %c0_5 = arith.constant 0 : index
    %c0_6 = arith.constant 0 : index
    %8 = vector.load %arg4[%c0_5, %c0_6] : memref<16x64xbf16, #tpu.memory_space<vmem>>, vector<16x64xbf16>
    tpu.vector_store %arg4[%c0_5, %c0_6], %7 {strides = array<i32>} : memref<16x64xbf16, #tpu.memory_space<vmem>>, vector<16x64xbf16>,
    return
  }
  func.func @transform_0(%arg0: i32) -> (i32, i32) {
    %c0_i32 = arith.constant 0 : i32
    %c0_i32_0 = arith.constant 0 : i32
    return %arg0, %c0_i32 : i32, i32
  }
  func.func @transform_1(%arg0: i32) -> (i32, i32) {
    %c0_i32 = arith.constant 0 : i32
    %c0_i32_0 = arith.constant 0 : i32
    %c0_i32_1 = arith.constant 0 : i32
    return %c0_i32, %c0_i32_0 : i32, i32
  }
  func.func @transform_2(%arg0: i32) -> (i32, i32) {
    %c0_i32 = arith.constant 0 : i32
    %c0_i32_0 = arith.constant 0 : i32
    %c0_i32_1 = arith.constant 0 : i32
    return %c0_i32, %c0_i32_0 : i32, i32
  }
  func.func @transform_3(%arg0: i32) -> (i32, i32) {
    %c0_i32 = arith.constant 0 : i32
    %c0_i32_0 = arith.constant 0 : i32
    return %arg0, %c0_i32 : i32, i32
  }
}

module attributes {stable_mosaic.version = 11 : i64} {
  func.func @_ffn_ln_kernel(%arg0: i32, %arg1: memref<16x32xf32, #tpu.memory_space<vmem>>, %arg2: memref<32x64xbf16, #tpu.memory_space<vmem>>, %arg3: memref<1x64xf32, #tpu.memory_space<vmem>>, %arg4: memref<64x32xbf16, #tpu.memory_space<vmem>>, %arg5: memref<1x32xf32, #tpu.memory_space<vmem>>, %arg6: memref<1x32xf32, #tpu.memory_space<vmem>>, %arg7: memref<1x32xf32, #tpu.memory_space<vmem>>, %arg8: memref<16x32xf32, #tpu.memory_space<vmem>>) attributes {dimension_semantics = [#tpu.dimension_semantics<parallel>], iteration_bounds = array<i64: 1>, scalar_prefetch = 0 : i64, scratch_operands = 0 : i64, tpu.core_type = #tpu.core_type<tc>, window_params = [{transform_indices = @transform_0, window_bounds = array<i64: 16, 32>}, {pipeline_mode = #tpu.pipeline_mode<synchronous>, transform_indices = @transform_1, window_bounds = array<i64: 32, 64>}, {pipeline_mode = #tpu.pipeline_mode<synchronous>, transform_indices = @transform_2, window_bounds = array<i64: 1, 64>}, {pipeline_mode = #tpu.pipeline_mode<synchronous>, transform_indices = @transform_3, window_bounds = array<i64: 64, 32>}, {pipeline_mode = #tpu.pipeline_mode<synchronous>, transform_indices = @transform_4, window_bounds = array<i64: 1, 32>}, {pipeline_mode = #tpu.pipeline_mode<synchronous>, transform_indices = @transform_5, window_bounds = array<i64: 1, 32>}, {pipeline_mode = #tpu.pipeline_mode<synchronous>, transform_indices = @transform_6, window_bounds = array<i64: 1, 32>}, {transform_indices = @transform_7, window_bounds = array<i64: 16, 32>}]} {
    %c0 = arith.constant 0 : index
    %c0_0 = arith.constant 0 : index
    %0 = vector.load %arg1[%c0, %c0_0] : memref<16x32xf32, #tpu.memory_space<vmem>>, vector<16x32xf32>
    %1 = arith.truncf %0 : vector<16x32xf32> to vector<16x32xbf16>
    %c0_1 = arith.constant 0 : index
    %c0_2 = arith.constant 0 : index
    %2 = vector.load %arg2[%c0_1, %c0_2] : memref<32x64xbf16, #tpu.memory_space<vmem>>, vector<32x64xbf16>
    %cst = arith.constant dense<0.000000e+00> : vector<16x64xf32>
    %3 = tpu.matmul %1, %2, %cst {dimension_numbers = #tpu.dot_dimension_numbers<[1], [0], [0], [1], [0, 0, 1, 1], [], []>} : vector<16x32xbf16>, vector<32x64xbf16>, vector<16x64xf32> -> vector<16x64xf32>
    %c0_3 = arith.constant 0 : index
    %c0_4 = arith.constant 0 : index
    %4 = vector.load %arg3[%c0_3, %c0_4] : memref<1x64xf32, #tpu.memory_space<vmem>>, vector<1x64xf32>
    %5 = vector.broadcast %4 : vector<1x64xf32> to vector<16x64xf32>
    %6 = arith.addf %3, %5 : vector<16x64xf32>
    %cst_5 = arith.constant 0.000000e+00 : f32
    %7 = vector.broadcast %cst_5 : f32 to vector<16x64xf32>
    %8 = arith.maximumf %6, %7 : vector<16x64xf32>
    %9 = arith.truncf %8 : vector<16x64xf32> to vector<16x64xbf16>
    %c0_6 = arith.constant 0 : index
    %c0_7 = arith.constant 0 : index
    %10 = vector.load %arg4[%c0_6, %c0_7] : memref<64x32xbf16, #tpu.memory_space<vmem>>, vector<64x32xbf16>
    %cst_8 = arith.constant dense<0.000000e+00> : vector<16x32xf32>
    %11 = tpu.matmul %9, %10, %cst_8 {dimension_numbers = #tpu.dot_dimension_numbers<[1], [0], [0], [1], [0, 0, 1, 1], [], []>} : vector<16x64xbf16>, vector<64x32xbf16>, vector<16x32xf32> -> vector<16x32xf32>
    %c0_9 = arith.constant 0 : index
    %c0_10 = arith.constant 0 : index
    %12 = vector.load %arg5[%c0_9, %c0_10] : memref<1x32xf32, #tpu.memory_space<vmem>>, vector<1x32xf32>
    %13 = vector.broadcast %12 : vector<1x32xf32> to vector<16x32xf32>
    %14 = arith.addf %11, %13 : vector<16x32xf32>
    %15 = arith.addf %14, %0 : vector<16x32xf32>
    %cst_11 = arith.constant dense<0.000000e+00> : vector<16xf32>
    %16 = vector.multi_reduction <add>, %15, %cst_11 [1] : vector<16x32xf32> to vector<16xf32>
    %17 = vector.shape_cast %16 : vector<16xf32> to vector<16x1xf32>
    %cst_12 = arith.constant 3.200000e+01 : f32
    %18 = vector.broadcast %cst_12 : f32 to vector<16x1xf32>
    %19 = arith.divf %17, %18 : vector<16x1xf32>
    %20 = vector.broadcast %19 : vector<16x1xf32> to vector<16x32xf32>
    %21 = arith.subf %15, %20 : vector<16x32xf32>
    %22 = arith.mulf %21, %21 : vector<16x32xf32>
    %cst_13 = arith.constant dense<0.000000e+00> : vector<16xf32>
    %23 = vector.multi_reduction <add>, %22, %cst_13 [1] : vector<16x32xf32> to vector<16xf32>
    %24 = vector.shape_cast %23 : vector<16xf32> to vector<16x1xf32>
    %cst_14 = arith.constant 3.200000e+01 : f32
    %25 = vector.broadcast %cst_14 : f32 to vector<16x1xf32>
    %26 = arith.divf %24, %25 : vector<16x1xf32>
    %27 = vector.broadcast %19 : vector<16x1xf32> to vector<16x32xf32>
    %28 = arith.subf %15, %27 : vector<16x32xf32>
    %cst_15 = arith.constant 9.99999997E-7 : f32
    %29 = vector.broadcast %cst_15 : f32 to vector<16x1xf32>
    %30 = arith.addf %26, %29 : vector<16x1xf32>
    %31 = math.rsqrt %30 : vector<16x1xf32>
    %32 = vector.broadcast %31 : vector<16x1xf32> to vector<16x32xf32>
    %33 = arith.mulf %28, %32 : vector<16x32xf32>
    %c0_16 = arith.constant 0 : index
    %c0_17 = arith.constant 0 : index
    %34 = vector.load %arg6[%c0_16, %c0_17] : memref<1x32xf32, #tpu.memory_space<vmem>>, vector<1x32xf32>
    %35 = vector.broadcast %34 : vector<1x32xf32> to vector<16x32xf32>
    %36 = arith.mulf %33, %35 : vector<16x32xf32>
    %c0_18 = arith.constant 0 : index
    %c0_19 = arith.constant 0 : index
    %37 = vector.load %arg7[%c0_18, %c0_19] : memref<1x32xf32, #tpu.memory_space<vmem>>, vector<1x32xf32>
    %38 = vector.broadcast %37 : vector<1x32xf32> to vector<16x32xf32>
    %39 = arith.addf %36, %38 : vector<16x32xf32>
    %c0_20 = arith.constant 0 : index
    %c0_21 = arith.constant 0 : index
    %40 = vector.load %arg8[%c0_20, %c0_21] : memref<16x32xf32, #tpu.memory_space<vmem>>, vector<16x32xf32>
    tpu.vector_store %arg8[%c0_20, %c0_21], %39 {strides = array<i32>} : memref<16x32xf32, #tpu.memory_space<vmem>>, vector<16x32xf32>,
    return
  }
  func.func @transform_0(%arg0: i32) -> (i32, i32) {
    %c0_i32 = arith.constant 0 : i32
    %c0_i32_0 = arith.constant 0 : i32
    return %arg0, %c0_i32 : i32, i32
  }
  func.func @transform_1(%arg0: i32) -> (i32, i32) {
    %c0_i32 = arith.constant 0 : i32
    %c0_i32_0 = arith.constant 0 : i32
    %c0_i32_1 = arith.constant 0 : i32
    return %c0_i32, %c0_i32_0 : i32, i32
  }
  func.func @transform_2(%arg0: i32) -> (i32, i32) {
    %c0_i32 = arith.constant 0 : i32
    %c0_i32_0 = arith.constant 0 : i32
    %c0_i32_1 = arith.constant 0 : i32
    return %c0_i32, %c0_i32_0 : i32, i32
  }
  func.func @transform_3(%arg0: i32) -> (i32, i32) {
    %c0_i32 = arith.constant 0 : i32
    %c0_i32_0 = arith.constant 0 : i32
    %c0_i32_1 = arith.constant 0 : i32
    return %c0_i32, %c0_i32_0 : i32, i32
  }
  func.func @transform_4(%arg0: i32) -> (i32, i32) {
    %c0_i32 = arith.constant 0 : i32
    %c0_i32_0 = arith.constant 0 : i32
    %c0_i32_1 = arith.constant 0 : i32
    return %c0_i32, %c0_i32_0 : i32, i32
  }
  func.func @transform_5(%arg0: i32) -> (i32, i32) {
    %c0_i32 = arith.constant 0 : i32
    %c0_i32_0 = arith.constant 0 : i32
    %c0_i32_1 = arith.constant 0 : i32
    return %c0_i32, %c0_i32_0 : i32, i32
  }
  func.func @transform_6(%arg0: i32) -> (i32, i32) {
    %c0_i32 = arith.constant 0 : i32
    %c0_i32_0 = arith.constant 0 : i32
    %c0_i32_1 = arith.constant 0 : i32
    return %c0_i32, %c0_i32_0 : i32, i32
  }
  func.func @transform_7(%arg0: i32) -> (i32, i32) {
    %c0_i32 = arith.constant 0 : i32
    %c0_i32_0 = arith.constant 0 : i32
    return %arg0, %c0_i32 : i32, i32
  }
}

</mosaic_0001>

<bundles_post_ra>
// kernel: decoder_layer.10
= control target key start
LH: loop header
LB: loop body
LE: loop exit
PB: predicated region body
PF: predicated region fallthrough
CT: control target
= control target key end

     0   :  { %11 = vsyncpa [#allocation3], 0  ;;  %s607_s0 = inlined_call_operand.hbm [shape: bf16[16,32], index: 0, kind: input, shape index: {}]   ;;  %s608_s1 = inlined_call_operand.hbm [shape: bf16[32,32], index: 1, kind: input, shape index: {}]   ;;  %s609_s2 = inlined_call_operand.hbm [shape: f32[1,32], index: 2, kind: input, shape index: {}]   ;;  %s610_s3 = inlined_call_operand.hbm [shape: f32[16,32], index: 3, kind: input, shape index: {}]   ;;  %s611_s4 = inlined_call_operand.hbm [shape: f32[1,32], index: 4, kind: input, shape index: {}]   ;;  %s612_s5 = inlined_call_operand.hbm [shape: f32[1,32], index: 5, kind: input, shape index: {}]   ;;  %s613_s6 = inlined_call_operand.hbm [shape: f32[16,32], index: 6, kind: output, shape index: {}]  }
   0x1   :  { %12 = vsyncpa [#allocation6], 0 }
   0x2   :  { %13 = vsyncpa [#allocation9], 0 }
   0x3   :  { %14 = vsyncpa [#allocation12], 0 }
   0x4   :  { %15 = vsyncpa [#allocation4], 0  ;;  %s449_s21 = smov [#allocation5]   ;;  %s450_s23 = smov [#allocation8]  }
   0x5   :  { %s33_s22 = sshll.u32 %s449_s21, 4  ;;  %s55_s24 = sshll.u32 %s450_s23, 4  ;;  %s34_s22 = int_to_ptr.vmem [resolvable:$true] %s33_s22  ;;  %s497_s24 = int_to_ptr.vmem [resolvable:$true] %s55_s24 }
   0x6   :  { %s285_s27 = scalar_lea.hbm %s608_s1, 256 }
   0x7   :  { %p286_p0 = scmp.ne.s32.totalorder %s608_s1, %s285_s27  ;;  %p289_p1 = scmp.lt.u32.totalorder %s285_s27, %s608_s1 }
   0x9   :  { %p291_p2 = pnand %p289_p1, %p286_p0 }
   0xb   :  { %294 = shalt.err (!%p291_p2)
}
   0xc   :  { %s295_s8 = scalar_lea.vmem %s34_s22, 256  ;;  %p300_p4 = scmp.lt.s32.totalorder %s34_s22, %s34_s22 }
   0xd   :  { %p296_p3 = scmp.ne.s32.totalorder %s34_s22, %s295_s8  ;;  %p301_p5 = scmp.lt.s32.totalorder %s295_s8, %s295_s8 }
   0xf   :  { %p302_p6 = por %p301_p5, %p300_p4 }
  0x11   :  { %p303_p7 = pnand %p302_p6, %p296_p3 }
  0x13   :  { %306 = shalt.err (!%p303_p7)
}
  0x14   :  { %s451_s9 = smov 64   ;;  %s452_s10 = smov 4  }
  0x15   :  { %39 = dma.hbm_to_vmem [thread:$0]  %s608_s1, 256, %s34_s22, [#allocation6], %s451_s9, %s451_s9, %s452_s10  }
  0x16   :  { %s307_s15 = scalar_lea.hbm %s610_s3, 256 }
  0x17   :  { %p308_p8 = scmp.ne.s32.totalorder %s610_s3, %s307_s15  ;;  %p311_p9 = scmp.lt.u32.totalorder %s307_s15, %s610_s3 }
  0x19   :  { %p313_p10 = pnand %p311_p9, %p308_p8 }
  0x1b   :  { %316 = shalt.err (!%p313_p10)
}
  0x1c   :  { %s317_s20 = scalar_lea.vmem %s497_s24, 256  ;;  %p322_p12 = scmp.lt.s32.totalorder %s497_s24, %s497_s24 }
  0x1d   :  { %p318_p11 = scmp.ne.s32.totalorder %s497_s24, %s317_s20  ;;  %p323_p13 = scmp.lt.s32.totalorder %s317_s20, %s317_s20 }
  0x1f   :  { %p324_p0 = por %p323_p13, %p322_p12 }
  0x21   :  { %p325_p1 = pnand %p324_p0, %p318_p11 }
  0x23   :  { %328 = shalt.err (!%p325_p1)
}
  0x24   :  { %s453_s1 = smov 128   ;;  %s454_s21 = smov 8  }
  0x25   :  { %61 = dma.hbm_to_vmem [thread:$0]  %s610_s3, 256, %s497_s24, [#allocation9], %s453_s1, %s453_s1, %s454_s21  }
  0x26   :  { %s455_s25 = smov [#allocation2]   ;;  %s456_s27 = smov [#allocation7]  }
  0x27   :  { %s21_s26 = sshll.u32 %s455_s25, 4  ;;  %s46_s28 = sshll.u32 %s456_s27, 4  ;;  %s22_s26 = int_to_ptr.vmem [resolvable:$true] %s21_s26  ;;  %s47_s28 = int_to_ptr.vmem [resolvable:$true] %s46_s28 }
  0x28   :  { %s329_s7 = scalar_lea.hbm %s607_s0, 128 }
  0x29   :  { %p330_p2 = scmp.ne.s32.totalorder %s607_s0, %s329_s7  ;;  %p333_p3 = scmp.lt.u32.totalorder %s329_s7, %s607_s0 }
  0x2b   :  { %p335_p4 = pnand %p333_p3, %p330_p2 }
  0x2d   :  { %338 = shalt.err (!%p335_p4)
}
  0x2e   :  { %s339_s3 = scalar_lea.vmem %s22_s26, 128  ;;  %p344_p6 = scmp.lt.s32.totalorder %s22_s26, %s22_s26 }
  0x2f   :  { %p340_p5 = scmp.ne.s32.totalorder %s22_s26, %s339_s3  ;;  %p345_p7 = scmp.lt.s32.totalorder %s339_s3, %s339_s3 }
  0x31   :  { %p346_p8 = por %p345_p7, %p344_p6 }
  0x33   :  { %p347_p9 = pnand %p346_p8, %p340_p5 }
  0x35   :  { %350 = shalt.err (!%p347_p9)
}
  0x36   :  { %27 = dma.hbm_to_vmem [thread:$0]  %s607_s0, 128, %s22_s26, [#allocation3], %s451_s9, %s451_s9, %s452_s10  }
  0x37   :  { %s351_s17 = scalar_lea.hbm %s609_s2, 16 }
  0x38   :  { %p352_p10 = scmp.ne.s32.totalorder %s609_s2, %s351_s17  ;;  %p355_p11 = scmp.lt.u32.totalorder %s351_s17, %s609_s2 }
  0x3a   :  { %p357_p12 = pnand %p355_p11, %p352_p10 }
  0x3c   :  { %360 = shalt.err (!%p357_p12)
}
  0x3d   :  { %s361_s23 = scalar_lea.vmem %s47_s28, 16  ;;  %s365_s25 = scalar_lea.vmem %s47_s28, 32 }
  0x3e   :  { %p362_p13 = scmp.ne.s32.totalorder %s47_s28, %s361_s23  ;;  %p366_p0 = scmp.lt.s32.totalorder %s47_s28, %s47_s28 }
  0x3f   :  { %p367_p1 = scmp.lt.s32.totalorder %s365_s25, %s361_s23 }
  0x41   :  { %p368_p2 = por %p367_p1, %p366_p0 }
  0x43   :  { %p369_p3 = pnand %p368_p2, %p362_p13 }
  0x45   :  { %372 = shalt.err (!%p369_p3)
}
  0x46   :  { %49 = dma.hbm_to_vmem [thread:$0]  %s609_s2, 16, %s47_s28, [#allocation6]  }
  0x47   :  { %s457_s10 = smov [#allocation10]   ;;  %s458_s27 = smov [#allocation11]  }
  0x48   :  { %s68_s26 = sshll.u32 %s457_s10, 4  ;;  %s78_s29 = sshll.u32 %s458_s27, 4  ;;  %s69_s26 = int_to_ptr.vmem [resolvable:$true] %s68_s26  ;;  %s79_s29 = int_to_ptr.vmem [resolvable:$true] %s78_s29 }
  0x49   :  { %s373_s8 = scalar_lea.hbm %s611_s4, 16 }
  0x4a   :  { %p374_p4 = scmp.ne.s32.totalorder %s611_s4, %s373_s8  ;;  %p377_p5 = scmp.lt.u32.totalorder %s373_s8, %s611_s4 }
  0x4c   :  { %p379_p6 = pnand %p377_p5, %p374_p4 }
  0x4e   :  { %382 = shalt.err (!%p379_p6)
}
  0x4f   :  { %s383_s2 = scalar_lea.vmem %s69_s26, 16  ;;  %s387_s28 = scalar_lea.vmem %s69_s26, 32 }
  0x50   :  { %p384_p7 = scmp.ne.s32.totalorder %s69_s26, %s383_s2  ;;  %p388_p8 = scmp.lt.s32.totalorder %s69_s26, %s69_s26 }
  0x51   :  { %p389_p9 = scmp.lt.s32.totalorder %s387_s28, %s383_s2 }
  0x53   :  { %p390_p10 = por %p389_p9, %p388_p8 }
  0x55   :  { %p391_p11 = pnand %p390_p10, %p384_p7 }
  0x57   :  { %394 = shalt.err (!%p391_p11)
}
  0x58   :  { %71 = dma.hbm_to_vmem [thread:$0]  %s611_s4, 16, %s69_s26, [#allocation9]  }
  0x59   :  { %s395_s17 = scalar_lea.hbm %s612_s5, 16 }
  0x5a   :  { %p396_p12 = scmp.ne.s32.totalorder %s612_s5, %s395_s17  ;;  %p399_p13 = scmp.lt.u32.totalorder %s395_s17, %s612_s5 }
  0x5c   :  { %p401_p0 = pnand %p399_p13, %p396_p12 }
  0x5e   :  { %404 = shalt.err (!%p401_p0)
}
  0x5f   :  { %s405_s23 = scalar_lea.vmem %s79_s29, 16  ;;  %s409_s25 = scalar_lea.vmem %s79_s29, 32 }
  0x60   :  { %p406_p1 = scmp.ne.s32.totalorder %s79_s29, %s405_s23  ;;  %p410_p2 = scmp.lt.s32.totalorder %s79_s29, %s79_s29 }
  0x61   :  { %p411_p3 = scmp.lt.s32.totalorder %s409_s25, %s405_s23 }
  0x63   :  { %p412_p4 = por %p411_p3, %p410_p2 }
  0x65   :  { %p413_p5 = pnand %p412_p4, %p406_p1 }
  0x67   :  { %416 = shalt.err (!%p413_p5)
}
  0x68   :  { %81 = dma.hbm_to_vmem [thread:$0]  %s612_s5, 16, %s79_s29, [#allocation12]  }
  0x69   :  { %439 = dma.done.wait [#allocation3], 128  }
  0x6a   :  { %440 = vsyncadd [#allocation3], 4294967168 }
  0x6b   :  { %441 = dma.done.wait [#allocation6], 272  }
  0x6c   :  { %442 = vsyncadd [#allocation6], 4294967024 }
  0x6d   :  { %443 = dma.done.wait [#allocation9], 272  }
  0x6e   :  { %444 = vsyncadd [#allocation9], 4294967024 }
  0x6f   :  { %445 = dma.done.wait [#allocation12], 16  }
  0x70   :  { %446 = vsyncadd [#allocation12], 4294967280  ;;  %v459_v0 = vmov 0.0   ;;  %vm460_vm0 = vmmov 0   ;;  %v278_v1 = vld [vmem:[#allocation5] sm:$0xff]   ;;  %v279_v2 = vld [vmem:[#allocation5 + $0x8] sm:$0xff]  }
  0x71   :  { %257 = vmatprep.subr.bf16.mxu0 %v459_v0  ;;  %261 = vmatprep.mubr.msk.bf16.mxu0 %vm460_vm0, %v459_v0  ;;  %v280_v3 = vld [vmem:[#allocation2] sm:$0xff]   ;;  %vm131_vm1 = vcmask 261120   ;;  %v247_v4 = vld [vmem:[#allocation7] ss:$0 sm:$0xff]  ;;  %v252_v34 = vld [vmem:[#allocation10] ss:$0 sm:$0xff] }
  0x72   :  { %258 = vmatpush3.bf16.msra.mxu0 %v278_v1  ;;  %v176_v6 = vld [vmem:[#allocation8] sm:$0xff]  ;;  %v177_v10 = vld [vmem:[#allocation8 + $0x8] sm:$0xff]  ;;  %v253_v36 = vld [vmem:[#allocation11] ss:$0 sm:$0xff]  ;;  %s461_s5 = smov [#allocation13]  }
  0x73   :  { %259 = vmatprep.subr.bf16.mxu0 %v459_v0  ;;  %s232_s9 = sshll.u32 %s461_s5, 4  ;;  %s233_s9 = int_to_ptr.vmem [resolvable:$true] %s232_s9 }
  0x74   :  { %s417_s10 = scalar_lea.vmem %s233_s9, 256  ;;  %p422_p7 = scmp.lt.s32.totalorder %s233_s9, %s233_s9 }
  0x75   :  { %p418_p6 = scmp.ne.s32.totalorder %s233_s9, %s417_s10  ;;  %p423_p8 = scmp.lt.s32.totalorder %s417_s10, %s417_s10 }
  0x76   :  { %260 = vmatpush3.bf16.msra.mxu0 %v279_v2 }
  0x77   :  { %p424_p9 = por %p423_p8, %p422_p7 }
  0x79   :  { %262 = vmatmul.mubr.msk.bf16.vlgmr.msra.gmra.mrb[0].mxu0 %vm131_vm1, %v280_v3  ;;  %p425_p10 = pnand %p424_p9, %p418_p6 }
 0x14c   :  { %v169_v5 = vpop.f32.mrb[0].mxu0 }
 0x14d   :  { %v170_v7 = vadd.f32 %v247_v4, %v169_v5  ;;  %v263_v8 = vpop.f32.mrb[1].mxu0 }
 0x14e   :  { %v172_v9 = vpop.f32.mrb[2].mxu0 }
 0x14f   :  { %v173_v11 = vadd.f32 %v247_v4, %v172_v9  ;;  %v264_v12 = vpop.f32.mrb[3].mxu0  ;;  %v178_v13 = vadd.f32 %v176_v6, %v170_v7 }
 0x151   :  { %v180_v14 = vsel %vm131_vm1, %v178_v13, 0.0  ;;  %v179_v15 = vadd.f32 %v177_v10, %v173_v11 }
 0x152   :  { %181 = vadd.xlane.f32.xlu0 %v180_v14 }
 0x153   :  { %v183_v16 = vsel %vm131_vm1, %v179_v15, 0.0 }
 0x156   :  { %184 = vadd.xlane.f32.xlu0 %v183_v16 }
 0x1df   :  { %v182_v17 = vpop.xlane.xlu0 %181 }
 0x1e0   :  { %v187_v18 = vmul.f32 0.03125, %v182_v17 }
 0x1e2   :  { %v189_v19 = vsub.f32 %v178_v13, %v187_v18 }
 0x1e3   :  { %v185_v20 = vpop.xlane.xlu0 %184 }
 0x1e4   :  { %v188_v21 = vmul.f32 0.03125, %v185_v20  ;;  %v191_v22 = vmul.f32 %v189_v19, %v189_v19 }
 0x1e6   :  { %v190_v23 = vsub.f32 %v179_v15, %v188_v21  ;;  %v193_v24 = vsel %vm131_vm1, %v191_v22, 0.0 }
 0x1e7   :  { %194 = vadd.xlane.f32.xlu1 %v193_v24 }
 0x1e8   :  { %v192_v25 = vmul.f32 %v190_v23, %v190_v23 }
 0x1ea   :  { %v196_v26 = vsel %vm131_vm1, %v192_v25, 0.0 }
 0x1eb   :  { %197 = vadd.xlane.f32.xlu1 %v196_v26 }
 0x274   :  { %v195_v27 = vpop.xlane.xlu1 %194 }
 0x275   :  { %v199_v28 = vmul.f32 0.03125, %v195_v27 }
 0x277   :  { %v201_v29 = vadd.f32 1e-06, %v199_v28 }
 0x278   :  { %v198_v30 = vpop.xlane.xlu1 %197 }
 0x279   :  { %281 = vrsqrt.f32 %v201_v29  ;;  %v200_v31 = vmul.f32 0.03125, %v198_v30 }
 0x27b   :  { %v202_v32 = vadd.f32 1e-06, %v200_v31 }
 0x27d   :  { %283 = vrsqrt.f32 %v202_v32 }
 0x283   :  { %v282_v33 = vpop.eup %281 }
 0x284   :  { %v205_v35 = vmul.f32 %v282_v33, %v189_v19 }
 0x286   :  { %v214_v37 = vmul.f32 %v252_v34, %v205_v35 }
 0x287   :  { %v284_v38 = vpop.eup %283 }
 0x288   :  { %v206_v39 = vmul.f32 %v284_v38, %v190_v23  ;;  %v223_v40 = vadd.f32 %v253_v36, %v214_v37 }
 0x28a   :  { %v215_v41 = vmul.f32 %v252_v34, %v206_v39  ;;  %225 = vst.msk [vmem:[#allocation13] sm:$0xff] %vm131_vm1, %v223_v40 }
 0x28c   :  { %v224_v42 = vadd.f32 %v253_v36, %v215_v41 }
 0x28e   :  { %226 = vst.msk [vmem:[#allocation13 + $0x8] sm:$0xff] %vm131_vm1, %v224_v42 }
 0x28f   :  { %428 = shalt.err (!%p425_p10)
}
 0x290   :  { %s429_s29 = scalar_lea.hbm %s613_s6, 256 }
 0x291   :  { %p430_p11 = scmp.ne.s32.totalorder %s613_s6, %s429_s29  ;;  %p433_p12 = scmp.lt.u32.totalorder %s429_s29, %s613_s6 }
 0x293   :  { %p435_p13 = pnand %p433_p12, %p430_p11 }
 0x295   :  { %438 = shalt.err (!%p435_p13)
}
 0x296   :  { %238 = dma.vmem_to_hbm [thread:$0]  %s233_s9, 256, %s613_s6, [#allocation4], %s453_s1, %s453_s1, %s454_s21  }
 0x297   :  { %447 = dma.done.wait [#allocation4], 256  }
 0x298   :  { %448 = vsyncadd [#allocation4], 4294967040 }
 0x299   :  { %242 = vsyncpa [#allocation3], 1 }
 0x29a   :  { %243 = vsyncpa [#allocation6], 1 }
 0x29b   :  { %244 = vsyncpa [#allocation9], 1 }
 0x29c   :  { %245 = vsyncpa [#allocation12], 1 }
 0x29d   :  { %246 = vsyncpa [#allocation4], 1 }

// kernel: decoder_layer.8
= control target key start
LH: loop header
LB: loop body
LE: loop exit
PB: predicated region body
PF: predicated region fallthrough
CT: control target
= control target key end

     0   :  { %12 = vsyncpa [#allocation3], 0  ;;  %s655_s0 = inlined_call_operand.hbm [shape: f32[16,32], index: 0, kind: input, shape index: {}]   ;;  %s656_s1 = inlined_call_operand.hbm [shape: bf16[32,32], index: 1, kind: input, shape index: {}]   ;;  %s657_s2 = inlined_call_operand.hbm [shape: f32[1,32], index: 2, kind: input, shape index: {}]   ;;  %s658_s3 = inlined_call_operand.hbm [shape: bf16[32,64], index: 3, kind: input, shape index: {}]   ;;  %s659_s4 = inlined_call_operand.hbm [shape: f32[1,64], index: 4, kind: input, shape index: {}]   ;;  %s660_s5 = inlined_call_operand.hbm [shape: bf16[16,32], index: 5, kind: output, shape index: {0}]   ;;  %s661_s6 = inlined_call_operand.hbm [shape: bf16[16,64], index: 6, kind: output, shape index: {1}]  }
   0x1   :  { %13 = vsyncpa [#allocation6], 0 }
   0x2   :  { %14 = vsyncpa [#allocation9], 0 }
   0x3   :  { %15 = vsyncpa [#allocation4], 0 }
   0x4   :  { %16 = vsyncpa [#allocation13], 0  ;;  %s500_s21 = smov [#allocation5]   ;;  %s336_s25 = scalar_lea.hbm %s656_s1, 256 }
   0x5   :  { %s34_s22 = sshll.u32 %s500_s21, 4  ;;  %p337_p0 = scmp.ne.s32.totalorder %s656_s1, %s336_s25  ;;  %s35_s22 = int_to_ptr.vmem [resolvable:$true] %s34_s22 }
   0x6   :  { %p340_p1 = scmp.lt.u32.totalorder %s336_s25, %s656_s1 }
   0x8   :  { %p342_p2 = pnand %p340_p1, %p337_p0 }
   0xa   :  { %345 = shalt.err (!%p342_p2)
}
   0xb   :  { %s346_s30 = scalar_lea.vmem %s35_s22, 256  ;;  %p351_p4 = scmp.lt.s32.totalorder %s35_s22, %s35_s22 }
   0xc   :  { %p347_p3 = scmp.ne.s32.totalorder %s35_s22, %s346_s30  ;;  %p352_p5 = scmp.lt.s32.totalorder %s346_s30, %s346_s30 }
   0xe   :  { %p353_p6 = por %p352_p5, %p351_p4 }
  0x10   :  { %p354_p7 = pnand %p353_p6, %p347_p3 }
  0x12   :  { %357 = shalt.err (!%p354_p7)
}
  0x13   :  { %s501_s7 = smov 64   ;;  %s502_s8 = smov 4  }
  0x14   :  { %40 = dma.hbm_to_vmem [thread:$0]  %s656_s1, 256, %s35_s22, [#allocation6], %s501_s7, %s501_s7, %s502_s8  }
  0x15   :  { %s503_s11 = smov [#allocation8]   ;;  %s504_s13 = smov [#allocation2]  }
  0x16   :  { %s56_s12 = sshll.u32 %s503_s11, 4  ;;  %s22_s14 = sshll.u32 %s504_s13, 4  ;;  %s57_s12 = int_to_ptr.vmem [resolvable:$true] %s56_s12  ;;  %s23_s14 = int_to_ptr.vmem [resolvable:$true] %s22_s14 }
  0x17   :  { %s358_s17 = scalar_lea.hbm %s658_s3, 256 }
  0x18   :  { %p359_p8 = scmp.ne.s32.totalorder %s658_s3, %s358_s17  ;;  %p362_p9 = scmp.lt.u32.totalorder %s358_s17, %s658_s3 }
  0x1a   :  { %p364_p10 = pnand %p362_p9, %p359_p8 }
  0x1c   :  { %367 = shalt.err (!%p364_p10)
}
  0x1d   :  { %s368_s1 = scalar_lea.vmem %s57_s12, 256  ;;  %p373_p12 = scmp.lt.s32.totalorder %s57_s12, %s57_s12 }
  0x1e   :  { %p369_p11 = scmp.ne.s32.totalorder %s57_s12, %s368_s1  ;;  %p374_p13 = scmp.lt.s32.totalorder %s368_s1, %s368_s1 }
  0x20   :  { %p375_p0 = por %p374_p13, %p373_p12 }
  0x22   :  { %p376_p1 = pnand %p375_p0, %p369_p11 }
  0x24   :  { %379 = shalt.err (!%p376_p1)
}
  0x25   :  { %62 = dma.hbm_to_vmem [thread:$0]  %s658_s3, 256, %s57_s12, [#allocation9], %s501_s7, %s501_s7, %s502_s8  }
  0x26   :  { %s380_s26 = scalar_lea.hbm %s655_s0, 256 }
  0x27   :  { %p381_p2 = scmp.ne.s32.totalorder %s655_s0, %s380_s26  ;;  %p384_p3 = scmp.lt.u32.totalorder %s380_s26, %s655_s0 }
  0x29   :  { %p386_p4 = pnand %p384_p3, %p381_p2 }
  0x2b   :  { %389 = shalt.err (!%p386_p4)
}
  0x2c   :  { %s390_s9 = scalar_lea.vmem %s23_s14, 256  ;;  %p395_p6 = scmp.lt.s32.totalorder %s23_s14, %s23_s14 }
  0x2d   :  { %p391_p5 = scmp.ne.s32.totalorder %s23_s14, %s390_s9  ;;  %p396_p7 = scmp.lt.s32.totalorder %s390_s9, %s390_s9 }
  0x2f   :  { %p397_p8 = por %p396_p7, %p395_p6 }
  0x31   :  { %p398_p9 = pnand %p397_p8, %p391_p5 }
  0x33   :  { %401 = shalt.err (!%p398_p9)
}
  0x34   :  { %s505_s3 = smov 128   ;;  %s506_s10 = smov 8  }
  0x35   :  { %28 = dma.hbm_to_vmem [thread:$0]  %s655_s0, 256, %s23_s14, [#allocation3], %s505_s3, %s505_s3, %s506_s10  }
  0x36   :  { %s507_s13 = smov [#allocation7]   ;;  %s508_s16 = smov [#allocation10]  }
  0x37   :  { %s47_s15 = sshll.u32 %s507_s13, 4  ;;  %s69_s17 = sshll.u32 %s508_s16, 4  ;;  %s48_s15 = int_to_ptr.vmem [resolvable:$true] %s47_s15  ;;  %s70_s17 = int_to_ptr.vmem [resolvable:$true] %s69_s17 }
  0x38   :  { %s402_s20 = scalar_lea.hbm %s657_s2, 16 }
  0x39   :  { %p403_p10 = scmp.ne.s32.totalorder %s657_s2, %s402_s20  ;;  %p406_p11 = scmp.lt.u32.totalorder %s402_s20, %s657_s2 }
  0x3b   :  { %p408_p12 = pnand %p406_p11, %p403_p10 }
  0x3d   :  { %411 = shalt.err (!%p408_p12)
}
  0x3e   :  { %s412_s0 = scalar_lea.vmem %s48_s15, 16  ;;  %s416_s14 = scalar_lea.vmem %s48_s15, 32 }
  0x3f   :  { %p413_p13 = scmp.ne.s32.totalorder %s48_s15, %s412_s0  ;;  %p417_p0 = scmp.lt.s32.totalorder %s48_s15, %s48_s15 }
  0x40   :  { %p418_p1 = scmp.lt.s32.totalorder %s416_s14, %s412_s0 }
  0x42   :  { %p419_p2 = por %p418_p1, %p417_p0 }
  0x44   :  { %p420_p3 = pnand %p419_p2, %p413_p13 }
  0x46   :  { %423 = shalt.err (!%p420_p3)
}
  0x47   :  { %50 = dma.hbm_to_vmem [thread:$0]  %s657_s2, 16, %s48_s15, [#allocation6]  }
  0x48   :  { %s424_s28 = scalar_lea.hbm %s659_s4, 16 }
  0x49   :  { %p425_p4 = scmp.ne.s32.totalorder %s659_s4, %s424_s28  ;;  %p428_p5 = scmp.lt.u32.totalorder %s424_s28, %s659_s4 }
  0x4b   :  { %p430_p6 = pnand %p428_p5, %p425_p4 }
  0x4d   :  { %433 = shalt.err (!%p430_p6)
}
  0x4e   :  { %s434_s10 = scalar_lea.vmem %s70_s17, 16  ;;  %s438_s11 = scalar_lea.vmem %s70_s17, 32 }
  0x4f   :  { %p435_p7 = scmp.ne.s32.totalorder %s70_s17, %s434_s10  ;;  %p439_p8 = scmp.lt.s32.totalorder %s70_s17, %s70_s17 }
  0x50   :  { %p440_p9 = scmp.lt.s32.totalorder %s438_s11, %s434_s10 }
  0x52   :  { %p441_p10 = por %p440_p9, %p439_p8 }
  0x54   :  { %p442_p11 = pnand %p441_p10, %p435_p7 }
  0x56   :  { %445 = shalt.err (!%p442_p11)
}
  0x57   :  { %72 = dma.hbm_to_vmem [thread:$0]  %s659_s4, 16, %s70_s17, [#allocation9]  }
  0x58   :  { %490 = dma.done.wait [#allocation3], 256  }
  0x59   :  { %491 = vsyncadd [#allocation3], 4294967040 }
  0x5a   :  { %492 = dma.done.wait [#allocation6], 272  }
  0x5b   :  { %493 = vsyncadd [#allocation6], 4294967024 }
  0x5c   :  { %494 = dma.done.wait [#allocation9], 272  }
  0x5d   :  { %495 = vsyncadd [#allocation9], 4294967024  ;;  %v509_v0 = vmov 0.0   ;;  %vm510_vm0 = vmmov 0   ;;  %v332_v1 = vld [vmem:[#allocation5] sm:$0xff]   ;;  %v333_v2 = vld [vmem:[#allocation8] sm:$0xff]  }
  0x5e   :  { %303 = vmatprep.subr.bf16.mxu0 %v509_v0  ;;  %311 = vmatprep.subr.bf16.mxu1 %v509_v0  ;;  %v334_v3 = vld [vmem:[#allocation5 + $0x8] sm:$0xff]   ;;  %v335_v4 = vld [vmem:[#allocation8 + $0x8] sm:$0xff]   ;;  %v89_v5 = vld [vmem:[#allocation2] sm:$0xff]  ;;  %vm115_vm1 = vcmask 261120   ;;  %vm232_vm2 = vcmask 257024   ;;  %s511_s4 = smov [#allocation11]  }
  0x5f   :  { %307 = vmatprep.mubr.msk.bf16.mxu0 %vm510_vm0, %v509_v0  ;;  %315 = vmatprep.mubr.msk.bf16.mxu1 %vm510_vm0, %v509_v0  ;;  %v90_v6 = vld [vmem:[#allocation2 + $0x8] sm:$0xff]  ;;  %v281_v8 = vld [vmem:[#allocation7] ss:$0 sm:$0xff]  ;;  %v285_v9 = vld [vmem:[#allocation10] ss:$0 sm:$0xff]  ;;  %s251_s13 = sshll.u32 %s511_s4, 4  ;;  %s252_s13 = int_to_ptr.vmem [resolvable:$true] %s251_s13 }
  0x60   :  { %304 = vmatpush3.bf16.msra.mxu0 %v332_v1  ;;  %312 = vmatpush3.bf16.msra.mxu1 %v333_v2  ;;  %v91_v7 = vpack.c.bf16 %v90_v6, %v89_v5  ;;  %vm243_vm3 = vcmask 519168   ;;  %s512_s15 = smov [#allocation12]   ;;  %s446_s17 = scalar_lea.vmem %s252_s13, 128 }
  0x61   :  { %305 = vmatprep.subr.bf16.mxu0 %v509_v0  ;;  %313 = vmatprep.subr.bf16.mxu1 %v509_v0  ;;  %s263_s16 = sshll.u32 %s512_s15, 4  ;;  %p447_p12 = scmp.ne.s32.totalorder %s252_s13, %s446_s17  ;;  %s616_s16 = int_to_ptr.vmem [resolvable:$true] %s263_s16 }
  0x62   :  { %p451_p13 = scmp.lt.s32.totalorder %s252_s13, %s252_s13  ;;  %p452_p0 = scmp.lt.s32.totalorder %s446_s17, %s446_s17 }
  0x64   :  { %306 = vmatpush3.bf16.msra.mxu0 %v334_v3  ;;  %314 = vmatpush3.bf16.msra.mxu1 %v335_v4  ;;  %p453_p1 = por %p452_p0, %p451_p13 }
  0x66   :  { %p454_p2 = pnand %p453_p1, %p447_p12 }
  0x67   :  { %308 = vmatmul.mubr.msk.bf16.vlgmr.msra.gmra.mrb[0].mxu0 %vm115_vm1, %v91_v7  ;;  %316 = vmatmul.mubr.msk.bf16.vlgmr.msra.gmra.mrb[0].mxu1 %vm115_vm1, %v91_v7 }
 0x13a   :  { %v153_v10 = vpop.f32.mrb[0].mxu0  ;;  %v217_v12 = vpop.f32.mrb[0].mxu1 }
 0x13b   :  { %v154_v11 = vadd.f32 %v281_v8, %v153_v10  ;;  %v309_v13 = vpop.f32.mrb[1].mxu0  ;;  %v218_v14 = vadd.f32 %v285_v9, %v217_v12  ;;  %v317_v15 = vpop.f32.mrb[1].mxu1 }
 0x13c   :  { %v156_v16 = vpop.f32.mrb[2].mxu0  ;;  %v220_v19 = vpop.f32.mrb[2].mxu1 }
 0x13d   :  { %v293_v17 = vpack.c.bf16 %v154_v11, %v154_v11  ;;  %v157_v18 = vadd.f32 %v281_v8, %v156_v16  ;;  %v310_v20 = vpop.f32.mrb[3].mxu0  ;;  %v295_v21 = vpack.c.bf16 %v218_v14, %v218_v14  ;;  %v221_v22 = vadd.f32 %v285_v9, %v220_v19  ;;  %v318_v23 = vpop.f32.mrb[3].mxu1 }
 0x13f   :  { %v294_v24 = vpack.c.bf16 %v157_v18, %v157_v18  ;;  %233 = vst.msk [vmem:[#allocation11] sm:$0xf] %vm232_vm2, %v293_v17  ;;  %v296_v25 = vpack.c.bf16 %v221_v22, %v221_v22 }
 0x140   :  { %244 = vst.msk [vmem:[#allocation12] sm:$0xf] %vm243_vm3, %v295_v21 }
 0x141   :  { %234 = vst.msk [vmem:[#allocation11 + $0x4] sm:$0xf] %vm232_vm2, %v294_v24 }
 0x142   :  { %457 = shalt.err (!%p454_p2)
}
 0x143   :  { %s458_s20 = scalar_lea.hbm %s660_s5, 128 }
 0x144   :  { %p459_p3 = scmp.ne.s32.totalorder %s660_s5, %s458_s20  ;;  %p462_p4 = scmp.lt.u32.totalorder %s458_s20, %s660_s5 }
 0x146   :  { %p464_p5 = pnand %p462_p4, %p459_p3 }
 0x148   :  { %467 = shalt.err (!%p464_p5)
}
 0x149   :  { %257 = dma.vmem_to_hbm [thread:$0]  %s252_s13, 128, %s660_s5, [#allocation4], %s501_s7, %s501_s7, %s502_s8   ;;  %245 = vst.msk [vmem:[#allocation12 + $0x4] sm:$0xf] %vm243_vm3, %v296_v25 }
 0x14a   :  { %s468_s24 = scalar_lea.vmem %s616_s16, 128  ;;  %p473_p7 = scmp.lt.s32.totalorder %s616_s16, %s616_s16 }
 0x14b   :  { %p469_p6 = scmp.ne.s32.totalorder %s616_s16, %s468_s24  ;;  %p474_p8 = scmp.lt.s32.totalorder %s468_s24, %s468_s24 }
 0x14d   :  { %p475_p9 = por %p474_p8, %p473_p7 }
 0x14f   :  { %p476_p10 = pnand %p475_p9, %p469_p6 }
 0x151   :  { %479 = shalt.err (!%p476_p10)
}
 0x152   :  { %s480_s27 = scalar_lea.hbm %s661_s6, 128 }
 0x153   :  { %p481_p11 = scmp.ne.s32.totalorder %s661_s6, %s480_s27  ;;  %p484_p12 = scmp.lt.u32.totalorder %s480_s27, %s661_s6 }
 0x155   :  { %p486_p13 = pnand %p484_p12, %p481_p11 }
 0x157   :  { %489 = shalt.err (!%p486_p13)
}
 0x158   :  { %269 = dma.vmem_to_hbm [thread:$0]  %s616_s16, 128, %s661_s6, [#allocation13], %s501_s7, %s501_s7, %s502_s8  }
 0x159   :  { %496 = dma.done.wait [#allocation4], 128  }
 0x15a   :  { %497 = vsyncadd [#allocation4], 4294967168 }
 0x15b   :  { %498 = dma.done.wait [#allocation13], 128  }
 0x15c   :  { %499 = vsyncadd [#allocation13], 4294967168 }
 0x15d   :  { %276 = vsyncpa [#allocation3], 1 }
 0x15e   :  { %277 = vsyncpa [#allocation6], 1 }
 0x15f   :  { %278 = vsyncpa [#allocation9], 1 }
 0x160   :  { %279 = vsyncpa [#allocation4], 1 }
 0x161   :  { %280 = vsyncpa [#allocation13], 1 }

// kernel: decoder_layer.9
= control target key start
LH: loop header
LB: loop body
LE: loop exit
PB: predicated region body
PF: predicated region fallthrough
CT: control target
= control target key end

     0   :  { %s1850_s0 = inlined_call_operand.hbm [shape: bf16[2,8,32], index: 0, kind: input, shape index: {}]   ;;  %s1851_s1 = inlined_call_operand.hbm [shape: bf16[2,8,64], index: 1, kind: input, shape index: {}]   ;;  %s1852_s2 = inlined_call_operand.hbm [shape: s8[2,1,8,8], index: 2, kind: input, shape index: {}]   ;;  %s1853_s3 = inlined_call_operand.hbm [shape: bf16[2,8,32], index: 3, kind: output, shape index: {0}]   ;;  %s1854_s4 = inlined_call_operand.hbm [shape: f32[2,4,8,8], index: 4, kind: output, shape index: {1}]  }
   0x1   :  { %1864 = sst [smem:[#allocation19_spill]] %s1850_s0 }
   0x2   :  { %1865 = sst [smem:[#allocation20_spill]] %s1851_s1 }
   0x3   :  { %10 = vsyncpa [#allocation3], 0 }
   0x4   :  { %12 = vsyncpa [#allocation3 + $0x1], 0 }
   0x5   :  { %13 = vsyncpa [#allocation6], 0 }
   0x6   :  { %15 = vsyncpa [#allocation6 + $0x1], 0 }
   0x7   :  { %16 = vsyncpa [#allocation4], 0 }
   0x8   :  { %18 = vsyncpa [#allocation4 + $0x1], 0 }
   0x9   :  { %19 = vsyncpa [#allocation10], 0 }
   0xa   :  { %21 = vsyncpa [#allocation10 + $0x1], 0  ;;  %s1475_s15 = smov 0   ;;  %s1477_s16 = smov 0  }
   0xb   :  { %s1479_s17 = smov 0   ;;  %s1481_s18 = smov 0  }
   0xc   :  { %s1483_s19 = smov 0   ;;  %s1485_s20 = smov 0  }
   0xd LB: > { %1866 = sst [smem:[#allocation15_spill]] %s1418_s17  ;;  %s1506_s21 = sadd.s32 4294967295, %s1430_s20   ;;  %s1430_s20 = sphi %s1485_s20, %s27_s20   ;;  %s1426_s19 = sphi %s1483_s19, %s1899_s19   ;;  %s1422_s18 = sphi %s1481_s18, %s1898_s18   ;;  %s1418_s17 = sphi %s1479_s17, %s1894_s17   ;;  %s1414_s16 = sphi %s1477_s16, %s1897_s16   ;;  %s1410_s15 = sphi %s1475_s15, %s1896_s15  }
   0xe   : > { %1867 = sst [smem:[#allocation16_spill]] %s1430_s20  ;;  %s1008_s22 = sadd.s32 4294967294, %s1430_s20  }
   0xf   : > { %s39_s23 = sadd.s32 1, %s1426_s19  ;;  %s48_s24 = sadd.s32 1, %s1418_s17 }
  0x10   : > { %p41_p0 = scmp.ge.s32.totalorder %s39_s23, 2  ;;  %p55_p1 = scmp.ne.s32.totalorder %s1418_s17, %s1414_s16 }
  0x11   : > { %p56_p2 = scmp.eq.s32.totalorder %s1430_s20, 0  ;;  %p61_p3 = scmp.ne.s32.totalorder %s1414_s16, %s1410_s15 }
  0x12   : > { %s1901_s23 = smov (%p41_p0, %s39_s23), 0  ;;  %p62_p5 = scmp.eq.s32.totalorder %s1506_s21, 0 }
  0x13   : > { %1868 = sst [smem:[#allocation17_spill]] %s1901_s23  ;;  %p1518_p4 = por %p56_p2, %p55_p1 }
  0x14   : > { %s43_s26 = ssub.s32 %s1426_s19, %s1901_s23  ;;  %p141_p6 = scmp.eq.s32.totalorder %s1506_s21, 1 }
  0x15   : > { %p46_p7 = scmp.eq.s32.totalorder %s43_s26, 0  ;;  %p1526_p8 = por %p62_p5, %p61_p3 }
  0x16   : > { %p1530_p9 = por %p141_p6, %p55_p1  ;;  %p147_p10 = scmp.eq.s32.totalorder %s1008_s22, 1 }
  0x17   : > { %s1870_s27 = scalar_select %p1526_p8, 1, 0 }
  0x18   : > { %s1871_s28 = scalar_select %p1530_p9, 1, 0 }
  0x19   : > { %s1535_s29 = scalar_select %p46_p7, %s1418_s17, %s48_s24  }
  0x1a   : > { %p1537_p11 = por %p147_p10, %p61_p3  ;;  %p1141_p13 = scmp.lt.s32.totalorder %s1430_s20, 2 }
  0x1b   : > { %1872 = sst [smem:[#allocation18_spill]] %s1535_s29  ;;  %s1544_s5 = sand.u32 1, %s1418_s17  }
  0x1c   : > { %s1873_s30 = scalar_select %p1537_p11, 1, 0 }
  0x1d   : > { %s1855_s6 = sshll.u32 %s1544_s5, 2  ;;  %s1012_s7 = sshll.u32 %s1426_s19, 6 }
  0x1e   : > { %p1550_p0 = pnand %p1141_p13, %p1518_p4  ;;  %s214_s9 = sand.u32 1, %s1430_s20  }
  0x1f   : > { %s1875_s1 = sld [smem:[#allocation20_spill]]  ;;  %s218_s13 = scalar_lea.vmem [#allocation5], %s1855_s6 }
  0x20   : > { %s1874_s8 = scalar_select %p1550_p0, 1, 0 }
  0x21   : > { %s225_s14 = sshll.u32 %s218_s13, 4  ;;  %s1568_s22 = scalar_lea.sflag [#allocation6], %s214_s9  ;;  %s1565_s14 = int_to_ptr.vmem [resolvable:$true] %s225_s14 }
  0x22   : > { %p1574_p4 = pneg %p1550_p0 }
  0x25   : > { %s1560_s12 = scalar_lea.hbm %s1875_s1, %s1012_s7  ;;  %s1227_s11 = scalar_lea.hbm %s1875_s1, 128 }
  0x26   : > { %s1222_s24 = scalar_lea.hbm %s1560_s12, 64  ;;  %p1228_p7 = scmp.lt.u32.totalorder %s1560_s12, %s1875_s1 }
  0x27   : > { %p1223_p3 = scmp.ne.s32.totalorder %s1560_s12, %s1222_s24  ;;  %p1229_p10 = scmp.lt.u32.totalorder %s1227_s11, %s1222_s24 }
  0x28   : > { %p1231_p12 = scmp.lt.u32.totalorder %s1222_s24, %s1560_s12 }
  0x29   : > { %p1225_p5 = pnand %p1574_p4, %p1223_p3  ;;  %p1230_p13 = por %p1229_p10, %p1228_p7 }
  0x2b   : > { %p1226_p6 = pneg %p1225_p5  ;;  %p1232_p1 = por %p1231_p12, %p1230_p13 }
  0x2d   : > { %p1233_p2 = pnand %p1232_p1, %p1226_p6 }
  0x2f   : > { %1236 = shalt.err (!%p1233_p2)
}
  0x30   : > { %s1237_s9 = scalar_lea.vmem %s1565_s14, 64  ;;  %s1432_s26 = smov [#allocation5]  }
  0x31   : > { %p1238_p3 = scmp.ne.s32.totalorder %s1565_s14, %s1237_s9  ;;  %s1242_s10 = sshll.u32 %s1432_s26, 4  ;;  %s1243_s10 = int_to_ptr.vmem [resolvable:$false] %s1242_s10 }
  0x32   : > { %s1244_s6 = scalar_lea.vmem %s1243_s10, 128  ;;  %p1245_p9 = scmp.lt.s32.totalorder %s1565_s14, %s1243_s10 }
  0x33   : > { %p1240_p5 = pnand %p1238_p3, %p1574_p4  ;;  %p1246_p8 = scmp.lt.s32.totalorder %s1244_s6, %s1237_s9 }
  0x35   : > { %p1241_p11 = pneg %p1240_p5  ;;  %p1247_p7 = por %p1246_p8, %p1245_p9 }
  0x37   : > { %p1248_p10 = pnand %p1247_p7, %p1241_p11 }
  0x39   : > { %1251 = shalt.err (!%p1248_p10)
}
  0x3a   : > { %1130 = dma.hbm_to_vmem [thread:$0]  (!%p1550_p0), %s1560_s12, 64, %s1565_s14, %s1568_s22  }
  0x3b   : > { %p1877_p12 = scmp.lt.s32.totalorder %s1430_s20, 3  ;;  %p1878_p1 = scmp.ge.s32.totalorder %s1430_s20, 1 }
  0x3c   : > { %s1880_s0 = sld [smem:[#allocation19_spill]]  ;;  %s1881_s26 = sshll.u32 %s1544_s5, 2 }
  0x3d   : > { %p1602_p2 = pnand %p1878_p1, %p1877_p12  ;;  %s199_s10 = scalar_lea.vmem [#allocation2], %s1881_s26 }
  0x3e   : > { %s207_s6 = sshll.u32 %s199_s10, 4  ;;  %s196_s14 = scalar_lea.sflag [#allocation3], %s1544_s5  ;;  %s208_s6 = int_to_ptr.vmem [resolvable:$true] %s207_s6 }
  0x3f   : > { %s1879_s24 = scalar_select %p1602_p2, 1, 0 }
  0x42   : > { %s1611_s9 = scalar_lea.hbm %s1880_s0, %s1012_s7  ;;  %s1257_s7 = scalar_lea.hbm %s1880_s0, 128 }
  0x43   : > { %s1252_s1 = scalar_lea.hbm %s1611_s9, 64  ;;  %p1258_p6 = scmp.lt.u32.totalorder %s1611_s9, %s1880_s0 }
  0x44   : > { %p1253_p8 = scmp.ne.s32.totalorder %s1611_s9, %s1252_s1  ;;  %p1259_p13 = scmp.lt.u32.totalorder %s1257_s7, %s1252_s1 }
  0x45   : > { %p1261_p5 = scmp.lt.u32.totalorder %s1252_s1, %s1611_s9 }
  0x46   : > { %p1255_p9 = pnand %p1253_p8, %p1574_p4  ;;  %p1260_p3 = por %p1259_p13, %p1258_p6 }
  0x48   : > { %p1256_p11 = pneg %p1255_p9  ;;  %p1262_p7 = por %p1261_p5, %p1260_p3 }
  0x4a   : > { %p1263_p10 = pnand %p1262_p7, %p1256_p11 }
  0x4c   : > { %1266 = shalt.err (!%p1263_p10)
}
  0x4d   : > { %s1267_s26 = scalar_lea.vmem %s208_s6, 64  ;;  %s1433_s10 = smov [#allocation2]  }
  0x4e   : > { %p1268_p12 = scmp.ne.s32.totalorder %s208_s6, %s1267_s26  ;;  %s1272_s12 = sshll.u32 %s1433_s10, 4  ;;  %s1273_s12 = int_to_ptr.vmem [resolvable:$false] %s1272_s12 }
  0x4f   : > { %s1274_s23 = scalar_lea.vmem %s1273_s12, 128  ;;  %p1275_p9 = scmp.lt.s32.totalorder %s208_s6, %s1273_s12 }
  0x50   : > { %p1270_p1 = pnand %p1268_p12, %p1574_p4  ;;  %p1276_p2 = scmp.lt.s32.totalorder %s1274_s23, %s1267_s26 }
  0x52   : > { %p1271_p8 = pneg %p1270_p1  ;;  %p1277_p0 = por %p1276_p2, %p1275_p9 }
  0x54   : > { %p1278_p6 = pnand %p1277_p0, %p1271_p8 }
  0x56   : > { %1281 = shalt.err (!%p1278_p6)
}
  0x57   : > { %p1882_p13 = scmp.ne.s32.totalorder %s1874_s8, 0  ;;  %s1016_s1 = sshll.u32 %s1426_s19, 5 }
  0x58   : > { %s1883_s29 = sshll.u32 %s1544_s5, 1  ;;  %s242_s0 = scalar_lea.hbm %s1852_s2, %s1016_s1 }
  0x59   : > { %1127 = dma.hbm_to_vmem [thread:$0]  (!%p1882_p13), %s1611_s9, 64, %s208_s6, %s196_s14  }
  0x5a   : > { %s236_s7 = scalar_lea.vmem [#allocation7], %s1883_s29  ;;  %s1282_s12 = scalar_lea.hbm %s242_s0, 32 }
  0x5b   : > { %s244_s11 = sshll.u32 %s236_s7, 4  ;;  %p1283_p2 = scmp.ne.s32.totalorder %s242_s0, %s1282_s12  ;;  %s245_s11 = int_to_ptr.vmem [resolvable:$true] %s244_s11 }
  0x5c   : > { %s1287_s17 = scalar_lea.hbm %s1852_s2, 64  ;;  %p1288_p3 = scmp.lt.u32.totalorder %s242_s0, %s1852_s2 }
  0x5d   : > { %p1285_p0 = pnand %p1283_p2, %p1574_p4  ;;  %p1289_p5 = scmp.lt.u32.totalorder %s1287_s17, %s1282_s12 }
  0x5e   : > { %p1291_p10 = scmp.lt.u32.totalorder %s1282_s12, %s242_s0 }
  0x5f   : > { %p1286_p11 = pneg %p1285_p0  ;;  %p1290_p7 = por %p1289_p5, %p1288_p3 }
  0x61   : > { %p1292_p12 = por %p1291_p10, %p1290_p7 }
  0x63   : > { %p1293_p1 = pnand %p1292_p12, %p1286_p11 }
  0x65   : > { %1296 = shalt.err (!%p1293_p1)
}
  0x66   : > { %s1297_s5 = scalar_lea.vmem %s245_s11, 32  ;;  %s1434_s6 = smov [#allocation7]  }
  0x67   : > { %p1298_p8 = scmp.ne.s32.totalorder %s245_s11, %s1297_s5  ;;  %s1302_s14 = sshll.u32 %s1434_s6, 4  ;;  %s1303_s14 = int_to_ptr.vmem [resolvable:$false] %s1302_s14 }
  0x68   : > { %s1304_s1 = scalar_lea.vmem %s1303_s14, 64  ;;  %p1305_p2 = scmp.lt.s32.totalorder %s245_s11, %s1303_s14 }
  0x69   : > { %p1300_p9 = pnand %p1298_p8, %p1574_p4  ;;  %p1306_p0 = scmp.lt.s32.totalorder %s1304_s1, %s1297_s5 }
  0x6b   : > { %p1301_p6 = pneg %p1300_p9  ;;  %p1307_p13 = por %p1306_p0, %p1305_p2 }
  0x6d   : > { %p1308_p3 = pnand %p1307_p13, %p1301_p6 }
  0x6f   : > { %1311 = shalt.err (!%p1308_p3)
}
  0x70   : > { %p1884_p5 = scmp.ne.s32.totalorder %s1874_s8, 0  ;;  %p1885_p11 = scmp.ne.s32.totalorder %s1879_s24, 0 }
  0x71   : > { %s1656_s17 = sand.u32 (!%p1885_p11), 1, %s1414_s16   ;;  %p1886_p4 = scmp.ne.s32.totalorder (!%p1885_p11), %s1870_s27, 0 }
  0x72   : > { %1133 = dma.hbm_to_vmem [thread:$0]  (!%p1884_p5), %s242_s0, 32, %s245_s11, %s1568_s22  }
  0x73   : > { %253 = sbr.rel (%p1885_p11) target bundleno = 1574 (0x626), region = 32  ;;  %s1659_s20 = sshll.u32 (!%p1885_p11), %s1656_s17, 2 }
  0x74   : > { %s256_s25 = scalar_lea.sflag (!%p1885_p11), [#allocation3], %s1656_s17  ;;  %s259_s29 = scalar_lea.vmem (!%p1885_p11), [#allocation2], %s1659_s20 }
  0x7a   : > { %1393 = dma.done.wait (%p1886_p4), %s256_s25, 64  }
  0x7b   : > { %1395 = vsyncadd (%p1886_p4), %s256_s25, 4294967232  ;;  %s264_s0 = sand.u32 1, %s1506_s21   ;;  %s268_s22 = scalar_lea.vmem [#allocation5], %s1659_s20 }
  0x7c   : > { %s265_s8 = scalar_lea.sflag [#allocation6], %s264_s0 }
  0x7d   : > { %1397 = dma.done.wait (%p1886_p4), %s265_s8, 96  }
  0x7e   : > { %1399 = vsyncadd (%p1886_p4), %s265_s8, 4294967200  ;;  %v1435_v0 = vmov 0.0   ;;  %vm1436_vm0 = vmmov 0   ;;  %vm323_vm1 = vcmask 64512   ;;  %v319_v1 = vld [vmem:[%s268_s22] sm:$0xf] }
  0x7f   : > { %1066 = vmatprep.subr.bf16.mxu0 %v1435_v0  ;;  %1068 = vmatprep.mubr.msk.bf16.mxu0 %vm1436_vm0, %v1435_v0  ;;  %v328_v2 = vsel %vm323_vm1, %v319_v1, 0  ;;  %v318_v3 = vld [vmem:[%s259_s29] sm:$0xf]  ;;  %s1020_s21 = sshll.u32 %s1656_s17, 1  ;;  %v1692_v14 = vcombine.low %v319_v1, %v319_v1  ;;  %s1437_s24 = smov 96   ;;  %vm392_vm3 = vcmask 1043456  }
  0x80   : > { %1072 = vmatprep.subr.bf16.mxu1 %v1435_v0  ;;  %1074 = vmatprep.mubr.msk.bf16.mxu1 %vm1436_vm0, %v1435_v0  ;;  %s277_s27 = scalar_lea.vmem [#allocation7], %s1020_s21  ;;  %s1438_s7 = smov 120   ;;  %v1026_v15 = vcombine.low %v318_v3, %v318_v3  ;;  %vm438_vm4 = vcmask 60416  }
  0x81   : > { %1067 = vmatpush3.bf16.xpose.msra.mxu0 %v328_v2  ;;  %v320_v4 = vld [vmem:[%s277_s27] sm:$0x3]  ;;  %387 = vrot.lane.b32.xlu1 %v1692_v14, %s1437_s24  ;;  %s1439_s11 = smov 112   ;;  %s1440_s13 = smov 104  }
  0x82   : > { %1084 = vmatprep.subr.bf16.mxu0 %v1435_v0  ;;  %v321_v5 = vunpack.c.0.s8 %v320_v4  ;;  %s1022_s10 = sshll.u32 %s1656_s17, 5  ;;  %s1722_s26 = scalar_lea.vmem [#allocation8], %s1659_s20 }
  0x83   : > { %s1703_s12 = scalar_lea.vmem [#allocation9], %s1022_s10  ;;  %s1441_s23 = smov 88  }
  0x84   : > { %vm1685_vm2 = vcmp.ne.s32.totalorder %v321_v5, 0  ;;  %s1442_s9 = smov 72   ;;  %s1443_s5 = smov 80  }
  0x85   : > { %445 = vrot.lane.b32.xlu1 %v1692_v14, %s1438_s7  ;;  %s1444_s6 = smov 8   ;;  %s1049_s14 = sshll.u32 %s1422_s18, 9 }
  0x86   : > { %s846_s1 = sshll.u32 %s1703_s12, 4  ;;  %s1764_s29 = scalar_lea.hbm %s1854_s4, %s1049_s14  ;;  %s1766_s1 = int_to_ptr.vmem [resolvable:$true] %s846_s1 }
  0x87   : > { %s1445_s0 = smov 16   ;;  %s818_s8 = scalar_lea.sflag [#allocation10], %s1656_s17 }
  0x88   : > { %1069 = vmatmul.mubr.msk.bf16.vlgmr.msra.gmra.mrb[0].mxu0 %vm323_vm1, %v318_v3  ;;  %s1312_s22 = scalar_lea.vmem %s1766_s1, 512  ;;  %p1889_p7 = scmp.ne.s32.totalorder %s1871_s28, 0 }
  0x89   : > { %1086 = vmatprep.mubr.msk.bf16.mxu0 %vm1436_vm0, %v1435_v0  ;;  %568 = vrot.lane.b32.xlu1 %v1692_v14, %s1439_s11  ;;  %p1313_p13 = scmp.ne.s32.totalorder %s1766_s1, %s1312_s22  ;;  %s1446_s21 = smov [#allocation9]  }
  0x8a   : > { %s1316_s27 = sshll.u32 %s1446_s21, 4  ;;  %s1317_s27 = int_to_ptr.vmem [resolvable:$false] %s1316_s27 }
  0x8b   : > { %p1314_p10 = pnand %p1313_p13, %p1889_p7  ;;  %s1318_s24 = scalar_lea.vmem %s1317_s27, 1024 }
  0x8c   : > { %p1319_p1 = scmp.lt.s32.totalorder %s1766_s1, %s1317_s27  ;;  %p1320_p8 = scmp.lt.s32.totalorder %s1318_s24, %s1312_s22 }
  0x8d   : > { %566 = vrot.lane.b32.xlu1 %v1026_v15, %s1439_s11  ;;  %p1315_p12 = pneg %p1314_p10 }
  0x8e   : > { %p1321_p9 = por %p1320_p8, %p1319_p1 }
  0x90   : > { %p1322_p6 = pnand %p1321_p9, %p1315_p12 }
  0x91   : > { %691 = vrot.lane.b32.xlu1 %v1692_v14, %s1440_s13 }
  0x95   : > { %689 = vrot.lane.b32.xlu1 %v1026_v15, %s1440_s13 }
  0xf3   : > { %v388_v21 = vpop.permute.xlu1 %387 }
  0xf4   : > { %v394_v22 = vsel %vm392_vm3, %v388_v21, 0 }
  0xf5   : > { %1073 = vmatpush3.bf16.msra.mxu1 %v394_v22 }
  0xf6   : > { %1078 = vmatprep.subr.bf16.mxu1 %v1435_v0 }
  0xf7   : > { %v446_v25 = vpop.permute.xlu1 %445 }
  0xf8   : > { %v451_v27 = vsel %vm323_vm1, %v446_v25, 0 }
  0xfb   : > { %v569_v29 = vpop.permute.xlu1 %568 }
  0xfc   : > { %v574_v32 = vsel %vm323_vm1, %v569_v29, 0 }
  0xff   : > { %v567_v31 = vpop.permute.xlu1 %566 }
 0x103   : > { %v692_v33 = vpop.permute.xlu1 %691 }
 0x104   : > { %v697_v34 = vsel %vm323_vm1, %v692_v33, 0 }
 0x107   : > { %v690_v35 = vpop.permute.xlu1 %689 }
 0x15b   : > { %v364_v6 = vpop.f32.mrb[0].mxu0 }
 0x15c   : > { %v370_v8 = vmul.f32 0.35355338, %v364_v6  ;;  %v1070_v9 = vpop.f32.mrb[1].mxu0 }
 0x15d   : > { %v367_v10 = vpop.f32.mrb[2].mxu0 }
 0x15e   : > { %v1071_v11 = vpop.f32.mrb[3].mxu0  ;;  %v371_v12 = vsel %vm1685_vm2, %v370_v8, -1e+09 }
 0x15f   : > { %v372_v13 = vsel %vm323_vm1, %v371_v12, -inf }
 0x160   : > { %373 = vmax.xlane.f32.xlu0 %v372_v13 }
 0x1ed   : > { %v374_v16 = vpop.xlane.xlu0 %373 }
 0x1ee   : > { %v375_v17 = vsub.f32 %v371_v12, %v374_v16 }
 0x1f0   : > { %v376_v18 = vmul.f32 1.442695, %v375_v17 }
 0x1f2   : > { %1206 = vpow2.f32 %v376_v18 }
 0x1fc   : > { %v1207_v19 = vpop.eup %1206 }
 0x1fd   : > { %v378_v20 = vsel %vm323_vm1, %v1207_v19, 0.0 }
 0x1fe   : > { %379 = vadd.xlane.f32.xlu0 %v378_v20 }
 0x214   : > { %443 = vrot.lane.b32.xlu0 %v1026_v15, %s1438_s7 }
 0x28b   : > { %v380_v23 = vpop.xlane.xlu0 %379 }
 0x28c   : > { %1208 = vrcp.f32 %v380_v23 }
 0x28f   : > { %v444_v30 = vpop.permute.xlu0 %443 }
 0x296   : > { %v1209_v24 = vpop.eup %1208 }
 0x297   : > { %v382_v26 = vmul.f32 %v1209_v24, %v1207_v19 }
 0x299   : > { %v383_v28 = vpack.c.bf16 %v382_v26, %v382_v26  ;;  %436 = vst.msk [vmem:[%s1703_s12] sm:$0xff] %vm323_vm1, %v382_v26 }
 0x29b   : > { %1075 = vmatmul.mubr.msk.bf16.vlgmr.msra.gmra.mrb[0].mxu1 %vm323_vm1, %v383_v28 }
 0x29c   : > { %1079 = vmatpush3.bf16.xpose.msra.mxu1 %v451_v27  ;;  %1080 = vmatprep.mubr.msk.bf16.mxu1 %vm1436_vm0, %v1435_v0 }
 0x29d   : > { %1090 = vmatprep.subr.bf16.mxu1 %v1435_v0 }
 0x2a3   : > { %1081 = vmatmul.mubr.msk.bf16.vlgmr.msra.gmra.mrb[4].mxu1 %vm323_vm1, %v444_v30 }
 0x2a4   : > { %1091 = vmatpush3.bf16.xpose.msra.mxu1 %v574_v32  ;;  %1092 = vmatprep.mubr.msk.bf16.mxu1 %vm1436_vm0, %v1435_v0 }
 0x2a5   : > { %1102 = vmatprep.subr.bf16.mxu1 %v1435_v0 }
 0x2ab   : > { %1093 = vmatmul.mubr.msk.bf16.vlgmr.msra.gmra.mrb[8].mxu1 %vm323_vm1, %v567_v31 }
 0x2ac   : > { %1103 = vmatpush3.bf16.xpose.msra.mxu1 %v697_v34  ;;  %1104 = vmatprep.mubr.msk.bf16.mxu1 %vm1436_vm0, %v1435_v0 }
 0x2b3   : > { %1105 = vmatmul.mubr.msk.bf16.vlgmr.msra.gmra.mrb[12].mxu1 %vm323_vm1, %v690_v35 }
 0x36e   : > { %v430_v36 = vpop.f32.mrb[0].mxu1 }
 0x36f   : > { %v437_v37 = vpack.c.bf16 %v430_v36, %v430_v36  ;;  %v1076_v38 = vpop.f32.mrb[1].mxu1 }
 0x370   : > { %v433_v39 = vpop.f32.mrb[2].mxu1 }
 0x371   : > { %439 = vst.msk [vmem:[%s1722_s26] sm:$0xf] %vm438_vm4, %v437_v37  ;;  %v1077_v40 = vpop.f32.mrb[3].mxu1 }
 0x376   : > { %v487_v41 = vpop.f32.mrb[4].mxu1 }
 0x377   : > { %v493_v42 = vmul.f32 0.35355338, %v487_v41  ;;  %v1082_v43 = vpop.f32.mrb[5].mxu1 }
 0x378   : > { %v490_v44 = vpop.f32.mrb[6].mxu1 }
 0x379   : > { %v1083_v45 = vpop.f32.mrb[7].mxu1  ;;  %v494_v46 = vsel %vm1685_vm2, %v493_v42, -1e+09 }
 0x37a   : > { %v495_v47 = vsel %vm323_vm1, %v494_v46, -inf }
 0x37b   : > { %496 = vmax.xlane.f32.xlu1 %v495_v47 }
 0x37e   : > { %v610_v48 = vpop.f32.mrb[8].mxu1 }
 0x37f   : > { %v616_v49 = vmul.f32 0.35355338, %v610_v48  ;;  %v1094_v50 = vpop.f32.mrb[9].mxu1 }
 0x380   : > { %v613_v51 = vpop.f32.mrb[10].mxu1 }
 0x381   : > { %v1095_v52 = vpop.f32.mrb[11].mxu1  ;;  %v617_v53 = vsel %vm1685_vm2, %v616_v49, -1e+09 }
 0x382   : > { %v618_v54 = vsel %vm323_vm1, %v617_v53, -inf }
 0x383   : > { %619 = vmax.xlane.f32.xlu0 %v618_v54 }
 0x386   : > { %v733_v55 = vpop.f32.mrb[12].mxu1 }
 0x387   : > { %v739_v56 = vmul.f32 0.35355338, %v733_v55  ;;  %v1106_v57 = vpop.f32.mrb[13].mxu1 }
 0x388   : > { %v736_v58 = vpop.f32.mrb[14].mxu1 }
 0x389   : > { %v1107_v59 = vpop.f32.mrb[15].mxu1  ;;  %v740_v60 = vsel %vm1685_vm2, %v739_v56, -1e+09 }
 0x38a   : > { %v741_v61 = vsel %vm323_vm1, %v740_v60, -inf }
 0x38b   : > { %742 = vmax.xlane.f32.xlu1 %v741_v61 }
 0x39c   : > { %507 = vrot.lane.b32.xlu1 %v1692_v14, %s1441_s23 }
 0x408   : > { %v497_v62 = vpop.xlane.xlu1 %496 }
 0x409   : > { %v498_v63 = vsub.f32 %v494_v46, %v497_v62 }
 0x40b   : > { %v499_v1 = vmul.f32 1.442695, %v498_v63 }
 0x40d   : > { %1210 = vpow2.f32 %v499_v1 }
 0x410   : > { %v620_v2 = vpop.xlane.xlu0 %619 }
 0x411   : > { %v621_v3 = vsub.f32 %v617_v53, %v620_v2 }
 0x413   : > { %v622_v4 = vmul.f32 1.442695, %v621_v3 }
 0x415   : > { %1212 = vpow2.f32 %v622_v4 }
 0x417   : > { %v1211_v5 = vpop.eup %1210 }
 0x418   : > { %v743_v6 = vpop.xlane.xlu1 %742  ;;  %v501_v8 = vsel %vm323_vm1, %v1211_v5, 0.0 }
 0x419   : > { %v744_v7 = vsub.f32 %v740_v60, %v743_v6  ;;  %502 = vadd.xlane.f32.xlu0 %v501_v8 }
 0x41b   : > { %v745_v9 = vmul.f32 1.442695, %v744_v7 }
 0x41c   : > { %v508_v10 = vpop.permute.xlu1 %507 }
 0x41d   : > { %1214 = vpow2.f32 %v745_v9  ;;  %v513_v11 = vsel %vm392_vm3, %v508_v10, 0 }
 0x41e   : > { %1085 = vmatpush3.bf16.msra.mxu0 %v513_v11 }
 0x41f   : > { %v1213_v12 = vpop.eup %1212  ;;  %1096 = vmatprep.subr.bf16.mxu0 %v1435_v0 }
 0x420   : > { %v624_v13 = vsel %vm323_vm1, %v1213_v12, 0.0 }
 0x421   : > { %625 = vadd.xlane.f32.xlu1 %v624_v13 }
 0x427   : > { %v1215_v15 = vpop.eup %1214 }
 0x428   : > { %v747_v16 = vsel %vm323_vm1, %v1215_v15, 0.0 }
 0x429   : > { %748 = vadd.xlane.f32.xlu0 %v747_v16 }
 0x432   : > { %753 = vrot.lane.b32.xlu1 %v1692_v14, %s1442_s9 }
 0x43f   : > { %630 = vrot.lane.b32.xlu0 %v1692_v14, %s1443_s5 }
 0x4a6   : > { %v503_v17 = vpop.xlane.xlu0 %502 }
 0x4a7   : > { %1216 = vrcp.f32 %v503_v17 }
 0x4ae   : > { %v626_v18 = vpop.xlane.xlu1 %625 }
 0x4af   : > { %1218 = vrcp.f32 %v626_v18 }
 0x4b1   : > { %v1217_v19 = vpop.eup %1216 }
 0x4b2   : > { %v505_v20 = vmul.f32 %v1217_v19, %v1211_v5  ;;  %v754_v25 = vpop.permute.xlu1 %753 }
 0x4b3   : > { %v759_v28 = vsel %vm392_vm3, %v754_v25, 0 }
 0x4b4   : > { %1029 = vst.msk [vmem:[%s1703_s12 + $0x8] sm:$0xff] %vm323_vm1, %v505_v20  ;;  %v506_v21 = vpack.c.bf16 %v505_v20, %v505_v20 }
 0x4b6   : > { %v749_v22 = vpop.xlane.xlu0 %748  ;;  %1087 = vmatmul.mubr.msk.bf16.vlgmr.msra.gmra.mrb[4].mxu0 %vm323_vm1, %v506_v21 }
 0x4b7   : > { %1220 = vrcp.f32 %v749_v22  ;;  %1098 = vmatprep.mubr.msk.bf16.mxu0 %vm1436_vm0, %v1435_v0 }
 0x4b9   : > { %v1219_v23 = vpop.eup %1218 }
 0x4ba   : > { %v628_v14 = vmul.f32 %v1219_v23, %v1213_v12  ;;  %v631_v24 = vpop.permute.xlu0 %630 }
 0x4bb   : > { %v636_v26 = vsel %vm392_vm3, %v631_v24, 0 }
 0x4bc   : > { %1033 = vst.msk [vmem:[%s1703_s12 + $0x10] sm:$0xff] %vm323_vm1, %v628_v14  ;;  %1097 = vmatpush3.bf16.msra.mxu0 %v636_v26  ;;  %v629_v27 = vpack.c.bf16 %v628_v14, %v628_v14 }
 0x4bd   : > { %1108 = vmatprep.subr.bf16.mxu0 %v1435_v0 }
 0x4bf   : > { %1099 = vmatmul.mubr.msk.bf16.vlgmr.msra.gmra.mrb[8].mxu0 %vm323_vm1, %v629_v27 }
 0x4c0   : > { %1109 = vmatpush3.bf16.msra.mxu0 %v759_v28  ;;  %1110 = vmatprep.mubr.msk.bf16.mxu0 %vm1436_vm0, %v1435_v0 }
 0x4c1   : > { %v1221_v29 = vpop.eup %1220 }
 0x4c2   : > { %v751_v30 = vmul.f32 %v1221_v29, %v1215_v15 }
 0x4c4   : > { %1037 = vst.msk [vmem:[%s1703_s12 + $0x18] sm:$0xff] %vm323_vm1, %v751_v30  ;;  %v752_v31 = vpack.c.bf16 %v751_v30, %v751_v30 }
 0x4c7   : > { %1111 = vmatmul.mubr.msk.bf16.vlgmr.msra.gmra.mrb[12].mxu0 %vm323_vm1, %v752_v31 }
 0x589   : > { %v549_v32 = vpop.f32.mrb[4].mxu0 }
 0x58a   : > { %v1046_v33 = vpack.c.bf16 %v549_v32, %v549_v32  ;;  %v1088_v34 = vpop.f32.mrb[5].mxu0 }
 0x58b   : > { %v552_v35 = vpop.f32.mrb[6].mxu0 }
 0x58c   : > { %561 = vrot.lane.b32.xlu1 %v1046_v33, %s1444_s6  ;;  %v1089_v36 = vpop.f32.mrb[7].mxu0 }
 0x592   : > { %v672_v37 = vpop.f32.mrb[8].mxu0 }
 0x593   : > { %v1047_v0 = vpack.c.bf16 %v672_v37, %v672_v37  ;;  %v1100_v38 = vpop.f32.mrb[9].mxu0 }
 0x594   : > { %v675_v39 = vpop.f32.mrb[10].mxu0 }
 0x595   : > { %684 = vrot.lane.b32.xlu0 %v1047_v0, %s1445_s0  ;;  %v1101_v40 = vpop.f32.mrb[11].mxu0 }
 0x596   : > { %1325 = shalt.err (!%p1322_p6)
}
 0x597   : > { %s1326_s7 = scalar_lea.hbm %s1764_s29, 512  ;;  %s1330_s10 = scalar_lea.hbm %s1854_s4, 1024 }
 0x598   : > { %p1327_p2 = scmp.ne.s32.totalorder %s1764_s29, %s1326_s7  ;;  %p1331_p5 = scmp.lt.u32.totalorder %s1764_s29, %s1854_s4 }
 0x599   : > { %p1332_p11 = scmp.lt.u32.totalorder %s1330_s10, %s1326_s7  ;;  %p1334_p13 = scmp.lt.u32.totalorder %s1326_s7, %s1764_s29 }
 0x59a   : > { %p1328_p0 = pnand %p1327_p2, %p1889_p7 }
 0x59b   : > { %p1333_p4 = por %p1332_p11, %p1331_p5 }
 0x59c   : > { %p1329_p3 = pneg %p1328_p0 }
 0x59d   : > { %p1335_p10 = por %p1334_p13, %p1333_p4 }
 0x59f   : > { %p1336_p12 = pnand %p1335_p10, %p1329_p3 }
 0x5a1   : > { %1339 = shalt.err (!%p1336_p12)
}
 0x5a2   : > { %s1447_s9 = smov 128   ;;  %v795_v41 = vpop.f32.mrb[12].mxu0  ;;  %s1448_s5 = smov 24   ;;  %vm564_vm5 = vcmask 126016   ;;  %vm687_vm6 = vcmask 191616   ;;  %vm810_vm7 = vcmask 257216  }
 0x5a3   : > { %1121 = dma.vmem_to_hbm [thread:$0]  (%p1889_p7), %s1766_s1, 512, %s1764_s29, %s818_s8, %s1447_s9, %s1447_s9, %s1444_s6   ;;  %v1048_v42 = vpack.c.bf16 %v795_v41, %v795_v41  ;;  %v1112_v43 = vpop.f32.mrb[13].mxu0 }
 0x5a4   : > { %v798_v44 = vpop.f32.mrb[14].mxu0  ;;  %s1041_s14 = sshll.u32 %s1422_s18, 6  ;;  %s832_s20 = sshll.u32 %s1722_s26, 4  ;;  %s1802_s20 = int_to_ptr.vmem [resolvable:$true] %s832_s20 }
 0x5a5   : > { %807 = vrot.lane.b32.xlu1 %v1048_v42, %s1448_s5  ;;  %v1113_v45 = vpop.f32.mrb[15].mxu0  ;;  %s1800_s25 = scalar_lea.hbm %s1853_s3, %s1041_s14  ;;  %s813_s29 = scalar_lea.sflag [#allocation4], %s1656_s17 }
 0x5a6   : > { %s1340_s0 = scalar_lea.vmem %s1802_s20, 64  ;;  %s1449_s18 = smov [#allocation8]  }
 0x5a7   : > { %p1341_p1 = scmp.ne.s32.totalorder %s1802_s20, %s1340_s0  ;;  %s1344_s8 = sshll.u32 %s1449_s18, 4  ;;  %s1345_s8 = int_to_ptr.vmem [resolvable:$false] %s1344_s8 }
 0x5a8   : > { %s1346_s22 = scalar_lea.vmem %s1345_s8, 128  ;;  %p1347_p6 = scmp.lt.s32.totalorder %s1802_s20, %s1345_s8 }
 0x5a9   : > { %p1342_p8 = pnand %p1341_p1, %p1889_p7  ;;  %p1348_p2 = scmp.lt.s32.totalorder %s1346_s22, %s1340_s0 }
 0x5ab   : > { %p1343_p9 = pneg %p1342_p8  ;;  %p1349_p0 = por %p1348_p2, %p1347_p6 }
 0x5ad   : > { %p1350_p3 = pnand %p1349_p0, %p1343_p9 }
 0x5fe   : > { %v562_v46 = vpop.permute.xlu1 %561 }
 0x5ff   : > { %565 = vst.msk [vmem:[%s1722_s26] sm:$0xf] %vm564_vm5, %v562_v46 }
 0x607   : > { %v685_v47 = vpop.permute.xlu0 %684 }
 0x608   : > { %688 = vst.msk [vmem:[%s1722_s26] sm:$0xf] %vm687_vm6, %v685_v47 }
 0x617   : > { %v808_v48 = vpop.permute.xlu1 %807 }
 0x618   : > { %811 = vst.msk [vmem:[%s1722_s26] sm:$0xf] %vm810_vm7, %v808_v48 }
 0x619   : > { %1353 = shalt.err (!%p1350_p3)
}
 0x61a   : > { %s1354_s17 = scalar_lea.hbm %s1800_s25, 64  ;;  %s1358_s27 = scalar_lea.hbm %s1853_s3, 128 }
 0x61b   : > { %p1355_p5 = scmp.ne.s32.totalorder %s1800_s25, %s1354_s17  ;;  %p1359_p13 = scmp.lt.u32.totalorder %s1800_s25, %s1853_s3 }
 0x61c   : > { %p1360_p10 = scmp.lt.u32.totalorder %s1358_s27, %s1354_s17  ;;  %p1362_p1 = scmp.lt.u32.totalorder %s1354_s17, %s1800_s25 }
 0x61d   : > { %p1356_p11 = pnand %p1355_p5, %p1889_p7 }
 0x61e   : > { %p1361_p12 = por %p1360_p10, %p1359_p13 }
 0x61f   : > { %p1357_p4 = pneg %p1356_p11 }
 0x620   : > { %p1363_p8 = por %p1362_p1, %p1361_p12 }
 0x622   : > { %p1364_p9 = pnand %p1363_p8, %p1357_p4 }
 0x624   : > { %1367 = shalt.err (!%p1364_p9)
}
 0x625   : > { %1120 = dma.vmem_to_hbm [thread:$0]  (%p1889_p7), %s1802_s20, 64, %s1800_s25, %s813_s29  }
 0x626 PF: > { %s1890_s11 = sld [smem:[#allocation16_spill]]  ;;  %s861_s13 = sand.u32 1, %s1410_s15  }
 0x627   : > { %p1891_p6 = scmp.ne.s32.totalorder %s1873_s30, 0  ;;  %s862_s10 = scalar_lea.sflag [#allocation4], %s861_s13 }
 0x62c   : > { %p1892_p2 = scmp.ge.s32.totalorder %s1890_s11, 2 }
 0x62e   : > { %p1135_p0 = pnand %p1892_p2, %p1891_p6 }
 0x630   : > { %1401 = dma.done.wait (!%p1135_p0), %s862_s10, 64  }
 0x631   : > { %1403 = vsyncadd (!%p1135_p0), %s862_s10, 4294967232  ;;  %s871_s12 = scalar_lea.sflag [#allocation10], %s861_s13 }
 0x632   : > { %1405 = dma.done.wait (!%p1135_p0), %s871_s12, 512  }
 0x633   : > { %1407 = vsyncadd (!%p1135_p0), %s871_s12, 4294966784  ;;  %s27_s20 = sadd.s32 1, %s1890_s11   ;;  %s1893_s28 = sld [smem:[#allocation15_spill]] }
 0x634   : > { %p24_p3 = scmp.ge.s32.totalorder %s27_s20, 4   ;;  %s1894_s17 = sld [smem:[#allocation18_spill]] }
 0x635   : > { %s1895_s23 = sld [smem:[#allocation17_spill]]  ;;  %s1896_s15 = smov %s1414_s16 }
 0x636   : > { %s1898_s18 = smov %s1426_s19  ;;  %26 = sbr.rel (!%p24_p3) target bundleno = 13 (0xd), region = 121 }
 0x639   : > { %s1897_s16 = smov %s1893_s28 }
 0x63b   : > { %s1899_s19 = smov %s1895_s23 }
 0x63d   :  { %876 = vsyncpa [#allocation3], 1 }
 0x63e   :  { %878 = vsyncpa [#allocation3 + $0x1], 1 }
 0x63f   :  { %879 = vsyncpa [#allocation6], 1 }
 0x640   :  { %881 = vsyncpa [#allocation6 + $0x1], 1 }
 0x641   :  { %882 = vsyncpa [#allocation4], 1 }
 0x642   :  { %884 = vsyncpa [#allocation4 + $0x1], 1 }
 0x643   :  { %885 = vsyncpa [#allocation10], 1 }
 0x644   :  { %887 = vsyncpa [#allocation10 + $0x1], 1 }

// kernel: decoder_layer.11
= control target key start
LH: loop header
LB: loop body
LE: loop exit
PB: predicated region body
PF: predicated region fallthrough
CT: control target
= control target key end

     0   :  { %8 = vsyncpa [#allocation3], 0  ;;  %s364_s0 = inlined_call_operand.hbm [shape: f32[16,32], index: 0, kind: input, shape index: {}]   ;;  %s365_s1 = inlined_call_operand.hbm [shape: bf16[32,32], index: 1, kind: input, shape index: {}]   ;;  %s366_s2 = inlined_call_operand.hbm [shape: f32[1,32], index: 2, kind: input, shape index: {}]   ;;  %s367_s3 = inlined_call_operand.hbm [shape: bf16[16,32], index: 3, kind: output, shape index: {}]  }
   0x1   :  { %9 = vsyncpa [#allocation6], 0 }
   0x2   :  { %10 = vsyncpa [#allocation4], 0  ;;  %s280_s12 = smov [#allocation5]   ;;  %s186_s16 = scalar_lea.hbm %s365_s1, 256 }
   0x3   :  { %s28_s13 = sshll.u32 %s280_s12, 4  ;;  %p187_p0 = scmp.ne.s32.totalorder %s365_s1, %s186_s16  ;;  %s29_s13 = int_to_ptr.vmem [resolvable:$true] %s28_s13 }
   0x4   :  { %p190_p1 = scmp.lt.u32.totalorder %s186_s16, %s365_s1 }
   0x6   :  { %p192_p2 = pnand %p190_p1, %p187_p0 }
   0x8   :  { %195 = shalt.err (!%p192_p2)
}
   0x9   :  { %s196_s21 = scalar_lea.vmem %s29_s13, 256  ;;  %p201_p4 = scmp.lt.s32.totalorder %s29_s13, %s29_s13 }
   0xa   :  { %p197_p3 = scmp.ne.s32.totalorder %s29_s13, %s196_s21  ;;  %p202_p5 = scmp.lt.s32.totalorder %s196_s21, %s196_s21 }
   0xc   :  { %p203_p6 = por %p202_p5, %p201_p4 }
   0xe   :  { %p204_p7 = pnand %p203_p6, %p197_p3 }
  0x10   :  { %207 = shalt.err (!%p204_p7)
}
  0x11   :  { %s281_s22 = smov 64   ;;  %s282_s23 = smov 4  }
  0x12   :  { %34 = dma.hbm_to_vmem [thread:$0]  %s365_s1, 256, %s29_s13, [#allocation6], %s281_s22, %s281_s22, %s282_s23  }
  0x13   :  { %s283_s26 = smov [#allocation2]   ;;  %s208_s30 = scalar_lea.hbm %s364_s0, 256 }
  0x14   :  { %s16_s27 = sshll.u32 %s283_s26, 4  ;;  %p209_p8 = scmp.ne.s32.totalorder %s364_s0, %s208_s30  ;;  %s17_s27 = int_to_ptr.vmem [resolvable:$true] %s16_s27 }
  0x15   :  { %p212_p9 = scmp.lt.u32.totalorder %s208_s30, %s364_s0 }
  0x17   :  { %p214_p10 = pnand %p212_p9, %p209_p8 }
  0x19   :  { %217 = shalt.err (!%p214_p10)
}
  0x1a   :  { %s218_s8 = scalar_lea.vmem %s17_s27, 256  ;;  %p223_p12 = scmp.lt.s32.totalorder %s17_s27, %s17_s27 }
  0x1b   :  { %p219_p11 = scmp.ne.s32.totalorder %s17_s27, %s218_s8  ;;  %p224_p13 = scmp.lt.s32.totalorder %s218_s8, %s218_s8 }
  0x1d   :  { %p225_p0 = por %p224_p13, %p223_p12 }
  0x1f   :  { %p226_p1 = pnand %p225_p0, %p219_p11 }
  0x21   :  { %229 = shalt.err (!%p226_p1)
}
  0x22   :  { %s284_s1 = smov 128   ;;  %s285_s9 = smov 8  }
  0x23   :  { %22 = dma.hbm_to_vmem [thread:$0]  %s364_s0, 256, %s17_s27, [#allocation3], %s284_s1, %s284_s1, %s285_s9  }
  0x24   :  { %s286_s12 = smov [#allocation7]   ;;  %s230_s16 = scalar_lea.hbm %s366_s2, 16 }
  0x25   :  { %s41_s13 = sshll.u32 %s286_s12, 4  ;;  %p231_p2 = scmp.ne.s32.totalorder %s366_s2, %s230_s16  ;;  %s42_s13 = int_to_ptr.vmem [resolvable:$true] %s41_s13 }
  0x26   :  { %p234_p3 = scmp.lt.u32.totalorder %s230_s16, %s366_s2 }
  0x28   :  { %p236_p4 = pnand %p234_p3, %p231_p2 }
  0x2a   :  { %239 = shalt.err (!%p236_p4)
}
  0x2b   :  { %s240_s21 = scalar_lea.vmem %s42_s13, 16  ;;  %s244_s0 = scalar_lea.vmem %s42_s13, 32 }
  0x2c   :  { %p241_p5 = scmp.ne.s32.totalorder %s42_s13, %s240_s21  ;;  %p245_p6 = scmp.lt.s32.totalorder %s42_s13, %s42_s13 }
  0x2d   :  { %p246_p7 = scmp.lt.s32.totalorder %s244_s0, %s240_s21 }
  0x2f   :  { %p247_p8 = por %p246_p7, %p245_p6 }
  0x31   :  { %p248_p9 = pnand %p247_p8, %p241_p5 }
  0x33   :  { %251 = shalt.err (!%p248_p9)
}
  0x34   :  { %44 = dma.hbm_to_vmem [thread:$0]  %s366_s2, 16, %s42_s13, [#allocation6]  }
  0x35   :  { %274 = dma.done.wait [#allocation3], 256  }
  0x36   :  { %275 = vsyncadd [#allocation3], 4294967040 }
  0x37   :  { %276 = dma.done.wait [#allocation6], 272  }
  0x38   :  { %277 = vsyncadd [#allocation6], 4294967024  ;;  %v287_v0 = vmov 0.0   ;;  %vm288_vm0 = vmmov 0   ;;  %v184_v1 = vld [vmem:[#allocation5] sm:$0xff]   ;;  %v185_v2 = vld [vmem:[#allocation5 + $0x8] sm:$0xff]  }
  0x39   :  { %166 = vmatprep.subr.bf16.mxu0 %v287_v0  ;;  %170 = vmatprep.mubr.msk.bf16.mxu0 %vm288_vm0, %v287_v0  ;;  %v55_v3 = vld [vmem:[#allocation2] sm:$0xff]  ;;  %v56_v4 = vld [vmem:[#allocation2 + $0x8] sm:$0xff]  ;;  %vm81_vm1 = vcmask 261120   ;;  %vm134_vm2 = vcmask 257024   ;;  %s289_s2 = smov [#allocation8]  }
  0x3a   :  { %167 = vmatpush3.bf16.msra.mxu0 %v184_v1  ;;  %v57_v5 = vpack.c.bf16 %v56_v4, %v55_v3  ;;  %v155_v6 = vld [vmem:[#allocation7] ss:$0 sm:$0xff]  ;;  %s142_s26 = sshll.u32 %s289_s2, 4  ;;  %s143_s26 = int_to_ptr.vmem [resolvable:$true] %s142_s26 }
  0x3b   :  { %168 = vmatprep.subr.bf16.mxu0 %v287_v0  ;;  %s252_s27 = scalar_lea.vmem %s143_s26, 128  ;;  %p257_p11 = scmp.lt.s32.totalorder %s143_s26, %s143_s26 }
  0x3c   :  { %p253_p10 = scmp.ne.s32.totalorder %s143_s26, %s252_s27  ;;  %p258_p12 = scmp.lt.s32.totalorder %s252_s27, %s252_s27 }
  0x3e   :  { %169 = vmatpush3.bf16.msra.mxu0 %v185_v2  ;;  %p259_p13 = por %p258_p12, %p257_p11 }
  0x40   :  { %p260_p0 = pnand %p259_p13, %p253_p10 }
  0x41   :  { %171 = vmatmul.mubr.msk.bf16.vlgmr.msra.gmra.mrb[0].mxu0 %vm81_vm1, %v57_v5 }
 0x114   :  { %v119_v7 = vpop.f32.mrb[0].mxu0 }
 0x115   :  { %v120_v8 = vadd.f32 %v155_v6, %v119_v7  ;;  %v172_v9 = vpop.f32.mrb[1].mxu0 }
 0x116   :  { %v122_v10 = vpop.f32.mrb[2].mxu0 }
 0x117   :  { %v161_v11 = vpack.c.bf16 %v120_v8, %v120_v8  ;;  %v123_v12 = vadd.f32 %v155_v6, %v122_v10  ;;  %v173_v13 = vpop.f32.mrb[3].mxu0 }
 0x119   :  { %v162_v14 = vpack.c.bf16 %v123_v12, %v123_v12  ;;  %135 = vst.msk [vmem:[#allocation8] sm:$0xf] %vm134_vm2, %v161_v11 }
 0x11b   :  { %136 = vst.msk [vmem:[#allocation8 + $0x4] sm:$0xf] %vm134_vm2, %v162_v14 }
 0x11c   :  { %263 = shalt.err (!%p260_p0)
}
 0x11d   :  { %s264_s30 = scalar_lea.hbm %s367_s3, 128 }
 0x11e   :  { %p265_p1 = scmp.ne.s32.totalorder %s367_s3, %s264_s30  ;;  %p268_p2 = scmp.lt.u32.totalorder %s264_s30, %s367_s3 }
 0x120   :  { %p270_p3 = pnand %p268_p2, %p265_p1 }
 0x122   :  { %273 = shalt.err (!%p270_p3)
}
 0x123   :  { %148 = dma.vmem_to_hbm [thread:$0]  %s143_s26, 128, %s367_s3, [#allocation4], %s281_s22, %s281_s22, %s282_s23  }
 0x124   :  { %278 = dma.done.wait [#allocation4], 128  }
 0x125   :  { %279 = vsyncadd [#allocation4], 4294967168 }
 0x126   :  { %152 = vsyncpa [#allocation3], 1 }
 0x127   :  { %153 = vsyncpa [#allocation6], 1 }
 0x128   :  { %154 = vsyncpa [#allocation4], 1 }

// kernel: decoder_layer.12
= control target key start
LH: loop header
LB: loop body
LE: loop exit
PB: predicated region body
PF: predicated region fallthrough
CT: control target
= control target key end

     0   :  { %8 = vsyncpa [#allocation3], 0  ;;  %s364_s0 = inlined_call_operand.hbm [shape: f32[16,32], index: 0, kind: input, shape index: {}]   ;;  %s365_s1 = inlined_call_operand.hbm [shape: bf16[32,64], index: 1, kind: input, shape index: {}]   ;;  %s366_s2 = inlined_call_operand.hbm [shape: f32[1,64], index: 2, kind: input, shape index: {}]   ;;  %s367_s3 = inlined_call_operand.hbm [shape: bf16[16,64], index: 3, kind: output, shape index: {}]  }
   0x1   :  { %9 = vsyncpa [#allocation6], 0 }
   0x2   :  { %10 = vsyncpa [#allocation4], 0  ;;  %s280_s12 = smov [#allocation5]   ;;  %s186_s16 = scalar_lea.hbm %s365_s1, 256 }
   0x3   :  { %s28_s13 = sshll.u32 %s280_s12, 4  ;;  %p187_p0 = scmp.ne.s32.totalorder %s365_s1, %s186_s16  ;;  %s29_s13 = int_to_ptr.vmem [resolvable:$true] %s28_s13 }
   0x4   :  { %p190_p1 = scmp.lt.u32.totalorder %s186_s16, %s365_s1 }
   0x6   :  { %p192_p2 = pnand %p190_p1, %p187_p0 }
   0x8   :  { %195 = shalt.err (!%p192_p2)
}
   0x9   :  { %s196_s21 = scalar_lea.vmem %s29_s13, 256  ;;  %p201_p4 = scmp.lt.s32.totalorder %s29_s13, %s29_s13 }
   0xa   :  { %p197_p3 = scmp.ne.s32.totalorder %s29_s13, %s196_s21  ;;  %p202_p5 = scmp.lt.s32.totalorder %s196_s21, %s196_s21 }
   0xc   :  { %p203_p6 = por %p202_p5, %p201_p4 }
   0xe   :  { %p204_p7 = pnand %p203_p6, %p197_p3 }
  0x10   :  { %207 = shalt.err (!%p204_p7)
}
  0x11   :  { %s281_s22 = smov 64   ;;  %s282_s23 = smov 4  }
  0x12   :  { %34 = dma.hbm_to_vmem [thread:$0]  %s365_s1, 256, %s29_s13, [#allocation6], %s281_s22, %s281_s22, %s282_s23  }
  0x13   :  { %s283_s26 = smov [#allocation2]   ;;  %s208_s30 = scalar_lea.hbm %s364_s0, 256 }
  0x14   :  { %s16_s27 = sshll.u32 %s283_s26, 4  ;;  %p209_p8 = scmp.ne.s32.totalorder %s364_s0, %s208_s30  ;;  %s17_s27 = int_to_ptr.vmem [resolvable:$true] %s16_s27 }
  0x15   :  { %p212_p9 = scmp.lt.u32.totalorder %s208_s30, %s364_s0 }
  0x17   :  { %p214_p10 = pnand %p212_p9, %p209_p8 }
  0x19   :  { %217 = shalt.err (!%p214_p10)
}
  0x1a   :  { %s218_s8 = scalar_lea.vmem %s17_s27, 256  ;;  %p223_p12 = scmp.lt.s32.totalorder %s17_s27, %s17_s27 }
  0x1b   :  { %p219_p11 = scmp.ne.s32.totalorder %s17_s27, %s218_s8  ;;  %p224_p13 = scmp.lt.s32.totalorder %s218_s8, %s218_s8 }
  0x1d   :  { %p225_p0 = por %p224_p13, %p223_p12 }
  0x1f   :  { %p226_p1 = pnand %p225_p0, %p219_p11 }
  0x21   :  { %229 = shalt.err (!%p226_p1)
}
  0x22   :  { %s284_s1 = smov 128   ;;  %s285_s9 = smov 8  }
  0x23   :  { %22 = dma.hbm_to_vmem [thread:$0]  %s364_s0, 256, %s17_s27, [#allocation3], %s284_s1, %s284_s1, %s285_s9  }
  0x24   :  { %s286_s12 = smov [#allocation7]   ;;  %s230_s16 = scalar_lea.hbm %s366_s2, 16 }
  0x25   :  { %s41_s13 = sshll.u32 %s286_s12, 4  ;;  %p231_p2 = scmp.ne.s32.totalorder %s366_s2, %s230_s16  ;;  %s42_s13 = int_to_ptr.vmem [resolvable:$true] %s41_s13 }
  0x26   :  { %p234_p3 = scmp.lt.u32.totalorder %s230_s16, %s366_s2 }
  0x28   :  { %p236_p4 = pnand %p234_p3, %p231_p2 }
  0x2a   :  { %239 = shalt.err (!%p236_p4)
}
  0x2b   :  { %s240_s21 = scalar_lea.vmem %s42_s13, 16  ;;  %s244_s0 = scalar_lea.vmem %s42_s13, 32 }
  0x2c   :  { %p241_p5 = scmp.ne.s32.totalorder %s42_s13, %s240_s21  ;;  %p245_p6 = scmp.lt.s32.totalorder %s42_s13, %s42_s13 }
  0x2d   :  { %p246_p7 = scmp.lt.s32.totalorder %s244_s0, %s240_s21 }
  0x2f   :  { %p247_p8 = por %p246_p7, %p245_p6 }
  0x31   :  { %p248_p9 = pnand %p247_p8, %p241_p5 }
  0x33   :  { %251 = shalt.err (!%p248_p9)
}
  0x34   :  { %44 = dma.hbm_to_vmem [thread:$0]  %s366_s2, 16, %s42_s13, [#allocation6]  }
  0x35   :  { %274 = dma.done.wait [#allocation3], 256  }
  0x36   :  { %275 = vsyncadd [#allocation3], 4294967040 }
  0x37   :  { %276 = dma.done.wait [#allocation6], 272  }
  0x38   :  { %277 = vsyncadd [#allocation6], 4294967024  ;;  %v287_v0 = vmov 0.0   ;;  %vm288_vm0 = vmmov 0   ;;  %v184_v1 = vld [vmem:[#allocation5] sm:$0xff]   ;;  %v185_v2 = vld [vmem:[#allocation5 + $0x8] sm:$0xff]  }
  0x39   :  { %166 = vmatprep.subr.bf16.mxu0 %v287_v0  ;;  %170 = vmatprep.mubr.msk.bf16.mxu0 %vm288_vm0, %v287_v0  ;;  %v55_v3 = vld [vmem:[#allocation2] sm:$0xff]  ;;  %v56_v4 = vld [vmem:[#allocation2 + $0x8] sm:$0xff]  ;;  %vm81_vm1 = vcmask 261120   ;;  %vm134_vm2 = vcmask 519168   ;;  %s289_s2 = smov [#allocation8]  }
  0x3a   :  { %167 = vmatpush3.bf16.msra.mxu0 %v184_v1  ;;  %v57_v5 = vpack.c.bf16 %v56_v4, %v55_v3  ;;  %v155_v6 = vld [vmem:[#allocation7] ss:$0 sm:$0xff]  ;;  %s142_s26 = sshll.u32 %s289_s2, 4  ;;  %s143_s26 = int_to_ptr.vmem [resolvable:$true] %s142_s26 }
  0x3b   :  { %168 = vmatprep.subr.bf16.mxu0 %v287_v0  ;;  %s252_s27 = scalar_lea.vmem %s143_s26, 128  ;;  %p257_p11 = scmp.lt.s32.totalorder %s143_s26, %s143_s26 }
  0x3c   :  { %p253_p10 = scmp.ne.s32.totalorder %s143_s26, %s252_s27  ;;  %p258_p12 = scmp.lt.s32.totalorder %s252_s27, %s252_s27 }
  0x3e   :  { %169 = vmatpush3.bf16.msra.mxu0 %v185_v2  ;;  %p259_p13 = por %p258_p12, %p257_p11 }
  0x40   :  { %p260_p0 = pnand %p259_p13, %p253_p10 }
  0x41   :  { %171 = vmatmul.mubr.msk.bf16.vlgmr.msra.gmra.mrb[0].mxu0 %vm81_vm1, %v57_v5 }
 0x114   :  { %v119_v7 = vpop.f32.mrb[0].mxu0 }
 0x115   :  { %v120_v8 = vadd.f32 %v155_v6, %v119_v7  ;;  %v172_v9 = vpop.f32.mrb[1].mxu0 }
 0x116   :  { %v122_v10 = vpop.f32.mrb[2].mxu0 }
 0x117   :  { %v161_v11 = vpack.c.bf16 %v120_v8, %v120_v8  ;;  %v123_v12 = vadd.f32 %v155_v6, %v122_v10  ;;  %v173_v13 = vpop.f32.mrb[3].mxu0 }
 0x119   :  { %v162_v14 = vpack.c.bf16 %v123_v12, %v123_v12  ;;  %135 = vst.msk [vmem:[#allocation8] sm:$0xf] %vm134_vm2, %v161_v11 }
 0x11b   :  { %136 = vst.msk [vmem:[#allocation8 + $0x4] sm:$0xf] %vm134_vm2, %v162_v14 }
 0x11c   :  { %263 = shalt.err (!%p260_p0)
}
 0x11d   :  { %s264_s30 = scalar_lea.hbm %s367_s3, 128 }
 0x11e   :  { %p265_p1 = scmp.ne.s32.totalorder %s367_s3, %s264_s30  ;;  %p268_p2 = scmp.lt.u32.totalorder %s264_s30, %s367_s3 }
 0x120   :  { %p270_p3 = pnand %p268_p2, %p265_p1 }
 0x122   :  { %273 = shalt.err (!%p270_p3)
}
 0x123   :  { %148 = dma.vmem_to_hbm [thread:$0]  %s143_s26, 128, %s367_s3, [#allocation4], %s281_s22, %s281_s22, %s282_s23  }
 0x124   :  { %278 = dma.done.wait [#allocation4], 128  }
 0x125   :  { %279 = vsyncadd [#allocation4], 4294967168 }
 0x126   :  { %152 = vsyncpa [#allocation3], 1 }
 0x127   :  { %153 = vsyncpa [#allocation6], 1 }
 0x128   :  { %154 = vsyncpa [#allocation4], 1 }

// kernel: decoder_layer.13
= control target key start
LH: loop header
LB: loop body
LE: loop exit
PB: predicated region body
PF: predicated region fallthrough
CT: control target
= control target key end

     0   :  { %9 = vsyncpa [#allocation3], 0  ;;  %s1674_s0 = inlined_call_operand.hbm [shape: bf16[2,8,32], index: 0, kind: input, shape index: {}]   ;;  %s1675_s1 = inlined_call_operand.hbm [shape: bf16[2,8,64], index: 1, kind: input, shape index: {}]   ;;  %s1676_s2 = inlined_call_operand.hbm [shape: bf16[2,8,32], index: 2, kind: output, shape index: {0}]   ;;  %s1677_s3 = inlined_call_operand.hbm [shape: f32[2,4,8,8], index: 3, kind: output, shape index: {1}]  }
   0x1   :  { %11 = vsyncpa [#allocation3 + $0x1], 0 }
   0x2   :  { %12 = vsyncpa [#allocation6], 0 }
   0x3   :  { %14 = vsyncpa [#allocation6 + $0x1], 0 }
   0x4   :  { %15 = vsyncpa [#allocation4], 0 }
   0x5   :  { %17 = vsyncpa [#allocation4 + $0x1], 0 }
   0x6   :  { %18 = vsyncpa [#allocation9], 0 }
   0x7   :  { %20 = vsyncpa [#allocation9 + $0x1], 0  ;;  %s1339_s12 = smov 0   ;;  %s1341_s13 = smov 0  }
   0x8   :  { %s1343_s14 = smov 0   ;;  %s1345_s15 = smov 0  }
   0x9   :  { %s1347_s16 = smov 0   ;;  %s1349_s17 = smov 0  }
   0xa LB: > { %s915_s18 = sadd.s32 4294967295, %s1300_s17   ;;  %s916_s19 = sadd.s32 4294967294, %s1300_s17   ;;  %s1300_s17 = sphi %s1349_s17, %s26_s17   ;;  %s1296_s16 = sphi %s1347_s16, %s1697_s16   ;;  %s1292_s15 = sphi %s1345_s15, %s1696_s15   ;;  %s1288_s14 = sphi %s1343_s14, %s1695_s14   ;;  %s1284_s13 = sphi %s1341_s13, %s1694_s13   ;;  %s1280_s12 = sphi %s1339_s12, %s1693_s12  }
   0xb   : > { %s38_s20 = sadd.s32 1, %s1296_s16  ;;  %s47_s21 = sadd.s32 1, %s1288_s14 }
   0xc   : > { %p40_p0 = scmp.ge.s32.totalorder %s38_s20, 2  ;;  %p54_p1 = scmp.ne.s32.totalorder %s1288_s14, %s1284_s13 }
   0xd   : > { %p55_p2 = scmp.eq.s32.totalorder %s1300_s17, 0  ;;  %p60_p3 = scmp.ne.s32.totalorder %s1284_s13, %s1280_s12 }
   0xe   : > { %s1699_s20 = smov (%p40_p0, %s38_s20), 0  ;;  %p61_p5 = scmp.eq.s32.totalorder %s915_s18, 0 }
   0xf   : > { %p1380_p4 = por %p55_p2, %p54_p1  ;;  %s42_s23 = ssub.s32 %s1296_s16, %s1699_s20 }
  0x10   : > { %p112_p6 = scmp.eq.s32.totalorder %s915_s18, 1  ;;  %p45_p7 = scmp.eq.s32.totalorder %s42_s23, 0 }
  0x11   : > { %p1386_p8 = por %p61_p5, %p60_p3  ;;  %p118_p10 = scmp.eq.s32.totalorder %s916_s19, 1 }
  0x12   : > { %p1390_p9 = por %p112_p6, %p54_p1  ;;  %p1041_p13 = scmp.lt.s32.totalorder %s1300_s17, 2 }
  0x13   : > { %s1681_s24 = scalar_select %p1386_p8, 1, 0 }
  0x14   : > { %s1682_s25 = scalar_select %p1390_p9, 1, 0 }
  0x15   : > { %s1395_s26 = scalar_select %p45_p7, %s1288_s14, %s47_s21  }
  0x16   : > { %p1397_p11 = por %p118_p10, %p60_p3  ;;  %s1404_s28 = sand.u32 1, %s1288_s14  }
  0x17   : > { %s919_s29 = sshll.u32 %s1404_s28, 2  ;;  %s920_s30 = sshll.u32 %s1296_s16, 6 }
  0x18   : > { %s1683_s27 = scalar_select %p1397_p11, 1, 0 }
  0x19   : > { %s1413_s6 = scalar_lea.hbm %s1674_s0, %s920_s30  ;;  %s170_s7 = scalar_lea.vmem [#allocation2], %s919_s29 }
  0x1a   : > { %s178_s8 = sshll.u32 %s170_s7, 4  ;;  %p1421_p0 = pnand %p1041_p13, %p1380_p4  ;;  %s1417_s8 = int_to_ptr.vmem [resolvable:$true] %s178_s8 }
  0x1b   : > { %s167_s10 = scalar_lea.sflag [#allocation3], %s1404_s28  ;;  %s1122_s11 = scalar_lea.hbm %s1413_s6, 64 }
  0x1c   : > { %p1123_p3 = scmp.ne.s32.totalorder %s1413_s6, %s1122_s11  ;;  %p1124_p5 = pneg %p1421_p0 }
  0x1d   : > { %s1127_s21 = scalar_lea.hbm %s1674_s0, 128  ;;  %p1128_p4 = scmp.lt.u32.totalorder %s1413_s6, %s1674_s0 }
  0x1e   : > { %p1125_p6 = pnand %p1124_p5, %p1123_p3  ;;  %p1129_p10 = scmp.lt.u32.totalorder %s1127_s21, %s1122_s11 }
  0x1f   : > { %p1131_p12 = scmp.lt.u32.totalorder %s1122_s11, %s1413_s6 }
  0x20   : > { %p1126_p7 = pneg %p1125_p6  ;;  %p1130_p13 = por %p1129_p10, %p1128_p4 }
  0x22   : > { %p1132_p1 = por %p1131_p12, %p1130_p13 }
  0x24   : > { %p1133_p2 = pnand %p1132_p1, %p1126_p7 }
  0x26   : > { %1136 = shalt.err (!%p1133_p2)
}
  0x27   : > { %s1137_s4 = scalar_lea.vmem %s1417_s8, 64  ;;  %s1302_s5 = smov [#allocation2]  }
  0x28   : > { %p1138_p3 = scmp.ne.s32.totalorder %s1417_s8, %s1137_s4  ;;  %s1142_s7 = sshll.u32 %s1302_s5, 4  ;;  %s1143_s7 = int_to_ptr.vmem [resolvable:$false] %s1142_s7 }
  0x29   : > { %s1144_s18 = scalar_lea.vmem %s1143_s7, 128  ;;  %p1145_p9 = scmp.lt.s32.totalorder %s1417_s8, %s1143_s7 }
  0x2a   : > { %p1140_p6 = pnand %p1138_p3, %p1124_p5  ;;  %p1146_p4 = scmp.lt.s32.totalorder %s1144_s18, %s1137_s4 }
  0x2c   : > { %p1141_p11 = pneg %p1140_p6  ;;  %p1147_p10 = por %p1146_p4, %p1145_p9 }
  0x2e   : > { %p1148_p12 = pnand %p1147_p10, %p1141_p11 }
  0x30   : > { %1151 = shalt.err (!%p1148_p12)
}
  0x31   : > { %1030 = dma.hbm_to_vmem [thread:$0]  (!%p1421_p0), %s1413_s6, 64, %s1417_s8, %s167_s10  }
  0x32   : > { %p1685_p1 = scmp.lt.s32.totalorder %s1300_s17, 3  ;;  %p1686_p2 = scmp.ge.s32.totalorder %s1300_s17, 1 }
  0x33   : > { %s1466_s22 = scalar_lea.hbm %s1675_s1, %s920_s30  ;;  %s189_s23 = scalar_lea.vmem [#allocation5], %s919_s29 }
  0x34   : > { %p1457_p7 = pnand %p1686_p2, %p1685_p1  ;;  %s196_s4 = sshll.u32 %s189_s23, 4  ;;  %s197_s4 = int_to_ptr.vmem [resolvable:$true] %s196_s4 }
  0x35   : > { %s186_s6 = scalar_lea.sflag [#allocation6], %s1404_s28  ;;  %s1152_s8 = scalar_lea.hbm %s1466_s22, 64 }
  0x36   : > { %s1687_s11 = scalar_select %p1457_p7, 1, 0 }
  0x37   : > { %p1153_p9 = scmp.ne.s32.totalorder %s1466_s22, %s1152_s8  ;;  %s1157_s30 = scalar_lea.hbm %s1675_s1, 128 }
  0x38   : > { %p1158_p3 = scmp.lt.u32.totalorder %s1466_s22, %s1675_s1  ;;  %p1159_p6 = scmp.lt.u32.totalorder %s1157_s30, %s1152_s8 }
  0x39   : > { %p1155_p11 = pnand %p1153_p9, %p1124_p5  ;;  %p1161_p10 = scmp.lt.u32.totalorder %s1152_s8, %s1466_s22 }
  0x3a   : > { %p1160_p4 = por %p1159_p6, %p1158_p3 }
  0x3b   : > { %p1156_p13 = pneg %p1155_p11 }
  0x3c   : > { %p1162_p12 = por %p1161_p10, %p1160_p4 }
  0x3e   : > { %p1163_p1 = pnand %p1162_p12, %p1156_p13 }
  0x40   : > { %1166 = shalt.err (!%p1163_p1)
}
  0x41   : > { %s1167_s28 = scalar_lea.vmem %s197_s4, 64  ;;  %s1303_s29 = smov [#allocation5]  }
  0x42   : > { %p1168_p2 = scmp.ne.s32.totalorder %s197_s4, %s1167_s28  ;;  %s1172_s19 = sshll.u32 %s1303_s29, 4  ;;  %s1173_s19 = int_to_ptr.vmem [resolvable:$false] %s1172_s19 }
  0x43   : > { %s1174_s21 = scalar_lea.vmem %s1173_s19, 128  ;;  %p1175_p8 = scmp.lt.s32.totalorder %s197_s4, %s1173_s19 }
  0x44   : > { %p1170_p9 = pnand %p1168_p2, %p1124_p5  ;;  %p1176_p7 = scmp.lt.s32.totalorder %s1174_s21, %s1167_s28 }
  0x46   : > { %p1171_p11 = pneg %p1170_p9  ;;  %p1177_p3 = por %p1176_p7, %p1175_p8 }
  0x48   : > { %p1178_p6 = pnand %p1177_p3, %p1171_p11 }
  0x4a   : > { %1181 = shalt.err (!%p1178_p6)
}
  0x4b   : > { %1033 = dma.hbm_to_vmem [thread:$0]  (!%p1421_p0), %s1466_s22, 64, %s197_s4, %s186_s6  }
  0x4c   : > { %p1688_p13 = scmp.ne.s32.totalorder %s1687_s11, 0 }
  0x4d   : > { %s1493_s23 = sand.u32 (!%p1688_p13), 1, %s1284_s13   ;;  %p1689_p8 = scmp.ne.s32.totalorder (!%p1688_p13), %s1681_s24, 0 }
  0x4e   : > { %205 = sbr.rel (%p1688_p13) target bundleno = 1534 (0x5fe), region = 28  ;;  %s1496_s8 = sshll.u32 (!%p1688_p13), %s1493_s23, 2 }
  0x4f   : > { %s208_s10 = scalar_lea.sflag (!%p1688_p13), [#allocation3], %s1493_s23  ;;  %s211_s5 = scalar_lea.vmem (!%p1688_p13), [#allocation2], %s1496_s8 }
  0x55   : > { %1263 = dma.done.wait (%p1689_p8), %s208_s10, 64  }
  0x56   : > { %1265 = vsyncadd (%p1689_p8), %s208_s10, 4294967232  ;;  %s217_s9 = scalar_lea.sflag [#allocation6], %s1493_s23  ;;  %s220_s11 = scalar_lea.vmem [#allocation5], %s1496_s8 }
  0x57   : > { %1267 = dma.done.wait (%p1689_p8), %s217_s9, 64  }
  0x58   : > { %1269 = vsyncadd (%p1689_p8), %s217_s9, 4294967232  ;;  %v1304_v0 = vmov 0.0   ;;  %vm1305_vm0 = vmmov 0   ;;  %vm256_vm1 = vcmask 64512   ;;  %v255_v1 = vld [vmem:[%s220_s11] sm:$0xf] }
  0x59   : > { %971 = vmatprep.subr.bf16.mxu0 %v1304_v0  ;;  %973 = vmatprep.mubr.msk.bf16.mxu0 %vm1305_vm0, %v1304_v0  ;;  %v261_v2 = vsel %vm256_vm1, %v255_v1, 0  ;;  %v254_v3 = vld [vmem:[%s211_s5] sm:$0xf]  ;;  %v1522_v10 = vcombine.low %v255_v1, %v255_v1  ;;  %s1306_s24 = smov 96   ;;  %s1307_s22 = smov 120   ;;  %vm324_vm2 = vcmask 1043456  }
  0x5a   : > { %977 = vmatprep.subr.bf16.mxu1 %v1304_v0  ;;  %979 = vmatprep.mubr.msk.bf16.mxu1 %vm1305_vm0, %v1304_v0  ;;  %s1308_s4 = smov 112   ;;  %v931_v11 = vcombine.low %v254_v3, %v254_v3  ;;  %s1309_s6 = smov 104   ;;  %vm370_vm3 = vcmask 60416  }
  0x5b   : > { %972 = vmatpush3.bf16.xpose.msra.mxu0 %v261_v2  ;;  %319 = vrot.lane.b32.xlu1 %v1522_v10, %s1306_s24  ;;  %s927_s30 = sshll.u32 %s1493_s23, 5  ;;  %s1552_s18 = scalar_lea.vmem [#allocation7], %s1496_s8 }
  0x5c   : > { %989 = vmatprep.subr.bf16.mxu0 %v1304_v0  ;;  %s1533_s7 = scalar_lea.vmem [#allocation8], %s927_s30  ;;  %s1310_s28 = smov 88  }
  0x5d   : > { %s1311_s29 = smov 72   ;;  %s1312_s19 = smov 80  }
  0x5e   : > { %s1313_s21 = smov 8   ;;  %s954_s8 = sshll.u32 %s1292_s15, 9 }
  0x5f   : > { %377 = vrot.lane.b32.xlu1 %v1522_v10, %s1307_s22  ;;  %s775_s10 = sshll.u32 %s1533_s7, 4  ;;  %s1588_s11 = scalar_lea.hbm %s1677_s3, %s954_s8  ;;  %s1590_s10 = int_to_ptr.vmem [resolvable:$true] %s775_s10 }
  0x60   : > { %s1314_s24 = smov 16   ;;  %p1690_p5 = scmp.ne.s32.totalorder %s1682_s25, 0 }
  0x62   : > { %974 = vmatmul.mubr.msk.bf16.vlgmr.msra.gmra.mrb[0].mxu0 %vm256_vm1, %v254_v3 }
  0x63   : > { %991 = vmatprep.mubr.msk.bf16.mxu0 %vm1305_vm0, %v1304_v0  ;;  %499 = vrot.lane.b32.xlu1 %v1522_v10, %s1308_s4 }
  0x67   : > { %497 = vrot.lane.b32.xlu1 %v931_v11, %s1308_s4  ;;  %s1182_s4 = scalar_lea.vmem %s1590_s10, 512 }
  0x68   : > { %p1183_p0 = scmp.ne.s32.totalorder %s1590_s10, %s1182_s4 }
  0x6a   : > { %p1184_p7 = pnand %p1183_p0, %p1690_p5 }
  0x6b   : > { %621 = vrot.lane.b32.xlu1 %v1522_v10, %s1309_s6 }
  0x6c   : > { %p1185_p4 = pneg %p1184_p7 }
  0x6f   : > { %619 = vrot.lane.b32.xlu1 %v931_v11, %s1309_s6  ;;  %s1315_s6 = smov [#allocation8]  }
  0x70   : > { %s1186_s30 = sshll.u32 %s1315_s6, 4  ;;  %s1187_s30 = int_to_ptr.vmem [resolvable:$false] %s1186_s30 }
  0x71   : > { %p1189_p10 = scmp.lt.s32.totalorder %s1590_s10, %s1187_s30 }
  0xcd   : > { %v320_v17 = vpop.permute.xlu1 %319 }
  0xce   : > { %v326_v18 = vsel %vm324_vm2, %v320_v17, 0 }
  0xcf   : > { %978 = vmatpush3.bf16.msra.mxu1 %v326_v18 }
  0xd0   : > { %983 = vmatprep.subr.bf16.mxu1 %v1304_v0 }
  0xd1   : > { %v378_v21 = vpop.permute.xlu1 %377 }
  0xd2   : > { %v383_v23 = vsel %vm256_vm1, %v378_v21, 0 }
  0xd5   : > { %v500_v25 = vpop.permute.xlu1 %499 }
  0xd6   : > { %v505_v28 = vsel %vm256_vm1, %v500_v25, 0 }
  0xd9   : > { %v498_v27 = vpop.permute.xlu1 %497 }
  0xdd   : > { %v622_v29 = vpop.permute.xlu1 %621 }
  0xde   : > { %v627_v30 = vsel %vm256_vm1, %v622_v29, 0 }
  0xe1   : > { %v620_v31 = vpop.permute.xlu1 %619 }
 0x135   : > { %v297_v4 = vpop.f32.mrb[0].mxu0 }
 0x136   : > { %v303_v5 = vmul.f32 0.35355338, %v297_v4  ;;  %v975_v6 = vpop.f32.mrb[1].mxu0 }
 0x137   : > { %v300_v7 = vpop.f32.mrb[2].mxu0 }
 0x138   : > { %v976_v8 = vpop.f32.mrb[3].mxu0  ;;  %v304_v9 = vsel %vm256_vm1, %v303_v5, -inf }
 0x139   : > { %305 = vmax.xlane.f32.xlu0 %v304_v9 }
 0x1c6   : > { %v306_v12 = vpop.xlane.xlu0 %305 }
 0x1c7   : > { %v307_v13 = vsub.f32 %v303_v5, %v306_v12 }
 0x1c9   : > { %v308_v14 = vmul.f32 1.442695, %v307_v13 }
 0x1cb   : > { %1106 = vpow2.f32 %v308_v14 }
 0x1d5   : > { %v1107_v15 = vpop.eup %1106 }
 0x1d6   : > { %v310_v16 = vsel %vm256_vm1, %v1107_v15, 0.0 }
 0x1d7   : > { %311 = vadd.xlane.f32.xlu0 %v310_v16 }
 0x1ed   : > { %375 = vrot.lane.b32.xlu0 %v931_v11, %s1307_s22  ;;  %s747_s22 = scalar_lea.sflag [#allocation9], %s1493_s23 }
 0x264   : > { %v312_v19 = vpop.xlane.xlu0 %311 }
 0x265   : > { %1108 = vrcp.f32 %v312_v19 }
 0x268   : > { %v376_v26 = vpop.permute.xlu0 %375 }
 0x26f   : > { %v1109_v20 = vpop.eup %1108 }
 0x270   : > { %v314_v22 = vmul.f32 %v1109_v20, %v1107_v15 }
 0x272   : > { %v315_v24 = vpack.c.bf16 %v314_v22, %v314_v22  ;;  %368 = vst.msk [vmem:[%s1533_s7] sm:$0xff] %vm256_vm1, %v314_v22 }
 0x274   : > { %980 = vmatmul.mubr.msk.bf16.vlgmr.msra.gmra.mrb[0].mxu1 %vm256_vm1, %v315_v24 }
 0x275   : > { %984 = vmatpush3.bf16.xpose.msra.mxu1 %v383_v23  ;;  %985 = vmatprep.mubr.msk.bf16.mxu1 %vm1305_vm0, %v1304_v0 }
 0x276   : > { %995 = vmatprep.subr.bf16.mxu1 %v1304_v0 }
 0x27c   : > { %986 = vmatmul.mubr.msk.bf16.vlgmr.msra.gmra.mrb[4].mxu1 %vm256_vm1, %v376_v26 }
 0x27d   : > { %996 = vmatpush3.bf16.xpose.msra.mxu1 %v505_v28  ;;  %997 = vmatprep.mubr.msk.bf16.mxu1 %vm1305_vm0, %v1304_v0 }
 0x27e   : > { %1007 = vmatprep.subr.bf16.mxu1 %v1304_v0 }
 0x284   : > { %998 = vmatmul.mubr.msk.bf16.vlgmr.msra.gmra.mrb[8].mxu1 %vm256_vm1, %v498_v27 }
 0x285   : > { %1008 = vmatpush3.bf16.xpose.msra.mxu1 %v627_v30  ;;  %1009 = vmatprep.mubr.msk.bf16.mxu1 %vm1305_vm0, %v1304_v0 }
 0x28c   : > { %1010 = vmatmul.mubr.msk.bf16.vlgmr.msra.gmra.mrb[12].mxu1 %vm256_vm1, %v620_v31 }
 0x347   : > { %v362_v32 = vpop.f32.mrb[0].mxu1 }
 0x348   : > { %v369_v33 = vpack.c.bf16 %v362_v32, %v362_v32  ;;  %v981_v34 = vpop.f32.mrb[1].mxu1 }
 0x349   : > { %v365_v35 = vpop.f32.mrb[2].mxu1 }
 0x34a   : > { %371 = vst.msk [vmem:[%s1552_s18] sm:$0xf] %vm370_vm3, %v369_v33  ;;  %v982_v36 = vpop.f32.mrb[3].mxu1 }
 0x34f   : > { %v419_v37 = vpop.f32.mrb[4].mxu1 }
 0x350   : > { %v425_v38 = vmul.f32 0.35355338, %v419_v37  ;;  %v987_v39 = vpop.f32.mrb[5].mxu1 }
 0x351   : > { %v422_v40 = vpop.f32.mrb[6].mxu1 }
 0x352   : > { %v988_v41 = vpop.f32.mrb[7].mxu1  ;;  %v426_v42 = vsel %vm256_vm1, %v425_v38, -inf }
 0x353   : > { %427 = vmax.xlane.f32.xlu1 %v426_v42 }
 0x357   : > { %v541_v43 = vpop.f32.mrb[8].mxu1 }
 0x358   : > { %v547_v44 = vmul.f32 0.35355338, %v541_v43  ;;  %v999_v45 = vpop.f32.mrb[9].mxu1 }
 0x359   : > { %v544_v46 = vpop.f32.mrb[10].mxu1 }
 0x35a   : > { %v1000_v47 = vpop.f32.mrb[11].mxu1  ;;  %v548_v48 = vsel %vm256_vm1, %v547_v44, -inf }
 0x35b   : > { %549 = vmax.xlane.f32.xlu0 %v548_v48 }
 0x35f   : > { %v663_v49 = vpop.f32.mrb[12].mxu1 }
 0x360   : > { %v669_v50 = vmul.f32 0.35355338, %v663_v49  ;;  %v1011_v51 = vpop.f32.mrb[13].mxu1 }
 0x361   : > { %v666_v52 = vpop.f32.mrb[14].mxu1 }
 0x362   : > { %v1012_v53 = vpop.f32.mrb[15].mxu1  ;;  %v670_v54 = vsel %vm256_vm1, %v669_v50, -inf }
 0x363   : > { %671 = vmax.xlane.f32.xlu1 %v670_v54 }
 0x374   : > { %438 = vrot.lane.b32.xlu1 %v1522_v10, %s1310_s28 }
 0x3e0   : > { %v428_v55 = vpop.xlane.xlu1 %427 }
 0x3e1   : > { %v429_v56 = vsub.f32 %v425_v38, %v428_v55 }
 0x3e3   : > { %v430_v57 = vmul.f32 1.442695, %v429_v56 }
 0x3e5   : > { %1110 = vpow2.f32 %v430_v57 }
 0x3e8   : > { %v550_v58 = vpop.xlane.xlu0 %549 }
 0x3e9   : > { %v551_v59 = vsub.f32 %v547_v44, %v550_v58 }
 0x3eb   : > { %v552_v60 = vmul.f32 1.442695, %v551_v59 }
 0x3ed   : > { %1112 = vpow2.f32 %v552_v60 }
 0x3ef   : > { %v1111_v61 = vpop.eup %1110 }
 0x3f0   : > { %v672_v62 = vpop.xlane.xlu1 %671  ;;  %v432_v63 = vsel %vm256_vm1, %v1111_v61, 0.0 }
 0x3f1   : > { %v673_v1 = vsub.f32 %v669_v50, %v672_v62  ;;  %433 = vadd.xlane.f32.xlu0 %v432_v63 }
 0x3f3   : > { %v674_v2 = vmul.f32 1.442695, %v673_v1 }
 0x3f4   : > { %v439_v3 = vpop.permute.xlu1 %438 }
 0x3f5   : > { %1114 = vpow2.f32 %v674_v2  ;;  %v444_v4 = vsel %vm324_vm2, %v439_v3, 0 }
 0x3f6   : > { %990 = vmatpush3.bf16.msra.mxu0 %v444_v4 }
 0x3f7   : > { %v1113_v5 = vpop.eup %1112  ;;  %1001 = vmatprep.subr.bf16.mxu0 %v1304_v0 }
 0x3f8   : > { %v554_v6 = vsel %vm256_vm1, %v1113_v5, 0.0 }
 0x3f9   : > { %555 = vadd.xlane.f32.xlu1 %v554_v6 }
 0x3ff   : > { %v1115_v7 = vpop.eup %1114 }
 0x400   : > { %v676_v8 = vsel %vm256_vm1, %v1115_v7, 0.0 }
 0x401   : > { %677 = vadd.xlane.f32.xlu0 %v676_v8 }
 0x40a   : > { %682 = vrot.lane.b32.xlu1 %v1522_v10, %s1311_s29 }
 0x417   : > { %560 = vrot.lane.b32.xlu0 %v1522_v10, %s1312_s19 }
 0x47e   : > { %v434_v9 = vpop.xlane.xlu0 %433 }
 0x47f   : > { %1116 = vrcp.f32 %v434_v9 }
 0x486   : > { %v556_v11 = vpop.xlane.xlu1 %555 }
 0x487   : > { %1118 = vrcp.f32 %v556_v11 }
 0x489   : > { %v1117_v12 = vpop.eup %1116 }
 0x48a   : > { %v436_v13 = vmul.f32 %v1117_v12, %v1111_v61  ;;  %v683_v18 = vpop.permute.xlu1 %682 }
 0x48b   : > { %v688_v21 = vsel %vm324_vm2, %v683_v18, 0 }
 0x48c   : > { %934 = vst.msk [vmem:[%s1533_s7 + $0x8] sm:$0xff] %vm256_vm1, %v436_v13  ;;  %v437_v14 = vpack.c.bf16 %v436_v13, %v436_v13 }
 0x48e   : > { %v678_v15 = vpop.xlane.xlu0 %677  ;;  %992 = vmatmul.mubr.msk.bf16.vlgmr.msra.gmra.mrb[4].mxu0 %vm256_vm1, %v437_v14 }
 0x48f   : > { %1120 = vrcp.f32 %v678_v15  ;;  %1003 = vmatprep.mubr.msk.bf16.mxu0 %vm1305_vm0, %v1304_v0 }
 0x491   : > { %v1119_v16 = vpop.eup %1118 }
 0x492   : > { %v558_v10 = vmul.f32 %v1119_v16, %v1113_v5  ;;  %v561_v17 = vpop.permute.xlu0 %560 }
 0x493   : > { %v566_v19 = vsel %vm324_vm2, %v561_v17, 0 }
 0x494   : > { %938 = vst.msk [vmem:[%s1533_s7 + $0x10] sm:$0xff] %vm256_vm1, %v558_v10  ;;  %1002 = vmatpush3.bf16.msra.mxu0 %v566_v19  ;;  %v559_v20 = vpack.c.bf16 %v558_v10, %v558_v10 }
 0x495   : > { %1013 = vmatprep.subr.bf16.mxu0 %v1304_v0 }
 0x497   : > { %1004 = vmatmul.mubr.msk.bf16.vlgmr.msra.gmra.mrb[8].mxu0 %vm256_vm1, %v559_v20 }
 0x498   : > { %1014 = vmatpush3.bf16.msra.mxu0 %v688_v21  ;;  %1015 = vmatprep.mubr.msk.bf16.mxu0 %vm1305_vm0, %v1304_v0 }
 0x499   : > { %v1121_v22 = vpop.eup %1120 }
 0x49a   : > { %v680_v23 = vmul.f32 %v1121_v22, %v1115_v7 }
 0x49c   : > { %942 = vst.msk [vmem:[%s1533_s7 + $0x18] sm:$0xff] %vm256_vm1, %v680_v23  ;;  %v681_v24 = vpack.c.bf16 %v680_v23, %v680_v23  ;;  %s1188_s7 = scalar_lea.vmem %s1187_s30, 1024 }
 0x49d   : > { %p1190_p12 = scmp.lt.s32.totalorder %s1188_s7, %s1182_s4 }
 0x49f   : > { %1016 = vmatmul.mubr.msk.bf16.vlgmr.msra.gmra.mrb[12].mxu0 %vm256_vm1, %v681_v24  ;;  %p1191_p1 = por %p1190_p12, %p1189_p10 }
 0x4a1   : > { %p1192_p2 = pnand %p1191_p1, %p1185_p4 }
 0x561   : > { %v480_v25 = vpop.f32.mrb[4].mxu0 }
 0x562   : > { %v951_v26 = vpack.c.bf16 %v480_v25, %v480_v25  ;;  %v993_v27 = vpop.f32.mrb[5].mxu0 }
 0x563   : > { %v483_v28 = vpop.f32.mrb[6].mxu0 }
 0x564   : > { %492 = vrot.lane.b32.xlu1 %v951_v26, %s1313_s21  ;;  %v994_v29 = vpop.f32.mrb[7].mxu0 }
 0x56a   : > { %v602_v30 = vpop.f32.mrb[8].mxu0 }
 0x56b   : > { %v952_v0 = vpack.c.bf16 %v602_v30, %v602_v30  ;;  %v1005_v31 = vpop.f32.mrb[9].mxu0 }
 0x56c   : > { %v605_v32 = vpop.f32.mrb[10].mxu0 }
 0x56d   : > { %614 = vrot.lane.b32.xlu0 %v952_v0, %s1314_s24  ;;  %v1006_v33 = vpop.f32.mrb[11].mxu0 }
 0x56e   : > { %1195 = shalt.err (!%p1192_p2)
}
 0x56f   : > { %s1196_s28 = scalar_lea.hbm %s1588_s11, 512  ;;  %s1200_s8 = scalar_lea.hbm %s1677_s3, 1024 }
 0x570   : > { %p1197_p9 = scmp.ne.s32.totalorder %s1588_s11, %s1196_s28  ;;  %p1201_p6 = scmp.lt.u32.totalorder %s1588_s11, %s1677_s3 }
 0x571   : > { %p1202_p13 = scmp.lt.u32.totalorder %s1200_s8, %s1196_s28  ;;  %p1204_p0 = scmp.lt.u32.totalorder %s1196_s28, %s1588_s11 }
 0x572   : > { %p1198_p11 = pnand %p1197_p9, %p1690_p5 }
 0x573   : > { %p1203_p8 = por %p1202_p13, %p1201_p6 }
 0x574   : > { %p1199_p3 = pneg %p1198_p11 }
 0x575   : > { %p1205_p7 = por %p1204_p0, %p1203_p8 }
 0x577   : > { %p1206_p4 = pnand %p1205_p7, %p1199_p3 }
 0x579   : > { %1209 = shalt.err (!%p1206_p4)
}
 0x57a   : > { %s1316_s24 = smov 128   ;;  %v724_v34 = vpop.f32.mrb[12].mxu0  ;;  %s1317_s4 = smov 24   ;;  %vm495_vm4 = vcmask 126016   ;;  %vm617_vm5 = vcmask 191616   ;;  %vm739_vm6 = vcmask 257216  }
 0x57b   : > { %1024 = dma.vmem_to_hbm [thread:$0]  (%p1690_p5), %s1590_s10, 512, %s1588_s11, %s747_s22, %s1316_s24, %s1316_s24, %s1313_s21   ;;  %v953_v35 = vpack.c.bf16 %v724_v34, %v724_v34  ;;  %v1017_v36 = vpop.f32.mrb[13].mxu0 }
 0x57c   : > { %v727_v37 = vpop.f32.mrb[14].mxu0  ;;  %s946_s6 = sshll.u32 %s1292_s15, 6  ;;  %s761_s30 = sshll.u32 %s1552_s18, 4  ;;  %s1626_s30 = int_to_ptr.vmem [resolvable:$true] %s761_s30 }
 0x57d   : > { %736 = vrot.lane.b32.xlu1 %v953_v35, %s1317_s4  ;;  %v1018_v38 = vpop.f32.mrb[15].mxu0  ;;  %s1624_s11 = scalar_lea.hbm %s1676_s2, %s946_s6  ;;  %s742_s22 = scalar_lea.sflag [#allocation4], %s1493_s23 }
 0x57e   : > { %s1210_s7 = scalar_lea.vmem %s1626_s30, 64  ;;  %s1318_s15 = smov [#allocation7]  }
 0x57f   : > { %p1211_p10 = scmp.ne.s32.totalorder %s1626_s30, %s1210_s7  ;;  %s1214_s28 = sshll.u32 %s1318_s15, 4  ;;  %s1215_s28 = int_to_ptr.vmem [resolvable:$false] %s1214_s28 }
 0x580   : > { %s1216_s29 = scalar_lea.vmem %s1215_s28, 128  ;;  %p1217_p2 = scmp.lt.s32.totalorder %s1626_s30, %s1215_s28 }
 0x581   : > { %p1212_p12 = pnand %p1211_p10, %p1690_p5  ;;  %p1218_p9 = scmp.lt.s32.totalorder %s1216_s29, %s1210_s7 }
 0x583   : > { %p1213_p1 = pneg %p1212_p12  ;;  %p1219_p11 = por %p1218_p9, %p1217_p2 }
 0x585   : > { %p1220_p3 = pnand %p1219_p11, %p1213_p1 }
 0x5d6   : > { %v493_v39 = vpop.permute.xlu1 %492 }
 0x5d7   : > { %496 = vst.msk [vmem:[%s1552_s18] sm:$0xf] %vm495_vm4, %v493_v39 }
 0x5df   : > { %v615_v40 = vpop.permute.xlu0 %614 }
 0x5e0   : > { %618 = vst.msk [vmem:[%s1552_s18] sm:$0xf] %vm617_vm5, %v615_v40 }
 0x5ef   : > { %v737_v41 = vpop.permute.xlu1 %736 }
 0x5f0   : > { %740 = vst.msk [vmem:[%s1552_s18] sm:$0xf] %vm739_vm6, %v737_v41 }
 0x5f1   : > { %1223 = shalt.err (!%p1220_p3)
}
 0x5f2   : > { %s1224_s23 = scalar_lea.hbm %s1624_s11, 64  ;;  %s1228_s8 = scalar_lea.hbm %s1676_s2, 128 }
 0x5f3   : > { %p1225_p6 = scmp.ne.s32.totalorder %s1624_s11, %s1224_s23  ;;  %p1229_p0 = scmp.lt.u32.totalorder %s1624_s11, %s1676_s2 }
 0x5f4   : > { %p1230_p7 = scmp.lt.u32.totalorder %s1228_s8, %s1224_s23  ;;  %p1232_p10 = scmp.lt.u32.totalorder %s1224_s23, %s1624_s11 }
 0x5f5   : > { %p1226_p13 = pnand %p1225_p6, %p1690_p5 }
 0x5f6   : > { %p1231_p4 = por %p1230_p7, %p1229_p0 }
 0x5f7   : > { %p1227_p8 = pneg %p1226_p13 }
 0x5f8   : > { %p1233_p12 = por %p1232_p10, %p1231_p4 }
 0x5fa   : > { %p1234_p1 = pnand %p1233_p12, %p1227_p8 }
 0x5fc   : > { %1237 = shalt.err (!%p1234_p1)
}
 0x5fd   : > { %1023 = dma.vmem_to_hbm [thread:$0]  (%p1690_p5), %s1626_s30, 64, %s1624_s11, %s742_s22  }
 0x5fe PF: > { %s790_s24 = sand.u32 1, %s1280_s12   ;;  %p1691_p2 = scmp.ne.s32.totalorder %s1683_s27, 0 }
 0x5ff   : > { %p1692_p9 = scmp.ge.s32.totalorder %s1300_s17, 2  ;;  %s791_s4 = scalar_lea.sflag [#allocation4], %s790_s24 }
 0x601   : > { %p1035_p11 = pnand %p1692_p9, %p1691_p2 }
 0x603   : > { %1271 = dma.done.wait (!%p1035_p11), %s791_s4, 64  }
 0x604   : > { %1273 = vsyncadd (!%p1035_p11), %s791_s4, 4294967232  ;;  %s800_s6 = scalar_lea.sflag [#allocation9], %s790_s24 }
 0x605   : > { %1275 = dma.done.wait (!%p1035_p11), %s800_s6, 512  }
 0x606   : > { %1277 = vsyncadd (!%p1035_p11), %s800_s6, 4294966784  ;;  %s26_s17 = sadd.s32 1, %s1300_s17   ;;  %s1693_s12 = smov %s1284_s13 }
 0x607   : > { %p23_p3 = scmp.ge.s32.totalorder %s26_s17, 4   ;;  %s1694_s13 = smov %s1288_s14 }
 0x608   : > { %s1695_s14 = smov %s1395_s26  ;;  %s1696_s15 = smov %s1296_s16 }
 0x609   : > { %s1697_s16 = smov %s1699_s20  ;;  %25 = sbr.rel (!%p23_p3) target bundleno = 10 (0xa), region = 106 }
 0x610   :  { %805 = vsyncpa [#allocation3], 1 }
 0x611   :  { %807 = vsyncpa [#allocation3 + $0x1], 1 }
 0x612   :  { %808 = vsyncpa [#allocation6], 1 }
 0x613   :  { %810 = vsyncpa [#allocation6 + $0x1], 1 }
 0x614   :  { %811 = vsyncpa [#allocation4], 1 }
 0x615   :  { %813 = vsyncpa [#allocation4 + $0x1], 1 }
 0x616   :  { %814 = vsyncpa [#allocation9], 1 }
 0x617   :  { %816 = vsyncpa [#allocation9 + $0x1], 1 }

// kernel: decoder_layer.15
= control target key start
LH: loop header
LB: loop body
LE: loop exit
PB: predicated region body
PF: predicated region fallthrough
CT: control target
= control target key end

     0   :  { %12 = vsyncpa [#allocation3], 0  ;;  %s755_s0 = inlined_call_operand.hbm [shape: f32[16,32], index: 0, kind: input, shape index: {}]   ;;  %s756_s1 = inlined_call_operand.hbm [shape: bf16[32,64], index: 1, kind: input, shape index: {}]   ;;  %s757_s2 = inlined_call_operand.hbm [shape: f32[1,64], index: 2, kind: input, shape index: {}]   ;;  %s758_s3 = inlined_call_operand.hbm [shape: bf16[64,32], index: 3, kind: input, shape index: {}]   ;;  %s759_s4 = inlined_call_operand.hbm [shape: f32[1,32], index: 4, kind: input, shape index: {}]   ;;  %s760_s5 = inlined_call_operand.hbm [shape: f32[1,32], index: 5, kind: input, shape index: {}]   ;;  %s761_s6 = inlined_call_operand.hbm [shape: f32[1,32], index: 6, kind: input, shape index: {}]   ;;  %s762_s7 = inlined_call_operand.hbm [shape: f32[16,32], index: 7, kind: output, shape index: {}]  }
   0x1   :  { %13 = vsyncpa [#allocation6], 0 }
   0x2   :  { %14 = vsyncpa [#allocation9], 0 }
   0x3   :  { %15 = vsyncpa [#allocation12], 0 }
   0x4   :  { %16 = vsyncpa [#allocation4], 0  ;;  %s592_s24 = smov [#allocation5]   ;;  %s406_s28 = scalar_lea.hbm %s756_s1, 256 }
   0x5   :  { %s34_s25 = sshll.u32 %s592_s24, 4  ;;  %p407_p0 = scmp.ne.s32.totalorder %s756_s1, %s406_s28  ;;  %s35_s25 = int_to_ptr.vmem [resolvable:$true] %s34_s25 }
   0x6   :  { %p410_p1 = scmp.lt.u32.totalorder %s406_s28, %s756_s1 }
   0x8   :  { %p412_p2 = pnand %p410_p1, %p407_p0 }
   0xa   :  { %415 = shalt.err (!%p412_p2)
}
   0xb   :  { %s416_s10 = scalar_lea.vmem %s35_s25, 256  ;;  %p421_p4 = scmp.lt.s32.totalorder %s35_s25, %s35_s25 }
   0xc   :  { %p417_p3 = scmp.ne.s32.totalorder %s35_s25, %s416_s10  ;;  %p422_p5 = scmp.lt.s32.totalorder %s416_s10, %s416_s10 }
   0xe   :  { %p423_p6 = por %p422_p5, %p421_p4 }
  0x10   :  { %p424_p7 = pnand %p423_p6, %p417_p3 }
  0x12   :  { %427 = shalt.err (!%p424_p7)
}
  0x13   :  { %s593_s11 = smov 64   ;;  %s594_s12 = smov 4  }
  0x14   :  { %40 = dma.hbm_to_vmem [thread:$0]  %s756_s1, 256, %s35_s25, [#allocation6], %s593_s11, %s593_s11, %s594_s12  }
  0x15   :  { %s595_s15 = smov [#allocation8]   ;;  %s596_s17 = smov [#allocation11]  }
  0x16   :  { %s56_s16 = sshll.u32 %s595_s15, 4  ;;  %s79_s18 = sshll.u32 %s596_s17, 4  ;;  %s57_s16 = int_to_ptr.vmem [resolvable:$true] %s56_s16  ;;  %s80_s18 = int_to_ptr.vmem [resolvable:$true] %s79_s18 }
  0x17   :  { %s428_s21 = scalar_lea.hbm %s758_s3, 512 }
  0x18   :  { %p429_p8 = scmp.ne.s32.totalorder %s758_s3, %s428_s21  ;;  %p432_p9 = scmp.lt.u32.totalorder %s428_s21, %s758_s3 }
  0x1a   :  { %p434_p10 = pnand %p432_p9, %p429_p8 }
  0x1c   :  { %437 = shalt.err (!%p434_p10)
}
  0x1d   :  { %s438_s1 = scalar_lea.vmem %s57_s16, 512  ;;  %p443_p12 = scmp.lt.s32.totalorder %s57_s16, %s57_s16 }
  0x1e   :  { %p439_p11 = scmp.ne.s32.totalorder %s57_s16, %s438_s1  ;;  %p444_p13 = scmp.lt.s32.totalorder %s438_s1, %s438_s1 }
  0x20   :  { %p445_p0 = por %p444_p13, %p443_p12 }
  0x22   :  { %p446_p1 = pnand %p445_p0, %p439_p11 }
  0x24   :  { %449 = shalt.err (!%p446_p1)
}
  0x25   :  { %62 = dma.hbm_to_vmem [thread:$0]  %s758_s3, 512, %s57_s16, [#allocation9], %s593_s11, %s593_s11, %s594_s12  }
  0x26   :  { %s450_s30 = scalar_lea.hbm %s760_s5, 16 }
  0x27   :  { %p451_p2 = scmp.ne.s32.totalorder %s760_s5, %s450_s30  ;;  %p454_p3 = scmp.lt.u32.totalorder %s450_s30, %s760_s5 }
  0x29   :  { %p456_p4 = pnand %p454_p3, %p451_p2 }
  0x2b   :  { %459 = shalt.err (!%p456_p4)
}
  0x2c   :  { %s460_s14 = scalar_lea.vmem %s80_s18, 16  ;;  %s464_s15 = scalar_lea.vmem %s80_s18, 32 }
  0x2d   :  { %p461_p5 = scmp.ne.s32.totalorder %s80_s18, %s460_s14  ;;  %p465_p6 = scmp.lt.s32.totalorder %s80_s18, %s80_s18 }
  0x2e   :  { %p466_p7 = scmp.lt.s32.totalorder %s464_s15, %s460_s14 }
  0x30   :  { %p467_p8 = por %p466_p7, %p465_p6 }
  0x32   :  { %p468_p9 = pnand %p467_p8, %p461_p5 }
  0x34   :  { %471 = shalt.err (!%p468_p9)
}
  0x35   :  { %82 = dma.hbm_to_vmem [thread:$0]  %s760_s5, 16, %s80_s18, [#allocation12]  }
  0x36   :  { %s597_s12 = smov [#allocation2]   ;;  %s472_s20 = scalar_lea.hbm %s755_s0, 256 }
  0x37   :  { %s22_s16 = sshll.u32 %s597_s12, 4  ;;  %p473_p10 = scmp.ne.s32.totalorder %s755_s0, %s472_s20  ;;  %s23_s16 = int_to_ptr.vmem [resolvable:$true] %s22_s16 }
  0x38   :  { %p476_p11 = scmp.lt.u32.totalorder %s472_s20, %s755_s0 }
  0x3a   :  { %p478_p12 = pnand %p476_p11, %p473_p10 }
  0x3c   :  { %481 = shalt.err (!%p478_p12)
}
  0x3d   :  { %s482_s26 = scalar_lea.vmem %s23_s16, 256  ;;  %p487_p0 = scmp.lt.s32.totalorder %s23_s16, %s23_s16 }
  0x3e   :  { %p483_p13 = scmp.ne.s32.totalorder %s23_s16, %s482_s26  ;;  %p488_p1 = scmp.lt.s32.totalorder %s482_s26, %s482_s26 }
  0x40   :  { %p489_p2 = por %p488_p1, %p487_p0 }
  0x42   :  { %p490_p3 = pnand %p489_p2, %p483_p13 }
  0x44   :  { %493 = shalt.err (!%p490_p3)
}
  0x45   :  { %s598_s5 = smov 128   ;;  %s599_s18 = smov 8  }
  0x46   :  { %28 = dma.hbm_to_vmem [thread:$0]  %s755_s0, 256, %s23_s16, [#allocation3], %s598_s5, %s598_s5, %s599_s18  }
  0x47   :  { %s600_s27 = smov [#allocation7]   ;;  %s601_s29 = smov [#allocation10]  }
  0x48   :  { %s47_s28 = sshll.u32 %s600_s27, 4  ;;  %s69_s30 = sshll.u32 %s601_s29, 4  ;;  %s48_s28 = int_to_ptr.vmem [resolvable:$true] %s47_s28  ;;  %s70_s30 = int_to_ptr.vmem [resolvable:$true] %s69_s30 }
  0x49   :  { %s494_s10 = scalar_lea.hbm %s757_s2, 16 }
  0x4a   :  { %p495_p4 = scmp.ne.s32.totalorder %s757_s2, %s494_s10  ;;  %p498_p5 = scmp.lt.u32.totalorder %s494_s10, %s757_s2 }
  0x4c   :  { %p500_p6 = pnand %p498_p5, %p495_p4 }
  0x4e   :  { %503 = shalt.err (!%p500_p6)
}
  0x4f   :  { %s504_s0 = scalar_lea.vmem %s48_s28, 16  ;;  %s508_s11 = scalar_lea.vmem %s48_s28, 32 }
  0x50   :  { %p505_p7 = scmp.ne.s32.totalorder %s48_s28, %s504_s0  ;;  %p509_p8 = scmp.lt.s32.totalorder %s48_s28, %s48_s28 }
  0x51   :  { %p510_p9 = scmp.lt.s32.totalorder %s508_s11, %s504_s0 }
  0x53   :  { %p511_p10 = por %p510_p9, %p509_p8 }
  0x55   :  { %p512_p11 = pnand %p511_p10, %p505_p7 }
  0x57   :  { %515 = shalt.err (!%p512_p11)
}
  0x58   :  { %50 = dma.hbm_to_vmem [thread:$0]  %s757_s2, 16, %s48_s28, [#allocation6]  }
  0x59   :  { %s516_s20 = scalar_lea.hbm %s759_s4, 16 }
  0x5a   :  { %p517_p12 = scmp.ne.s32.totalorder %s759_s4, %s516_s20  ;;  %p520_p13 = scmp.lt.u32.totalorder %s516_s20, %s759_s4 }
  0x5c   :  { %p522_p0 = pnand %p520_p13, %p517_p12 }
  0x5e   :  { %525 = shalt.err (!%p522_p0)
}
  0x5f   :  { %s526_s26 = scalar_lea.vmem %s70_s30, 16  ;;  %s530_s1 = scalar_lea.vmem %s70_s30, 32 }
  0x60   :  { %p527_p1 = scmp.ne.s32.totalorder %s70_s30, %s526_s26  ;;  %p531_p2 = scmp.lt.s32.totalorder %s70_s30, %s70_s30 }
  0x61   :  { %p532_p3 = scmp.lt.s32.totalorder %s530_s1, %s526_s26 }
  0x63   :  { %p533_p4 = por %p532_p3, %p531_p2 }
  0x65   :  { %p534_p5 = pnand %p533_p4, %p527_p1 }
  0x67   :  { %537 = shalt.err (!%p534_p5)
}
  0x68   :  { %72 = dma.hbm_to_vmem [thread:$0]  %s759_s4, 16, %s70_s30, [#allocation9]  }
  0x69   :  { %s602_s27 = smov [#allocation13]   ;;  %s538_s9 = scalar_lea.hbm %s761_s6, 16 }
  0x6a   :  { %s89_s28 = sshll.u32 %s602_s27, 4  ;;  %p539_p6 = scmp.ne.s32.totalorder %s761_s6, %s538_s9  ;;  %s90_s28 = int_to_ptr.vmem [resolvable:$true] %s89_s28 }
  0x6b   :  { %p542_p7 = scmp.lt.u32.totalorder %s538_s9, %s761_s6 }
  0x6d   :  { %p544_p8 = pnand %p542_p7, %p539_p6 }
  0x6f   :  { %547 = shalt.err (!%p544_p8)
}
  0x70   :  { %s548_s3 = scalar_lea.vmem %s90_s28, 16  ;;  %s552_s4 = scalar_lea.vmem %s90_s28, 32 }
  0x71   :  { %p549_p9 = scmp.ne.s32.totalorder %s90_s28, %s548_s3  ;;  %p553_p10 = scmp.lt.s32.totalorder %s90_s28, %s90_s28 }
  0x72   :  { %p554_p11 = scmp.lt.s32.totalorder %s552_s4, %s548_s3 }
  0x74   :  { %p555_p12 = por %p554_p11, %p553_p10 }
  0x76   :  { %p556_p13 = pnand %p555_p12, %p549_p9 }
  0x78   :  { %559 = shalt.err (!%p556_p13)
}
  0x79   :  { %92 = dma.hbm_to_vmem [thread:$0]  %s761_s6, 16, %s90_s28, [#allocation12]  }
  0x7a   :  { %582 = dma.done.wait [#allocation3], 256  }
  0x7b   :  { %583 = vsyncadd [#allocation3], 4294967040 }
  0x7c   :  { %584 = dma.done.wait [#allocation6], 272  }
  0x7d   :  { %585 = vsyncadd [#allocation6], 4294967024 }
  0x7e   :  { %586 = dma.done.wait [#allocation9], 528  }
  0x7f   :  { %587 = vsyncadd [#allocation9], 4294966768 }
  0x80   :  { %588 = dma.done.wait [#allocation12], 32  }
  0x81   :  { %589 = vsyncadd [#allocation12], 4294967264  ;;  %v603_v0 = vmov 0.0   ;;  %vm604_vm0 = vmmov 0   ;;  %v396_v1 = vld [vmem:[#allocation5] sm:$0xff]   ;;  %v397_v2 = vld [vmem:[#allocation5 + $0x8] sm:$0xff]  }
  0x82   :  { %362 = vmatprep.subr.bf16.mxu0 %v603_v0  ;;  %366 = vmatprep.mubr.msk.bf16.mxu0 %vm604_vm0, %v603_v0  ;;  %v115_v3 = vld [vmem:[#allocation2] sm:$0xff]  ;;  %v116_v4 = vld [vmem:[#allocation2 + $0x8] sm:$0xff]  ;;  %vm141_vm1 = vcmask 261120   ;;  %v400_v8 = vld [vmem:[#allocation8 + $0x10] sm:$0xff]   ;;  %vm228_vm2 = vcmask 523264   ;;  %s605_s6 = smov [#allocation14]  }
  0x83   :  { %370 = vmatprep.subr.bf16.mxu1 %v603_v0  ;;  %378 = vmatprep.mubr.msk.bf16.mxu1 %vm604_vm0, %v603_v0  ;;  %v398_v5 = vld [vmem:[#allocation8] sm:$0xff]   ;;  %v399_v6 = vld [vmem:[#allocation8 + $0x8] sm:$0xff]   ;;  %v117_v7 = vpack.c.bf16 %v116_v4, %v115_v3  ;;  %v401_v9 = vld [vmem:[#allocation8 + $0x18] sm:$0xff]   ;;  %s327_s11 = sshll.u32 %s605_s6, 4  ;;  %s328_s11 = int_to_ptr.vmem [resolvable:$true] %s327_s11 }
  0x84   :  { %363 = vmatpush3.bf16.msra.mxu0 %v396_v1  ;;  %371 = vmatpush3.bf16.msra.mxu1 %v398_v5  ;;  %v342_v10 = vld [vmem:[#allocation7] ss:$0 sm:$0xff]  ;;  %v346_v20 = vld [vmem:[#allocation10] ss:$0 sm:$0xff]  ;;  %v352_v48 = vld [vmem:[#allocation11] ss:$0 sm:$0xff]  ;;  %p565_p1 = scmp.lt.s32.totalorder %s328_s11, %s328_s11 }
  0x85   :  { %364 = vmatprep.subr.bf16.mxu0 %v603_v0  ;;  %372 = vmatprep.subr.bf16.mxu1 %v603_v0  ;;  %v353_v50 = vld [vmem:[#allocation13] ss:$0 sm:$0xff]  ;;  %s560_s12 = scalar_lea.vmem %s328_s11, 256 }
  0x86   :  { %p561_p0 = scmp.ne.s32.totalorder %s328_s11, %s560_s12  ;;  %p566_p2 = scmp.lt.s32.totalorder %s560_s12, %s560_s12 }
  0x88   :  { %365 = vmatpush3.bf16.msra.mxu0 %v397_v2  ;;  %373 = vmatpush3.bf16.msra.mxu1 %v399_v6  ;;  %p567_p3 = por %p566_p2, %p565_p1 }
  0x89   :  { %374 = vmatprep.subr.bf16.mxu1 %v603_v0 }
  0x8a   :  { %p568_p4 = pnand %p567_p3, %p561_p0 }
  0x8b   :  { %367 = vmatmul.mubr.msk.bf16.vlgmr.msra.gmra.mrb[0].mxu0 %vm141_vm1, %v117_v7 }
  0x8c   :  { %375 = vmatpush3.bf16.msra.mxu1 %v400_v8 }
  0x8d   :  { %376 = vmatprep.subr.bf16.mxu1 %v603_v0 }
  0x90   :  { %377 = vmatpush3.bf16.msra.mxu1 %v401_v9 }
 0x15e   :  { %v179_v11 = vpop.f32.mrb[0].mxu0 }
 0x15f   :  { %v180_v12 = vadd.f32 %v342_v10, %v179_v11  ;;  %v368_v13 = vpop.f32.mrb[1].mxu0 }
 0x160   :  { %v182_v14 = vpop.f32.mrb[2].mxu0 }
 0x161   :  { %v183_v15 = vadd.f32 %v342_v10, %v182_v14  ;;  %v369_v16 = vpop.f32.mrb[3].mxu0  ;;  %v186_v17 = vmax.f32 %v180_v12, 0.0 }
 0x163   :  { %v187_v18 = vmax.f32 %v183_v15, 0.0 }
 0x165   :  { %v188_v19 = vpack.c.bf16 %v187_v18, %v186_v17 }
 0x167   :  { %379 = vmatmul.mubr.msk.bf16.vlgmr.msra.gmra.mrb[0].mxu1 %vm228_vm2, %v188_v19 }
 0x23a   :  { %v266_v21 = vpop.f32.mrb[0].mxu1 }
 0x23b   :  { %v267_v22 = vadd.f32 %v346_v20, %v266_v21  ;;  %v380_v23 = vpop.f32.mrb[1].mxu1 }
 0x23c   :  { %v269_v24 = vpop.f32.mrb[2].mxu1 }
 0x23d   :  { %v270_v25 = vadd.f32 %v346_v20, %v269_v24  ;;  %v381_v26 = vpop.f32.mrb[3].mxu1  ;;  %v273_v27 = vadd.f32 %v267_v22, %v115_v3 }
 0x23f   :  { %v275_v28 = vsel %vm141_vm1, %v273_v27, 0.0  ;;  %v274_v29 = vadd.f32 %v270_v25, %v116_v4 }
 0x240   :  { %276 = vadd.xlane.f32.xlu0 %v275_v28 }
 0x241   :  { %v278_v30 = vsel %vm141_vm1, %v274_v29, 0.0 }
 0x244   :  { %279 = vadd.xlane.f32.xlu0 %v278_v30 }
 0x2cd   :  { %v277_v31 = vpop.xlane.xlu0 %276 }
 0x2ce   :  { %v282_v32 = vmul.f32 0.03125, %v277_v31 }
 0x2d0   :  { %v284_v33 = vsub.f32 %v273_v27, %v282_v32 }
 0x2d1   :  { %v280_v34 = vpop.xlane.xlu0 %279 }
 0x2d2   :  { %v283_v35 = vmul.f32 0.03125, %v280_v34  ;;  %v286_v36 = vmul.f32 %v284_v33, %v284_v33 }
 0x2d4   :  { %v285_v37 = vsub.f32 %v274_v29, %v283_v35  ;;  %v288_v38 = vsel %vm141_vm1, %v286_v36, 0.0 }
 0x2d5   :  { %289 = vadd.xlane.f32.xlu1 %v288_v38 }
 0x2d6   :  { %v287_v39 = vmul.f32 %v285_v37, %v285_v37 }
 0x2d8   :  { %v291_v40 = vsel %vm141_vm1, %v287_v39, 0.0 }
 0x2d9   :  { %292 = vadd.xlane.f32.xlu1 %v291_v40 }
 0x362   :  { %v290_v41 = vpop.xlane.xlu1 %289 }
 0x363   :  { %v294_v42 = vmul.f32 0.03125, %v290_v41 }
 0x365   :  { %v296_v43 = vadd.f32 1e-06, %v294_v42 }
 0x366   :  { %v293_v44 = vpop.xlane.xlu1 %292 }
 0x367   :  { %402 = vrsqrt.f32 %v296_v43  ;;  %v295_v45 = vmul.f32 0.03125, %v293_v44 }
 0x369   :  { %v297_v46 = vadd.f32 1e-06, %v295_v45 }
 0x36b   :  { %404 = vrsqrt.f32 %v297_v46 }
 0x371   :  { %v403_v47 = vpop.eup %402 }
 0x372   :  { %v300_v49 = vmul.f32 %v403_v47, %v284_v33 }
 0x374   :  { %v309_v51 = vmul.f32 %v352_v48, %v300_v49 }
 0x375   :  { %v405_v52 = vpop.eup %404 }
 0x376   :  { %v301_v53 = vmul.f32 %v405_v52, %v285_v37  ;;  %v318_v54 = vadd.f32 %v353_v50, %v309_v51 }
 0x378   :  { %v310_v55 = vmul.f32 %v352_v48, %v301_v53  ;;  %320 = vst.msk [vmem:[#allocation14] sm:$0xff] %vm141_vm1, %v318_v54 }
 0x37a   :  { %v319_v56 = vadd.f32 %v353_v50, %v310_v55 }
 0x37c   :  { %321 = vst.msk [vmem:[#allocation14 + $0x8] sm:$0xff] %vm141_vm1, %v319_v56 }
 0x37d   :  { %571 = shalt.err (!%p568_p4)
}
 0x37e   :  { %s572_s19 = scalar_lea.hbm %s762_s7, 256 }
 0x37f   :  { %p573_p5 = scmp.ne.s32.totalorder %s762_s7, %s572_s19  ;;  %p576_p6 = scmp.lt.u32.totalorder %s572_s19, %s762_s7 }
 0x381   :  { %p578_p7 = pnand %p576_p6, %p573_p5 }
 0x383   :  { %581 = shalt.err (!%p578_p7)
}
 0x384   :  { %333 = dma.vmem_to_hbm [thread:$0]  %s328_s11, 256, %s762_s7, [#allocation4], %s598_s5, %s598_s5, %s599_s18  }
 0x385   :  { %590 = dma.done.wait [#allocation4], 256  }
 0x386   :  { %591 = vsyncadd [#allocation4], 4294967040 }
 0x387   :  { %337 = vsyncpa [#allocation3], 1 }
 0x388   :  { %338 = vsyncpa [#allocation6], 1 }
 0x389   :  { %339 = vsyncpa [#allocation9], 1 }
 0x38a   :  { %340 = vsyncpa [#allocation12], 1 }
 0x38b   :  { %341 = vsyncpa [#allocation4], 1 }

</bundles_post_ra>
